<compile_context>
chip_gen: v5e
topology: v5e:2x2
jax: 0.10.0
libtpu: 0.0.40
codegen_flags: <defaults>
</compile_context>

<pallas_src>
import functools

import jax
import jax.numpy as jnp
from jax.experimental import pallas as pl
from jax.experimental.pallas import tpu as pltpu

LRELU_SLOPE = 0.2
VMEM_LIMIT = 48 * 1024 * 1024  # explicit scoped-VMEM cap (safe on v5e/v6e/v7x)


def _round_up(x, m):
    return (x + m - 1) // m * m


def _max_row_tile():
    # 256-row LHS tiles fill the 256x256 MXU on v6e/v7x; keep 128 on 128x128-MXU chips.
    try:
        kind = jax.devices()[0].device_kind.lower()
    except Exception:
        return 128
    return 256 if ("v6" in kind or "v7" in kind) else 128


TM_MAX = _max_row_tile()


def _tile_rows(M, tm_max):
    """Pick a row tile TM (multiple of 8) and padded row count Mp with Mp % TM == 0."""
    if M <= tm_max:
        m = _round_up(M, 8)
        return m, m
    t = tm_max
    while t >= 8:
        if M % t == 0:
            return t, M
        t -= 8
    return tm_max, _round_up(M, tm_max)


# ---------------------------------------------------------------------------
# Pallas kernels
# ---------------------------------------------------------------------------
def _conv_mm_kernel(x_ref, w_ref, b_ref, o_ref, *, apply_lrelu):
    """(TM, Cout) output tile: patches @ weights + bias (+LeakyReLU). No residual stream."""
    acc = jnp.dot(x_ref[...], w_ref[...], preferred_element_type=jnp.float32)
    acc = acc + b_ref[...]                      # (1, Cout) broadcasts over rows
    if apply_lrelu:
        acc = jnp.where(acc >= 0, acc, LRELU_SLOPE * acc)
    o_ref[...] = acc.astype(o_ref.dtype)


def _conv_mm_res_kernel(x_ref, w_ref, b_ref, r_ref, o_ref, *, apply_lrelu):
    """Same as above but fuses the U-Net skip-connection add (after LeakyReLU)."""
    acc = jnp.dot(x_ref[...], w_ref[...], preferred_element_type=jnp.float32)
    acc = acc + b_ref[...]
    if apply_lrelu:
        acc = jnp.where(acc >= 0, acc, LRELU_SLOPE * acc)
    acc = acc + r_ref[...].astype(jnp.float32)
    o_ref[...] = acc.astype(o_ref.dtype)


def _upsample2x_kernel(x_ref, ee_ref, eo_ref, oe_ref, oo_ref):
    """Bilinear 2x upsample (align_corners=False), separable; one image per grid step.

    Emits the 4 output phases: out[2i+a, 2j+b] = {ee,eo,oe,oo}[i, j].
    """
    x = x_ref[...].astype(jnp.float32)          # (1, H, W, C)
    # interpolate along H (clamped shifts)
    xp = jnp.concatenate([x[:, :1], x[:, :-1]], axis=1)
    xn = jnp.concatenate([x[:, 1:], x[:, -1:]], axis=1)
    e_h = 0.25 * xp + 0.75 * x                  # even output rows
    o_h = 0.75 * x + 0.25 * xn                  # odd output rows

    def _w_interp(y):
        yp = jnp.concatenate([y[:, :, :1], y[:, :, :-1]], axis=2)
        yn = jnp.concatenate([y[:, :, 1:], y[:, :, -1:]], axis=2)
        return 0.25 * yp + 0.75 * y, 0.75 * y + 0.25 * yn

    ee, eo = _w_interp(e_h)
    oe, oo = _w_interp(o_h)
    ee_ref[...] = ee.astype(ee_ref.dtype)
    eo_ref[...] = eo.astype(eo_ref.dtype)
    oe_ref[...] = oe.astype(oe_ref.dtype)
    oo_ref[...] = oo.astype(oo_ref.dtype)


# ---------------------------------------------------------------------------
# Wrappers (glue: spatial padding, im2col, interleave)
# ---------------------------------------------------------------------------
def conv2d(x, w_mat, b_row, *, k, stride, padding, lrelu, residual=None,
           out_dtype=jnp.bfloat16):
    """x: (N,H,W,Cin) bf16; w_mat: (K,Cout) bf16 (prepacked); b_row: (1,Cout) f32."""
    N, H, W, Cin = x.shape
    K, Cout = w_mat.shape
    assert K == k * k * Cin, (K, k, Cin)
    Ho = (H + 2 * padding - k) // stride + 1
    Wo = (W + 2 * padding - k) // stride + 1
    M = N * Ho * Wo

    # im2col (glue): (M, K), k index = (i*KW + j)*Cin + c  -- matches w_mat packing.
    xp = jnp.pad(x, ((0, 0), (padding, padding), (padding, padding), (0, 0)))
    cols = []
    for i in range(k):
        for j in range(k):
            cols.append(xp[:, i:i + stride * Ho:stride, j:j + stride * Wo:stride, :])
    patches = jnp.concatenate(cols, axis=-1).reshape(M, K)

    TM, Mp = _tile_rows(M, TM_MAX)
    if Mp != M:
        patches = jnp.pad(patches, ((0, Mp - M), (0, 0)))

    operands = [patches, w_mat, b_row]
    in_specs = [
        pl.BlockSpec((TM, K), lambda i: (i, 0)),        # K un-padded (full-dim block)
        pl.BlockSpec((K, Cout), lambda i: (0, 0)),      # weight block resident
        pl.BlockSpec((1, Cout), lambda i: (0, 0)),      # bias row (tiny)
    ]
    if residual is not None:
        r = residual.reshape(M, Cout)
        if Mp != M:
            r = jnp.pad(r, ((0, Mp - M), (0, 0)))
        operands.append(r)
        in_specs.append(pl.BlockSpec((TM, Cout), lambda i: (i, 0)))
        kernel = functools.partial(_conv_mm_res_kernel, apply_lrelu=lrelu)
    else:
        kernel = functools.partial(_conv_mm_kernel, apply_lrelu=lrelu)

    out = pl.pallas_call(
        kernel,
        out_shape=jax.ShapeDtypeStruct((Mp, Cout), out_dtype),
        grid=(Mp // TM,),
        in_specs=in_specs,
        out_specs=pl.BlockSpec((TM, Cout), lambda i: (i, 0)),
        compiler_params=pltpu.CompilerParams(
            dimension_semantics=("parallel",),
            vmem_limit_bytes=VMEM_LIMIT),
    )(*operands)

    if Mp != M:
        out = out[:M]
    return out.reshape(N, Ho, Wo, Cout)


def upsample2x_bilinear(x):
    """F.interpolate(x, scale_factor=2, mode='bilinear', align_corners=False) in NHWC."""
    N, H, W, C = x.shape
    blk = (1, H, W, C)
    ee, eo, oe, oo = pl.pallas_call(
        _upsample2x_kernel,
        out_shape=tuple(jax.ShapeDtypeStruct((N, H, W, C), x.dtype) for _ in range(4)),
        grid=(N,),
        in_specs=[pl.BlockSpec(blk, lambda n: (n, 0, 0, 0))],
        out_specs=tuple(pl.BlockSpec(blk, lambda n: (n, 0, 0, 0)) for _ in range(4)),
        compiler_params=pltpu.CompilerParams(
            dimension_semantics=("parallel",),
            vmem_limit_bytes=VMEM_LIMIT),
    )(x)
    # TODO(synk): write a single interleaved (N,H,2,W,2,C) output in-kernel to drop this pass.
    row_e = jnp.stack([ee, eo], axis=3).reshape(N, H, 2 * W, C)
    row_o = jnp.stack([oe, oo], axis=3).reshape(N, H, 2 * W, C)
    return jnp.stack([row_e, row_o], axis=2).reshape(N, 2 * H, 2 * W, C)


# ---------------------------------------------------------------------------
# Parameters (deterministic, synthetic) + spectral normalization (setup-time)
# ---------------------------------------------------------------------------
def _spectral_normalize(w, key, n_iters=3):
    """Divide conv weight by its spectral norm (power iteration, as in torch SN)."""
    cout = w.shape[0]
    wmat = w.reshape(cout, -1)
    u = jax.random.normal(key, (cout,), jnp.float32)
    u = u / (jnp.linalg.norm(u) + 1e-12)
    v = None
    for _ in range(n_iters):
        v = wmat.T @ u
        v = v / (jnp.linalg.norm(v) + 1e-12)
        u = wmat @ v
        u = u / (jnp.linalg.norm(u) + 1e-12)
    sigma = u @ (wmat @ v)
    return w / sigma


def _prep_conv(w, b, cout):
    """PyTorch (Cout,Cin,KH,KW) weight -> prepacked ((K,Cout) bf16, (1,Cout) f32)."""
    ks = w.shape[2]
    K = ks * ks * w.shape[1]
    w_mat = jnp.transpose(w, (2, 3, 1, 0)).reshape(K, cout).astype(jnp.bfloat16)
    b_vec = b if b is not None else jnp.zeros((cout,), jnp.float32)
    return w_mat, b_vec.reshape(1, cout).astype(jnp.float32)


def init_params(key, num_in_ch=3, num_feat=16):
    keys = jax.random.split(key, 24)
    f = num_feat

    def cw(kk, cout, cin, ks):
        return jax.random.normal(kk, (cout, cin, ks, ks), jnp.float32) * 0.05

    p = {}
    # conv0 / conv9 carry biases; conv1..conv8 are spectral-normalized with bias=False
    # (matches the PyTorch module's nn.Conv2d(..., bias=False) construction).
    w0 = cw(keys[0], f, num_in_ch, 3)
    b0 = jax.random.normal(keys[1], (f,), jnp.float32) * 0.01
    p["w0"], p["b0"] = _prep_conv(w0, b0, f)

    specs = [  # (layer idx, cout, cin, kernel size)
        (1, f * 2, f, 4), (2, f * 4, f * 2, 4), (3, f * 8, f * 4, 4),
        (4, f * 4, f * 8, 3), (5, f * 2, f * 4, 3), (6, f, f * 2, 3),
        (7, f, f, 3), (8, f, f, 3),
    ]
    for n, (idx, cout, cin, ks) in enumerate(specs):
        w = _spectral_normalize(cw(keys[2 + 2 * n], cout, cin, ks), keys[3 + 2 * n])
        p[f"w{idx}"], p[f"b{idx}"] = _prep_conv(w, None, cout)

    w9 = cw(keys[18], 1, f, 3)
    b9 = jax.random.normal(keys[19], (1,), jnp.float32) * 0.01
    p["w9"], p["b9"] = _prep_conv(w9, b9, 1)
    return p


# ---------------------------------------------------------------------------
# Forward pass (semantics of UNetDiscriminatorSN.forward)
# ---------------------------------------------------------------------------
def unet_discriminator_sn(params, x_nchw, skip_connection=True):
    x = jnp.transpose(x_nchw, (0, 2, 3, 1)).astype(jnp.bfloat16)   # NCHW -> NHWC bf16

    x0 = conv2d(x,  params["w0"], params["b0"], k=3, stride=1, padding=1, lrelu=True)
    x1 = conv2d(x0, params["w1"], params["b1"], k=4, stride=2, padding=1, lrelu=True)
    x2 = conv2d(x1, params["w2"], params["b2"], k=4, stride=2, padding=1, lrelu=True)
    x3 = conv2d(x2, params["w3"], params["b3"], k=4, stride=2, padding=1, lrelu=True)

    x3 = upsample2x_bilinear(x3)
    x4 = conv2d(x3, params["w4"], params["b4"], k=3, stride=1, padding=1, lrelu=True,
                residual=x2 if skip_connection else None)

    x4 = upsample2x_bilinear(x4)
    x5 = conv2d(x4, params["w5"], params["b5"], k=3, stride=1, padding=1, lrelu=True,
                residual=x1 if skip_connection else None)

    x5 = upsample2x_bilinear(x5)
    x6 = conv2d(x5, params["w6"], params["b6"], k=3, stride=1, padding=1, lrelu=True,
                residual=x0 if skip_connection else None)

    out = conv2d(x6,  params["w7"], params["b7"], k=3, stride=1, padding=1, lrelu=True)
    out = conv2d(out, params["w8"], params["b8"], k=3, stride=1, padding=1, lrelu=True)
    out = conv2d(out, params["w9"], params["b9"], k=3, stride=1, padding=1, lrelu=False,
                 out_dtype=jnp.float32)

    return jnp.transpose(out, (0, 3, 1, 2))   # back to NCHW: (N, 1, H, W)


# ---------------------------------------------------------------------------
if __name__ == "__main__":
    key = jax.random.PRNGKey(0)
    kp, kx = jax.random.split(key)

    num_in_ch, num_feat = 3, 16          # small synthetic config
    params = init_params(kp, num_in_ch=num_in_ch, num_feat=num_feat)
    x = jax.random.normal(kx, (2, num_in_ch, 16, 16), jnp.float32)

    fwd = jax.jit(functools.partial(unet_discriminator_sn, skip_connection=True))
    out = fwd(params, x)
    jax.block_until_ready(out)

    assert out.shape == (2, 1, 16, 16), out.shape
    assert out.dtype == jnp.float32
    print("KERNEL_OK")
</pallas_src>

<mosaic_0001>
module attributes {stable_mosaic.version = 11 : i64} {
  func.func @_conv_mm_kernel(%arg0: i32, %arg1: memref<128x27xbf16, #tpu.memory_space<vmem>>, %arg2: memref<27x16xbf16, #tpu.memory_space<vmem>>, %arg3: memref<1x16xf32, #tpu.memory_space<vmem>>, %arg4: memref<128x16xbf16, #tpu.memory_space<vmem>>) attributes {dimension_semantics = [#tpu.dimension_semantics<parallel>], iteration_bounds = array<i64: 4>, scalar_prefetch = 0 : i64, scratch_operands = 0 : i64, tpu.core_type = #tpu.core_type<tc>, window_params = [{transform_indices = @transform_0, window_bounds = array<i64: 128, 27>}, {pipeline_mode = #tpu.pipeline_mode<synchronous>, transform_indices = @transform_1, window_bounds = array<i64: 27, 16>}, {pipeline_mode = #tpu.pipeline_mode<synchronous>, transform_indices = @transform_2, window_bounds = array<i64: 1, 16>}, {transform_indices = @transform_3, window_bounds = array<i64: 128, 16>}]} {
    %c0 = arith.constant 0 : index
    %c0_0 = arith.constant 0 : index
    %0 = vector.load %arg1[%c0, %c0_0] : memref<128x27xbf16, #tpu.memory_space<vmem>>, vector<128x27xbf16>
    %c0_1 = arith.constant 0 : index
    %c0_2 = arith.constant 0 : index
    %1 = vector.load %arg2[%c0_1, %c0_2] : memref<27x16xbf16, #tpu.memory_space<vmem>>, vector<27x16xbf16>
    %cst = arith.constant dense<0.000000e+00> : vector<128x16xf32>
    %2 = tpu.matmul %0, %1, %cst {dimension_numbers = #tpu.dot_dimension_numbers<[1], [0], [0], [1], [0, 0, 1, 1], [], []>} : vector<128x27xbf16>, vector<27x16xbf16>, vector<128x16xf32> -> vector<128x16xf32>
    %c0_3 = arith.constant 0 : index
    %c0_4 = arith.constant 0 : index
    %3 = vector.load %arg3[%c0_3, %c0_4] : memref<1x16xf32, #tpu.memory_space<vmem>>, vector<1x16xf32>
    %4 = vector.broadcast %3 : vector<1x16xf32> to vector<128x16xf32>
    %5 = arith.addf %2, %4 : vector<128x16xf32>
    %cst_5 = arith.constant 0.000000e+00 : f32
    %6 = vector.broadcast %cst_5 : f32 to vector<128x16xf32>
    %7 = arith.cmpf oge, %5, %6 : vector<128x16xf32>
    %cst_6 = arith.constant 2.000000e-01 : f32
    %8 = vector.broadcast %cst_6 : f32 to vector<128x16xf32>
    %9 = arith.mulf %8, %5 : vector<128x16xf32>
    %10 = arith.select %7, %5, %9 : vector<128x16xi1>, vector<128x16xf32>
    %11 = arith.truncf %10 : vector<128x16xf32> to vector<128x16xbf16>
    %c0_7 = arith.constant 0 : index
    %c0_8 = arith.constant 0 : index
    %12 = vector.load %arg4[%c0_7, %c0_8] : memref<128x16xbf16, #tpu.memory_space<vmem>>, vector<128x16xbf16>
    tpu.vector_store %arg4[%c0_7, %c0_8], %11 {strides = array<i32>} : memref<128x16xbf16, #tpu.memory_space<vmem>>, vector<128x16xbf16>,
    return
  }
  func.func @transform_0(%arg0: i32) -> (i32, i32) {
    %c0_i32 = arith.constant 0 : i32
    %c0_i32_0 = arith.constant 0 : i32
    return %arg0, %c0_i32 : i32, i32
  }
  func.func @transform_1(%arg0: i32) -> (i32, i32) {
    %c0_i32 = arith.constant 0 : i32
    %c0_i32_0 = arith.constant 0 : i32
    %c0_i32_1 = arith.constant 0 : i32
    return %c0_i32, %c0_i32_0 : i32, i32
  }
  func.func @transform_2(%arg0: i32) -> (i32, i32) {
    %c0_i32 = arith.constant 0 : i32
    %c0_i32_0 = arith.constant 0 : i32
    %c0_i32_1 = arith.constant 0 : i32
    return %c0_i32, %c0_i32_0 : i32, i32
  }
  func.func @transform_3(%arg0: i32) -> (i32, i32) {
    %c0_i32 = arith.constant 0 : i32
    %c0_i32_0 = arith.constant 0 : i32
    return %arg0, %c0_i32 : i32, i32
  }
}

module attributes {stable_mosaic.version = 11 : i64} {
  func.func @_conv_mm_kernel(%arg0: i32, %arg1: memref<128x256xbf16, #tpu.memory_space<vmem>>, %arg2: memref<256x32xbf16, #tpu.memory_space<vmem>>, %arg3: memref<1x32xf32, #tpu.memory_space<vmem>>, %arg4: memref<128x32xbf16, #tpu.memory_space<vmem>>) attributes {dimension_semantics = [#tpu.dimension_semantics<parallel>], iteration_bounds = array<i64: 1>, scalar_prefetch = 0 : i64, scratch_operands = 0 : i64, tpu.core_type = #tpu.core_type<tc>, window_params = [{transform_indices = @transform_0, window_bounds = array<i64: 128, 256>}, {pipeline_mode = #tpu.pipeline_mode<synchronous>, transform_indices = @transform_1, window_bounds = array<i64: 256, 32>}, {pipeline_mode = #tpu.pipeline_mode<synchronous>, transform_indices = @transform_2, window_bounds = array<i64: 1, 32>}, {transform_indices = @transform_3, window_bounds = array<i64: 128, 32>}]} {
    %c0 = arith.constant 0 : index
    %c0_0 = arith.constant 0 : index
    %0 = vector.load %arg1[%c0, %c0_0] : memref<128x256xbf16, #tpu.memory_space<vmem>>, vector<128x256xbf16>
    %c0_1 = arith.constant 0 : index
    %c0_2 = arith.constant 0 : index
    %1 = vector.load %arg2[%c0_1, %c0_2] : memref<256x32xbf16, #tpu.memory_space<vmem>>, vector<256x32xbf16>
    %cst = arith.constant dense<0.000000e+00> : vector<128x32xf32>
    %2 = tpu.matmul %0, %1, %cst {dimension_numbers = #tpu.dot_dimension_numbers<[1], [0], [0], [1], [0, 0, 1, 1], [], []>} : vector<128x256xbf16>, vector<256x32xbf16>, vector<128x32xf32> -> vector<128x32xf32>
    %c0_3 = arith.constant 0 : index
    %c0_4 = arith.constant 0 : index
    %3 = vector.load %arg3[%c0_3, %c0_4] : memref<1x32xf32, #tpu.memory_space<vmem>>, vector<1x32xf32>
    %4 = vector.broadcast %3 : vector<1x32xf32> to vector<128x32xf32>
    %5 = arith.addf %2, %4 : vector<128x32xf32>
    %cst_5 = arith.constant 0.000000e+00 : f32
    %6 = vector.broadcast %cst_5 : f32 to vector<128x32xf32>
    %7 = arith.cmpf oge, %5, %6 : vector<128x32xf32>
    %cst_6 = arith.constant 2.000000e-01 : f32
    %8 = vector.broadcast %cst_6 : f32 to vector<128x32xf32>
    %9 = arith.mulf %8, %5 : vector<128x32xf32>
    %10 = arith.select %7, %5, %9 : vector<128x32xi1>, vector<128x32xf32>
    %11 = arith.truncf %10 : vector<128x32xf32> to vector<128x32xbf16>
    %c0_7 = arith.constant 0 : index
    %c0_8 = arith.constant 0 : index
    %12 = vector.load %arg4[%c0_7, %c0_8] : memref<128x32xbf16, #tpu.memory_space<vmem>>, vector<128x32xbf16>
    tpu.vector_store %arg4[%c0_7, %c0_8], %11 {strides = array<i32>} : memref<128x32xbf16, #tpu.memory_space<vmem>>, vector<128x32xbf16>,
    return
  }
  func.func @transform_0(%arg0: i32) -> (i32, i32) {
    %c0_i32 = arith.constant 0 : i32
    %c0_i32_0 = arith.constant 0 : i32
    return %arg0, %c0_i32 : i32, i32
  }
  func.func @transform_1(%arg0: i32) -> (i32, i32) {
    %c0_i32 = arith.constant 0 : i32
    %c0_i32_0 = arith.constant 0 : i32
    %c0_i32_1 = arith.constant 0 : i32
    return %c0_i32, %c0_i32_0 : i32, i32
  }
  func.func @transform_2(%arg0: i32) -> (i32, i32) {
    %c0_i32 = arith.constant 0 : i32
    %c0_i32_0 = arith.constant 0 : i32
    %c0_i32_1 = arith.constant 0 : i32
    return %c0_i32, %c0_i32_0 : i32, i32
  }
  func.func @transform_3(%arg0: i32) -> (i32, i32) {
    %c0_i32 = arith.constant 0 : i32
    %c0_i32_0 = arith.constant 0 : i32
    return %arg0, %c0_i32 : i32, i32
  }
}

module attributes {stable_mosaic.version = 11 : i64} {
  func.func @_conv_mm_kernel(%arg0: i32, %arg1: memref<32x512xbf16, #tpu.memory_space<vmem>>, %arg2: memref<512x64xbf16, #tpu.memory_space<vmem>>, %arg3: memref<1x64xf32, #tpu.memory_space<vmem>>, %arg4: memref<32x64xbf16, #tpu.memory_space<vmem>>) attributes {dimension_semantics = [#tpu.dimension_semantics<parallel>], iteration_bounds = array<i64: 1>, scalar_prefetch = 0 : i64, scratch_operands = 0 : i64, tpu.core_type = #tpu.core_type<tc>, window_params = [{transform_indices = @transform_0, window_bounds = array<i64: 32, 512>}, {pipeline_mode = #tpu.pipeline_mode<synchronous>, transform_indices = @transform_1, window_bounds = array<i64: 512, 64>}, {pipeline_mode = #tpu.pipeline_mode<synchronous>, transform_indices = @transform_2, window_bounds = array<i64: 1, 64>}, {transform_indices = @transform_3, window_bounds = array<i64: 32, 64>}]} {
    %c0 = arith.constant 0 : index
    %c0_0 = arith.constant 0 : index
    %0 = vector.load %arg1[%c0, %c0_0] : memref<32x512xbf16, #tpu.memory_space<vmem>>, vector<32x512xbf16>
    %c0_1 = arith.constant 0 : index
    %c0_2 = arith.constant 0 : index
    %1 = vector.load %arg2[%c0_1, %c0_2] : memref<512x64xbf16, #tpu.memory_space<vmem>>, vector<512x64xbf16>
    %cst = arith.constant dense<0.000000e+00> : vector<32x64xf32>
    %2 = tpu.matmul %0, %1, %cst {dimension_numbers = #tpu.dot_dimension_numbers<[1], [0], [0], [1], [0, 0, 1, 1], [], []>} : vector<32x512xbf16>, vector<512x64xbf16>, vector<32x64xf32> -> vector<32x64xf32>
    %c0_3 = arith.constant 0 : index
    %c0_4 = arith.constant 0 : index
    %3 = vector.load %arg3[%c0_3, %c0_4] : memref<1x64xf32, #tpu.memory_space<vmem>>, vector<1x64xf32>
    %4 = vector.broadcast %3 : vector<1x64xf32> to vector<32x64xf32>
    %5 = arith.addf %2, %4 : vector<32x64xf32>
    %cst_5 = arith.constant 0.000000e+00 : f32
    %6 = vector.broadcast %cst_5 : f32 to vector<32x64xf32>
    %7 = arith.cmpf oge, %5, %6 : vector<32x64xf32>
    %cst_6 = arith.constant 2.000000e-01 : f32
    %8 = vector.broadcast %cst_6 : f32 to vector<32x64xf32>
    %9 = arith.mulf %8, %5 : vector<32x64xf32>
    %10 = arith.select %7, %5, %9 : vector<32x64xi1>, vector<32x64xf32>
    %11 = arith.truncf %10 : vector<32x64xf32> to vector<32x64xbf16>
    %c0_7 = arith.constant 0 : index
    %c0_8 = arith.constant 0 : index
    %12 = vector.load %arg4[%c0_7, %c0_8] : memref<32x64xbf16, #tpu.memory_space<vmem>>, vector<32x64xbf16>
    tpu.vector_store %arg4[%c0_7, %c0_8], %11 {strides = array<i32>} : memref<32x64xbf16, #tpu.memory_space<vmem>>, vector<32x64xbf16>,
    return
  }
  func.func @transform_0(%arg0: i32) -> (i32, i32) {
    %c0_i32 = arith.constant 0 : i32
    %c0_i32_0 = arith.constant 0 : i32
    return %arg0, %c0_i32 : i32, i32
  }
  func.func @transform_1(%arg0: i32) -> (i32, i32) {
    %c0_i32 = arith.constant 0 : i32
    %c0_i32_0 = arith.constant 0 : i32
    %c0_i32_1 = arith.constant 0 : i32
    return %c0_i32, %c0_i32_0 : i32, i32
  }
  func.func @transform_2(%arg0: i32) -> (i32, i32) {
    %c0_i32 = arith.constant 0 : i32
    %c0_i32_0 = arith.constant 0 : i32
    %c0_i32_1 = arith.constant 0 : i32
    return %c0_i32, %c0_i32_0 : i32, i32
  }
  func.func @transform_3(%arg0: i32) -> (i32, i32) {
    %c0_i32 = arith.constant 0 : i32
    %c0_i32_0 = arith.constant 0 : i32
    return %arg0, %c0_i32 : i32, i32
  }
}

module attributes {stable_mosaic.version = 11 : i64} {
  func.func @_upsample2x_kernel(%arg0: i32, %arg1: memref<1x2x2x128xbf16, #tpu.memory_space<vmem>>, %arg2: memref<1x2x2x128xbf16, #tpu.memory_space<vmem>>, %arg3: memref<1x2x2x128xbf16, #tpu.memory_space<vmem>>, %arg4: memref<1x2x2x128xbf16, #tpu.memory_space<vmem>>, %arg5: memref<1x2x2x128xbf16, #tpu.memory_space<vmem>>) attributes {dimension_semantics = [#tpu.dimension_semantics<parallel>], iteration_bounds = array<i64: 2>, scalar_prefetch = 0 : i64, scratch_operands = 0 : i64, tpu.core_type = #tpu.core_type<tc>, window_params = [{transform_indices = @transform_0, window_bounds = array<i64: 1, 2, 2, 128>}, {transform_indices = @transform_1, window_bounds = array<i64: 1, 2, 2, 128>}, {transform_indices = @transform_2, window_bounds = array<i64: 1, 2, 2, 128>}, {transform_indices = @transform_3, window_bounds = array<i64: 1, 2, 2, 128>}, {transform_indices = @transform_4, window_bounds = array<i64: 1, 2, 2, 128>}]} {
    %c0 = arith.constant 0 : index
    %c0_0 = arith.constant 0 : index
    %c0_1 = arith.constant 0 : index
    %c0_2 = arith.constant 0 : index
    %0 = vector.load %arg1[%c0, %c0_0, %c0_1, %c0_2] : memref<1x2x2x128xbf16, #tpu.memory_space<vmem>>, vector<1x2x2x128xbf16>
    %1 = arith.extf %0 : vector<1x2x2x128xbf16> to vector<1x2x2x128xf32>
    %2 = vector.extract_strided_slice %1 {offsets = [0, 0, 0, 0], sizes = [1, 1, 2, 128], strides = [1, 1, 1, 1]} : vector<1x2x2x128xf32> to vector<1x1x2x128xf32>
    %3 = vector.extract_strided_slice %1 {offsets = [0, 0, 0, 0], sizes = [1, 1, 2, 128], strides = [1, 1, 1, 1]} : vector<1x2x2x128xf32> to vector<1x1x2x128xf32>
    %4 = tpu.concatenate %2, %3 in 1 : vector<1x1x2x128xf32>, vector<1x1x2x128xf32> -> vector<1x2x2x128xf32>
    %5 = vector.extract_strided_slice %1 {offsets = [0, 1, 0, 0], sizes = [1, 1, 2, 128], strides = [1, 1, 1, 1]} : vector<1x2x2x128xf32> to vector<1x1x2x128xf32>
    %6 = vector.extract_strided_slice %1 {offsets = [0, 1, 0, 0], sizes = [1, 1, 2, 128], strides = [1, 1, 1, 1]} : vector<1x2x2x128xf32> to vector<1x1x2x128xf32>
    %7 = tpu.concatenate %5, %6 in 1 : vector<1x1x2x128xf32>, vector<1x1x2x128xf32> -> vector<1x2x2x128xf32>
    %cst = arith.constant 2.500000e-01 : f32
    %8 = vector.broadcast %cst : f32 to vector<1x2x2x128xf32>
    %9 = arith.mulf %8, %4 : vector<1x2x2x128xf32>
    %cst_3 = arith.constant 7.500000e-01 : f32
    %10 = vector.broadcast %cst_3 : f32 to vector<1x2x2x128xf32>
    %11 = arith.mulf %10, %1 : vector<1x2x2x128xf32>
    %12 = arith.addf %9, %11 : vector<1x2x2x128xf32>
    %cst_4 = arith.constant 7.500000e-01 : f32
    %13 = vector.broadcast %cst_4 : f32 to vector<1x2x2x128xf32>
    %14 = arith.mulf %13, %1 : vector<1x2x2x128xf32>
    %cst_5 = arith.constant 2.500000e-01 : f32
    %15 = vector.broadcast %cst_5 : f32 to vector<1x2x2x128xf32>
    %16 = arith.mulf %15, %7 : vector<1x2x2x128xf32>
    %17 = arith.addf %14, %16 : vector<1x2x2x128xf32>
    %18 = vector.extract_strided_slice %12 {offsets = [0, 0, 0, 0], sizes = [1, 2, 1, 128], strides = [1, 1, 1, 1]} : vector<1x2x2x128xf32> to vector<1x2x1x128xf32>
    %19 = vector.extract_strided_slice %12 {offsets = [0, 0, 0, 0], sizes = [1, 2, 1, 128], strides = [1, 1, 1, 1]} : vector<1x2x2x128xf32> to vector<1x2x1x128xf32>
    %20 = tpu.concatenate %18, %19 in 2 : vector<1x2x1x128xf32>, vector<1x2x1x128xf32> -> vector<1x2x2x128xf32>
    %21 = vector.extract_strided_slice %12 {offsets = [0, 0, 1, 0], sizes = [1, 2, 1, 128], strides = [1, 1, 1, 1]} : vector<1x2x2x128xf32> to vector<1x2x1x128xf32>
    %22 = vector.extract_strided_slice %12 {offsets = [0, 0, 1, 0], sizes = [1, 2, 1, 128], strides = [1, 1, 1, 1]} : vector<1x2x2x128xf32> to vector<1x2x1x128xf32>
    %23 = tpu.concatenate %21, %22 in 2 : vector<1x2x1x128xf32>, vector<1x2x1x128xf32> -> vector<1x2x2x128xf32>
    %cst_6 = arith.constant 2.500000e-01 : f32
    %24 = vector.broadcast %cst_6 : f32 to vector<1x2x2x128xf32>
    %25 = arith.mulf %24, %20 : vector<1x2x2x128xf32>
    %cst_7 = arith.constant 7.500000e-01 : f32
    %26 = vector.broadcast %cst_7 : f32 to vector<1x2x2x128xf32>
    %27 = arith.mulf %26, %12 : vector<1x2x2x128xf32>
    %28 = arith.addf %25, %27 : vector<1x2x2x128xf32>
    %cst_8 = arith.constant 7.500000e-01 : f32
    %29 = vector.broadcast %cst_8 : f32 to vector<1x2x2x128xf32>
    %30 = arith.mulf %29, %12 : vector<1x2x2x128xf32>
    %cst_9 = arith.constant 2.500000e-01 : f32
    %31 = vector.broadcast %cst_9 : f32 to vector<1x2x2x128xf32>
    %32 = arith.mulf %31, %23 : vector<1x2x2x128xf32>
    %33 = arith.addf %30, %32 : vector<1x2x2x128xf32>
    %34 = vector.extract_strided_slice %17 {offsets = [0, 0, 0, 0], sizes = [1, 2, 1, 128], strides = [1, 1, 1, 1]} : vector<1x2x2x128xf32> to vector<1x2x1x128xf32>
    %35 = vector.extract_strided_slice %17 {offsets = [0, 0, 0, 0], sizes = [1, 2, 1, 128], strides = [1, 1, 1, 1]} : vector<1x2x2x128xf32> to vector<1x2x1x128xf32>
    %36 = tpu.concatenate %34, %35 in 2 : vector<1x2x1x128xf32>, vector<1x2x1x128xf32> -> vector<1x2x2x128xf32>
    %37 = vector.extract_strided_slice %17 {offsets = [0, 0, 1, 0], sizes = [1, 2, 1, 128], strides = [1, 1, 1, 1]} : vector<1x2x2x128xf32> to vector<1x2x1x128xf32>
    %38 = vector.extract_strided_slice %17 {offsets = [0, 0, 1, 0], sizes = [1, 2, 1, 128], strides = [1, 1, 1, 1]} : vector<1x2x2x128xf32> to vector<1x2x1x128xf32>
    %39 = tpu.concatenate %37, %38 in 2 : vector<1x2x1x128xf32>, vector<1x2x1x128xf32> -> vector<1x2x2x128xf32>
    %cst_10 = arith.constant 2.500000e-01 : f32
    %40 = vector.broadcast %cst_10 : f32 to vector<1x2x2x128xf32>
    %41 = arith.mulf %40, %36 : vector<1x2x2x128xf32>
    %cst_11 = arith.constant 7.500000e-01 : f32
    %42 = vector.broadcast %cst_11 : f32 to vector<1x2x2x128xf32>
    %43 = arith.mulf %42, %17 : vector<1x2x2x128xf32>
    %44 = arith.addf %41, %43 : vector<1x2x2x128xf32>
    %cst_12 = arith.constant 7.500000e-01 : f32
    %45 = vector.broadcast %cst_12 : f32 to vector<1x2x2x128xf32>
    %46 = arith.mulf %45, %17 : vector<1x2x2x128xf32>
    %cst_13 = arith.constant 2.500000e-01 : f32
    %47 = vector.broadcast %cst_13 : f32 to vector<1x2x2x128xf32>
    %48 = arith.mulf %47, %39 : vector<1x2x2x128xf32>
    %49 = arith.addf %46, %48 : vector<1x2x2x128xf32>
    %50 = arith.truncf %28 : vector<1x2x2x128xf32> to vector<1x2x2x128xbf16>
    %c0_14 = arith.constant 0 : index
    %c0_15 = arith.constant 0 : index
    %c0_16 = arith.constant 0 : index
    %c0_17 = arith.constant 0 : index
    %51 = vector.load %arg2[%c0_14, %c0_15, %c0_16, %c0_17] : memref<1x2x2x128xbf16, #tpu.memory_space<vmem>>, vector<1x2x2x128xbf16>
    tpu.vector_store %arg2[%c0_14, %c0_15, %c0_16, %c0_17], %50 {strides = array<i32>} : memref<1x2x2x128xbf16, #tpu.memory_space<vmem>>, vector<1x2x2x128xbf16>,
    %52 = arith.truncf %33 : vector<1x2x2x128xf32> to vector<1x2x2x128xbf16>
    %c0_18 = arith.constant 0 : index
    %c0_19 = arith.constant 0 : index
    %c0_20 = arith.constant 0 : index
    %c0_21 = arith.constant 0 : index
    %53 = vector.load %arg3[%c0_18, %c0_19, %c0_20, %c0_21] : memref<1x2x2x128xbf16, #tpu.memory_space<vmem>>, vector<1x2x2x128xbf16>
    tpu.vector_store %arg3[%c0_18, %c0_19, %c0_20, %c0_21], %52 {strides = array<i32>} : memref<1x2x2x128xbf16, #tpu.memory_space<vmem>>, vector<1x2x2x128xbf16>,
    %54 = arith.truncf %44 : vector<1x2x2x128xf32> to vector<1x2x2x128xbf16>
    %c0_22 = arith.constant 0 : index
    %c0_23 = arith.constant 0 : index
    %c0_24 = arith.constant 0 : index
    %c0_25 = arith.constant 0 : index
    %55 = vector.load %arg4[%c0_22, %c0_23, %c0_24, %c0_25] : memref<1x2x2x128xbf16, #tpu.memory_space<vmem>>, vector<1x2x2x128xbf16>
    tpu.vector_store %arg4[%c0_22, %c0_23, %c0_24, %c0_25], %54 {strides = array<i32>} : memref<1x2x2x128xbf16, #tpu.memory_space<vmem>>, vector<1x2x2x128xbf16>,
    %56 = arith.truncf %49 : vector<1x2x2x128xf32> to vector<1x2x2x128xbf16>
    %c0_26 = arith.constant 0 : index
    %c0_27 = arith.constant 0 : index
    %c0_28 = arith.constant 0 : index
    %c0_29 = arith.constant 0 : index
    %57 = vector.load %arg5[%c0_26, %c0_27, %c0_28, %c0_29] : memref<1x2x2x128xbf16, #tpu.memory_space<vmem>>, vector<1x2x2x128xbf16>
    tpu.vector_store %arg5[%c0_26, %c0_27, %c0_28, %c0_29], %56 {strides = array<i32>} : memref<1x2x2x128xbf16, #tpu.memory_space<vmem>>, vector<1x2x2x128xbf16>,
    return
  }
  func.func @transform_0(%arg0: i32) -> (i32, i32, i32, i32) {
    %c0_i32 = arith.constant 0 : i32
    %c0_i32_0 = arith.constant 0 : i32
    %c0_i32_1 = arith.constant 0 : i32
    %c0_i32_2 = arith.constant 0 : i32
    return %arg0, %c0_i32, %c0_i32_0, %c0_i32_1 : i32, i32, i32, i32
  }
  func.func @transform_1(%arg0: i32) -> (i32, i32, i32, i32) {
    %c0_i32 = arith.constant 0 : i32
    %c0_i32_0 = arith.constant 0 : i32
    %c0_i32_1 = arith.constant 0 : i32
    %c0_i32_2 = arith.constant 0 : i32
    return %arg0, %c0_i32, %c0_i32_0, %c0_i32_1 : i32, i32, i32, i32
  }
  func.func @transform_2(%arg0: i32) -> (i32, i32, i32, i32) {
    %c0_i32 = arith.constant 0 : i32
    %c0_i32_0 = arith.constant 0 : i32
    %c0_i32_1 = arith.constant 0 : i32
    %c0_i32_2 = arith.constant 0 : i32
    return %arg0, %c0_i32, %c0_i32_0, %c0_i32_1 : i32, i32, i32, i32
  }
  func.func @transform_3(%arg0: i32) -> (i32, i32, i32, i32) {
    %c0_i32 = arith.constant 0 : i32
    %c0_i32_0 = arith.constant 0 : i32
    %c0_i32_1 = arith.constant 0 : i32
    %c0_i32_2 = arith.constant 0 : i32
    return %arg0, %c0_i32, %c0_i32_0, %c0_i32_1 : i32, i32, i32, i32
  }
  func.func @transform_4(%arg0: i32) -> (i32, i32, i32, i32) {
    %c0_i32 = arith.constant 0 : i32
    %c0_i32_0 = arith.constant 0 : i32
    %c0_i32_1 = arith.constant 0 : i32
    %c0_i32_2 = arith.constant 0 : i32
    return %arg0, %c0_i32, %c0_i32_0, %c0_i32_1 : i32, i32, i32, i32
  }
}

module attributes {stable_mosaic.version = 11 : i64} {
  func.func @_conv_mm_kernel(%arg0: i32, %arg1: memref<8x1024xbf16, #tpu.memory_space<vmem>>, %arg2: memref<1024x128xbf16, #tpu.memory_space<vmem>>, %arg3: memref<1x128xf32, #tpu.memory_space<vmem>>, %arg4: memref<8x128xbf16, #tpu.memory_space<vmem>>) attributes {dimension_semantics = [#tpu.dimension_semantics<parallel>], iteration_bounds = array<i64: 1>, scalar_prefetch = 0 : i64, scratch_operands = 0 : i64, tpu.core_type = #tpu.core_type<tc>, window_params = [{transform_indices = @transform_0, window_bounds = array<i64: 8, 1024>}, {pipeline_mode = #tpu.pipeline_mode<synchronous>, transform_indices = @transform_1, window_bounds = array<i64: 1024, 128>}, {pipeline_mode = #tpu.pipeline_mode<synchronous>, transform_indices = @transform_2, window_bounds = array<i64: 1, 128>}, {transform_indices = @transform_3, window_bounds = array<i64: 8, 128>}]} {
    %c0 = arith.constant 0 : index
    %c0_0 = arith.constant 0 : index
    %0 = vector.load %arg1[%c0, %c0_0] : memref<8x1024xbf16, #tpu.memory_space<vmem>>, vector<8x1024xbf16>
    %c0_1 = arith.constant 0 : index
    %c0_2 = arith.constant 0 : index
    %1 = vector.load %arg2[%c0_1, %c0_2] : memref<1024x128xbf16, #tpu.memory_space<vmem>>, vector<1024x128xbf16>
    %cst = arith.constant dense<0.000000e+00> : vector<8x128xf32>
    %2 = tpu.matmul %0, %1, %cst {dimension_numbers = #tpu.dot_dimension_numbers<[1], [0], [0], [1], [0, 0, 1, 1], [], []>} : vector<8x1024xbf16>, vector<1024x128xbf16>, vector<8x128xf32> -> vector<8x128xf32>
    %c0_3 = arith.constant 0 : index
    %c0_4 = arith.constant 0 : index
    %3 = vector.load %arg3[%c0_3, %c0_4] : memref<1x128xf32, #tpu.memory_space<vmem>>, vector<1x128xf32>
    %4 = vector.broadcast %3 : vector<1x128xf32> to vector<8x128xf32>
    %5 = arith.addf %2, %4 : vector<8x128xf32>
    %cst_5 = arith.constant 0.000000e+00 : f32
    %6 = vector.broadcast %cst_5 : f32 to vector<8x128xf32>
    %7 = arith.cmpf oge, %5, %6 : vector<8x128xf32>
    %cst_6 = arith.constant 2.000000e-01 : f32
    %8 = vector.broadcast %cst_6 : f32 to vector<8x128xf32>
    %9 = arith.mulf %8, %5 : vector<8x128xf32>
    %10 = arith.select %7, %5, %9 : vector<8x128xi1>, vector<8x128xf32>
    %11 = arith.truncf %10 : vector<8x128xf32> to vector<8x128xbf16>
    %c0_7 = arith.constant 0 : index
    %c0_8 = arith.constant 0 : index
    %12 = vector.load %arg4[%c0_7, %c0_8] : memref<8x128xbf16, #tpu.memory_space<vmem>>, vector<8x128xbf16>
    tpu.vector_store %arg4[%c0_7, %c0_8], %11 {strides = array<i32>} : memref<8x128xbf16, #tpu.memory_space<vmem>>, vector<8x128xbf16>,
    return
  }
  func.func @transform_0(%arg0: i32) -> (i32, i32) {
    %c0_i32 = arith.constant 0 : i32
    %c0_i32_0 = arith.constant 0 : i32
    return %arg0, %c0_i32 : i32, i32
  }
  func.func @transform_1(%arg0: i32) -> (i32, i32) {
    %c0_i32 = arith.constant 0 : i32
    %c0_i32_0 = arith.constant 0 : i32
    %c0_i32_1 = arith.constant 0 : i32
    return %c0_i32, %c0_i32_0 : i32, i32
  }
  func.func @transform_2(%arg0: i32) -> (i32, i32) {
    %c0_i32 = arith.constant 0 : i32
    %c0_i32_0 = arith.constant 0 : i32
    %c0_i32_1 = arith.constant 0 : i32
    return %c0_i32, %c0_i32_0 : i32, i32
  }
  func.func @transform_3(%arg0: i32) -> (i32, i32) {
    %c0_i32 = arith.constant 0 : i32
    %c0_i32_0 = arith.constant 0 : i32
    return %arg0, %c0_i32 : i32, i32
  }
}

module attributes {stable_mosaic.version = 11 : i64} {
  func.func @_conv_mm_res_kernel(%arg0: i32, %arg1: memref<32x1152xbf16, #tpu.memory_space<vmem>>, %arg2: memref<1152x64xbf16, #tpu.memory_space<vmem>>, %arg3: memref<1x64xf32, #tpu.memory_space<vmem>>, %arg4: memref<32x64xbf16, #tpu.memory_space<vmem>>, %arg5: memref<32x64xbf16, #tpu.memory_space<vmem>>) attributes {dimension_semantics = [#tpu.dimension_semantics<parallel>], iteration_bounds = array<i64: 1>, scalar_prefetch = 0 : i64, scratch_operands = 0 : i64, tpu.core_type = #tpu.core_type<tc>, window_params = [{transform_indices = @transform_0, window_bounds = array<i64: 32, 1152>}, {pipeline_mode = #tpu.pipeline_mode<synchronous>, transform_indices = @transform_1, window_bounds = array<i64: 1152, 64>}, {pipeline_mode = #tpu.pipeline_mode<synchronous>, transform_indices = @transform_2, window_bounds = array<i64: 1, 64>}, {transform_indices = @transform_3, window_bounds = array<i64: 32, 64>}, {transform_indices = @transform_4, window_bounds = array<i64: 32, 64>}]} {
    %c0 = arith.constant 0 : index
    %c0_0 = arith.constant 0 : index
    %0 = vector.load %arg1[%c0, %c0_0] : memref<32x1152xbf16, #tpu.memory_space<vmem>>, vector<32x1152xbf16>
    %c0_1 = arith.constant 0 : index
    %c0_2 = arith.constant 0 : index
    %1 = vector.load %arg2[%c0_1, %c0_2] : memref<1152x64xbf16, #tpu.memory_space<vmem>>, vector<1152x64xbf16>
    %cst = arith.constant dense<0.000000e+00> : vector<32x64xf32>
    %2 = tpu.matmul %0, %1, %cst {dimension_numbers = #tpu.dot_dimension_numbers<[1], [0], [0], [1], [0, 0, 1, 1], [], []>} : vector<32x1152xbf16>, vector<1152x64xbf16>, vector<32x64xf32> -> vector<32x64xf32>
    %c0_3 = arith.constant 0 : index
    %c0_4 = arith.constant 0 : index
    %3 = vector.load %arg3[%c0_3, %c0_4] : memref<1x64xf32, #tpu.memory_space<vmem>>, vector<1x64xf32>
    %4 = vector.broadcast %3 : vector<1x64xf32> to vector<32x64xf32>
    %5 = arith.addf %2, %4 : vector<32x64xf32>
    %cst_5 = arith.constant 0.000000e+00 : f32
    %6 = vector.broadcast %cst_5 : f32 to vector<32x64xf32>
    %7 = arith.cmpf oge, %5, %6 : vector<32x64xf32>
    %cst_6 = arith.constant 2.000000e-01 : f32
    %8 = vector.broadcast %cst_6 : f32 to vector<32x64xf32>
    %9 = arith.mulf %8, %5 : vector<32x64xf32>
    %10 = arith.select %7, %5, %9 : vector<32x64xi1>, vector<32x64xf32>
    %c0_7 = arith.constant 0 : index
    %c0_8 = arith.constant 0 : index
    %11 = vector.load %arg4[%c0_7, %c0_8] : memref<32x64xbf16, #tpu.memory_space<vmem>>, vector<32x64xbf16>
    %12 = arith.extf %11 : vector<32x64xbf16> to vector<32x64xf32>
    %13 = arith.addf %10, %12 : vector<32x64xf32>
    %14 = arith.truncf %13 : vector<32x64xf32> to vector<32x64xbf16>
    %c0_9 = arith.constant 0 : index
    %c0_10 = arith.constant 0 : index
    %15 = vector.load %arg5[%c0_9, %c0_10] : memref<32x64xbf16, #tpu.memory_space<vmem>>, vector<32x64xbf16>
    tpu.vector_store %arg5[%c0_9, %c0_10], %14 {strides = array<i32>} : memref<32x64xbf16, #tpu.memory_space<vmem>>, vector<32x64xbf16>,
    return
  }
  func.func @transform_0(%arg0: i32) -> (i32, i32) {
    %c0_i32 = arith.constant 0 : i32
    %c0_i32_0 = arith.constant 0 : i32
    return %arg0, %c0_i32 : i32, i32
  }
  func.func @transform_1(%arg0: i32) -> (i32, i32) {
    %c0_i32 = arith.constant 0 : i32
    %c0_i32_0 = arith.constant 0 : i32
    %c0_i32_1 = arith.constant 0 : i32
    return %c0_i32, %c0_i32_0 : i32, i32
  }
  func.func @transform_2(%arg0: i32) -> (i32, i32) {
    %c0_i32 = arith.constant 0 : i32
    %c0_i32_0 = arith.constant 0 : i32
    %c0_i32_1 = arith.constant 0 : i32
    return %c0_i32, %c0_i32_0 : i32, i32
  }
  func.func @transform_3(%arg0: i32) -> (i32, i32) {
    %c0_i32 = arith.constant 0 : i32
    %c0_i32_0 = arith.constant 0 : i32
    return %arg0, %c0_i32 : i32, i32
  }
  func.func @transform_4(%arg0: i32) -> (i32, i32) {
    %c0_i32 = arith.constant 0 : i32
    %c0_i32_0 = arith.constant 0 : i32
    return %arg0, %c0_i32 : i32, i32
  }
}

module attributes {stable_mosaic.version = 11 : i64} {
  func.func @_upsample2x_kernel(%arg0: i32, %arg1: memref<1x4x4x64xbf16, #tpu.memory_space<vmem>>, %arg2: memref<1x4x4x64xbf16, #tpu.memory_space<vmem>>, %arg3: memref<1x4x4x64xbf16, #tpu.memory_space<vmem>>, %arg4: memref<1x4x4x64xbf16, #tpu.memory_space<vmem>>, %arg5: memref<1x4x4x64xbf16, #tpu.memory_space<vmem>>) attributes {dimension_semantics = [#tpu.dimension_semantics<parallel>], iteration_bounds = array<i64: 2>, scalar_prefetch = 0 : i64, scratch_operands = 0 : i64, tpu.core_type = #tpu.core_type<tc>, window_params = [{transform_indices = @transform_0, window_bounds = array<i64: 1, 4, 4, 64>}, {transform_indices = @transform_1, window_bounds = array<i64: 1, 4, 4, 64>}, {transform_indices = @transform_2, window_bounds = array<i64: 1, 4, 4, 64>}, {transform_indices = @transform_3, window_bounds = array<i64: 1, 4, 4, 64>}, {transform_indices = @transform_4, window_bounds = array<i64: 1, 4, 4, 64>}]} {
    %c0 = arith.constant 0 : index
    %c0_0 = arith.constant 0 : index
    %c0_1 = arith.constant 0 : index
    %c0_2 = arith.constant 0 : index
    %0 = vector.load %arg1[%c0, %c0_0, %c0_1, %c0_2] : memref<1x4x4x64xbf16, #tpu.memory_space<vmem>>, vector<1x4x4x64xbf16>
    %1 = arith.extf %0 : vector<1x4x4x64xbf16> to vector<1x4x4x64xf32>
    %2 = vector.extract_strided_slice %1 {offsets = [0, 0, 0, 0], sizes = [1, 1, 4, 64], strides = [1, 1, 1, 1]} : vector<1x4x4x64xf32> to vector<1x1x4x64xf32>
    %3 = vector.extract_strided_slice %1 {offsets = [0, 0, 0, 0], sizes = [1, 3, 4, 64], strides = [1, 1, 1, 1]} : vector<1x4x4x64xf32> to vector<1x3x4x64xf32>
    %4 = tpu.concatenate %2, %3 in 1 : vector<1x1x4x64xf32>, vector<1x3x4x64xf32> -> vector<1x4x4x64xf32>
    %5 = vector.extract_strided_slice %1 {offsets = [0, 1, 0, 0], sizes = [1, 3, 4, 64], strides = [1, 1, 1, 1]} : vector<1x4x4x64xf32> to vector<1x3x4x64xf32>
    %6 = vector.extract_strided_slice %1 {offsets = [0, 3, 0, 0], sizes = [1, 1, 4, 64], strides = [1, 1, 1, 1]} : vector<1x4x4x64xf32> to vector<1x1x4x64xf32>
    %7 = tpu.concatenate %5, %6 in 1 : vector<1x3x4x64xf32>, vector<1x1x4x64xf32> -> vector<1x4x4x64xf32>
    %cst = arith.constant 2.500000e-01 : f32
    %8 = vector.broadcast %cst : f32 to vector<1x4x4x64xf32>
    %9 = arith.mulf %8, %4 : vector<1x4x4x64xf32>
    %cst_3 = arith.constant 7.500000e-01 : f32
    %10 = vector.broadcast %cst_3 : f32 to vector<1x4x4x64xf32>
    %11 = arith.mulf %10, %1 : vector<1x4x4x64xf32>
    %12 = arith.addf %9, %11 : vector<1x4x4x64xf32>
    %cst_4 = arith.constant 7.500000e-01 : f32
    %13 = vector.broadcast %cst_4 : f32 to vector<1x4x4x64xf32>
    %14 = arith.mulf %13, %1 : vector<1x4x4x64xf32>
    %cst_5 = arith.constant 2.500000e-01 : f32
    %15 = vector.broadcast %cst_5 : f32 to vector<1x4x4x64xf32>
    %16 = arith.mulf %15, %7 : vector<1x4x4x64xf32>
    %17 = arith.addf %14, %16 : vector<1x4x4x64xf32>
    %18 = vector.extract_strided_slice %12 {offsets = [0, 0, 0, 0], sizes = [1, 4, 1, 64], strides = [1, 1, 1, 1]} : vector<1x4x4x64xf32> to vector<1x4x1x64xf32>
    %19 = vector.extract_strided_slice %12 {offsets = [0, 0, 0, 0], sizes = [1, 4, 3, 64], strides = [1, 1, 1, 1]} : vector<1x4x4x64xf32> to vector<1x4x3x64xf32>
    %20 = tpu.concatenate %18, %19 in 2 : vector<1x4x1x64xf32>, vector<1x4x3x64xf32> -> vector<1x4x4x64xf32>
    %21 = vector.extract_strided_slice %12 {offsets = [0, 0, 1, 0], sizes = [1, 4, 3, 64], strides = [1, 1, 1, 1]} : vector<1x4x4x64xf32> to vector<1x4x3x64xf32>
    %22 = vector.extract_strided_slice %12 {offsets = [0, 0, 3, 0], sizes = [1, 4, 1, 64], strides = [1, 1, 1, 1]} : vector<1x4x4x64xf32> to vector<1x4x1x64xf32>
    %23 = tpu.concatenate %21, %22 in 2 : vector<1x4x3x64xf32>, vector<1x4x1x64xf32> -> vector<1x4x4x64xf32>
    %cst_6 = arith.constant 2.500000e-01 : f32
    %24 = vector.broadcast %cst_6 : f32 to vector<1x4x4x64xf32>
    %25 = arith.mulf %24, %20 : vector<1x4x4x64xf32>
    %cst_7 = arith.constant 7.500000e-01 : f32
    %26 = vector.broadcast %cst_7 : f32 to vector<1x4x4x64xf32>
    %27 = arith.mulf %26, %12 : vector<1x4x4x64xf32>
    %28 = arith.addf %25, %27 : vector<1x4x4x64xf32>
    %cst_8 = arith.constant 7.500000e-01 : f32
    %29 = vector.broadcast %cst_8 : f32 to vector<1x4x4x64xf32>
    %30 = arith.mulf %29, %12 : vector<1x4x4x64xf32>
    %cst_9 = arith.constant 2.500000e-01 : f32
    %31 = vector.broadcast %cst_9 : f32 to vector<1x4x4x64xf32>
    %32 = arith.mulf %31, %23 : vector<1x4x4x64xf32>
    %33 = arith.addf %30, %32 : vector<1x4x4x64xf32>
    %34 = vector.extract_strided_slice %17 {offsets = [0, 0, 0, 0], sizes = [1, 4, 1, 64], strides = [1, 1, 1, 1]} : vector<1x4x4x64xf32> to vector<1x4x1x64xf32>
    %35 = vector.extract_strided_slice %17 {offsets = [0, 0, 0, 0], sizes = [1, 4, 3, 64], strides = [1, 1, 1, 1]} : vector<1x4x4x64xf32> to vector<1x4x3x64xf32>
    %36 = tpu.concatenate %34, %35 in 2 : vector<1x4x1x64xf32>, vector<1x4x3x64xf32> -> vector<1x4x4x64xf32>
    %37 = vector.extract_strided_slice %17 {offsets = [0, 0, 1, 0], sizes = [1, 4, 3, 64], strides = [1, 1, 1, 1]} : vector<1x4x4x64xf32> to vector<1x4x3x64xf32>
    %38 = vector.extract_strided_slice %17 {offsets = [0, 0, 3, 0], sizes = [1, 4, 1, 64], strides = [1, 1, 1, 1]} : vector<1x4x4x64xf32> to vector<1x4x1x64xf32>
    %39 = tpu.concatenate %37, %38 in 2 : vector<1x4x3x64xf32>, vector<1x4x1x64xf32> -> vector<1x4x4x64xf32>
    %cst_10 = arith.constant 2.500000e-01 : f32
    %40 = vector.broadcast %cst_10 : f32 to vector<1x4x4x64xf32>
    %41 = arith.mulf %40, %36 : vector<1x4x4x64xf32>
    %cst_11 = arith.constant 7.500000e-01 : f32
    %42 = vector.broadcast %cst_11 : f32 to vector<1x4x4x64xf32>
    %43 = arith.mulf %42, %17 : vector<1x4x4x64xf32>
    %44 = arith.addf %41, %43 : vector<1x4x4x64xf32>
    %cst_12 = arith.constant 7.500000e-01 : f32
    %45 = vector.broadcast %cst_12 : f32 to vector<1x4x4x64xf32>
    %46 = arith.mulf %45, %17 : vector<1x4x4x64xf32>
    %cst_13 = arith.constant 2.500000e-01 : f32
    %47 = vector.broadcast %cst_13 : f32 to vector<1x4x4x64xf32>
    %48 = arith.mulf %47, %39 : vector<1x4x4x64xf32>
    %49 = arith.addf %46, %48 : vector<1x4x4x64xf32>
    %50 = arith.truncf %28 : vector<1x4x4x64xf32> to vector<1x4x4x64xbf16>
    %c0_14 = arith.constant 0 : index
    %c0_15 = arith.constant 0 : index
    %c0_16 = arith.constant 0 : index
    %c0_17 = arith.constant 0 : index
    %51 = vector.load %arg2[%c0_14, %c0_15, %c0_16, %c0_17] : memref<1x4x4x64xbf16, #tpu.memory_space<vmem>>, vector<1x4x4x64xbf16>
    tpu.vector_store %arg2[%c0_14, %c0_15, %c0_16, %c0_17], %50 {strides = array<i32>} : memref<1x4x4x64xbf16, #tpu.memory_space<vmem>>, vector<1x4x4x64xbf16>,
    %52 = arith.truncf %33 : vector<1x4x4x64xf32> to vector<1x4x4x64xbf16>
    %c0_18 = arith.constant 0 : index
    %c0_19 = arith.constant 0 : index
    %c0_20 = arith.constant 0 : index
    %c0_21 = arith.constant 0 : index
    %53 = vector.load %arg3[%c0_18, %c0_19, %c0_20, %c0_21] : memref<1x4x4x64xbf16, #tpu.memory_space<vmem>>, vector<1x4x4x64xbf16>
    tpu.vector_store %arg3[%c0_18, %c0_19, %c0_20, %c0_21], %52 {strides = array<i32>} : memref<1x4x4x64xbf16, #tpu.memory_space<vmem>>, vector<1x4x4x64xbf16>,
    %54 = arith.truncf %44 : vector<1x4x4x64xf32> to vector<1x4x4x64xbf16>
    %c0_22 = arith.constant 0 : index
    %c0_23 = arith.constant 0 : index
    %c0_24 = arith.constant 0 : index
    %c0_25 = arith.constant 0 : index
    %55 = vector.load %arg4[%c0_22, %c0_23, %c0_24, %c0_25] : memref<1x4x4x64xbf16, #tpu.memory_space<vmem>>, vector<1x4x4x64xbf16>
    tpu.vector_store %arg4[%c0_22, %c0_23, %c0_24, %c0_25], %54 {strides = array<i32>} : memref<1x4x4x64xbf16, #tpu.memory_space<vmem>>, vector<1x4x4x64xbf16>,
    %56 = arith.truncf %49 : vector<1x4x4x64xf32> to vector<1x4x4x64xbf16>
    %c0_26 = arith.constant 0 : index
    %c0_27 = arith.constant 0 : index
    %c0_28 = arith.constant 0 : index
    %c0_29 = arith.constant 0 : index
    %57 = vector.load %arg5[%c0_26, %c0_27, %c0_28, %c0_29] : memref<1x4x4x64xbf16, #tpu.memory_space<vmem>>, vector<1x4x4x64xbf16>
    tpu.vector_store %arg5[%c0_26, %c0_27, %c0_28, %c0_29], %56 {strides = array<i32>} : memref<1x4x4x64xbf16, #tpu.memory_space<vmem>>, vector<1x4x4x64xbf16>,
    return
  }
  func.func @transform_0(%arg0: i32) -> (i32, i32, i32, i32) {
    %c0_i32 = arith.constant 0 : i32
    %c0_i32_0 = arith.constant 0 : i32
    %c0_i32_1 = arith.constant 0 : i32
    %c0_i32_2 = arith.constant 0 : i32
    return %arg0, %c0_i32, %c0_i32_0, %c0_i32_1 : i32, i32, i32, i32
  }
  func.func @transform_1(%arg0: i32) -> (i32, i32, i32, i32) {
    %c0_i32 = arith.constant 0 : i32
    %c0_i32_0 = arith.constant 0 : i32
    %c0_i32_1 = arith.constant 0 : i32
    %c0_i32_2 = arith.constant 0 : i32
    return %arg0, %c0_i32, %c0_i32_0, %c0_i32_1 : i32, i32, i32, i32
  }
  func.func @transform_2(%arg0: i32) -> (i32, i32, i32, i32) {
    %c0_i32 = arith.constant 0 : i32
    %c0_i32_0 = arith.constant 0 : i32
    %c0_i32_1 = arith.constant 0 : i32
    %c0_i32_2 = arith.constant 0 : i32
    return %arg0, %c0_i32, %c0_i32_0, %c0_i32_1 : i32, i32, i32, i32
  }
  func.func @transform_3(%arg0: i32) -> (i32, i32, i32, i32) {
    %c0_i32 = arith.constant 0 : i32
    %c0_i32_0 = arith.constant 0 : i32
    %c0_i32_1 = arith.constant 0 : i32
    %c0_i32_2 = arith.constant 0 : i32
    return %arg0, %c0_i32, %c0_i32_0, %c0_i32_1 : i32, i32, i32, i32
  }
  func.func @transform_4(%arg0: i32) -> (i32, i32, i32, i32) {
    %c0_i32 = arith.constant 0 : i32
    %c0_i32_0 = arith.constant 0 : i32
    %c0_i32_1 = arith.constant 0 : i32
    %c0_i32_2 = arith.constant 0 : i32
    return %arg0, %c0_i32, %c0_i32_0, %c0_i32_1 : i32, i32, i32, i32
  }
}

module attributes {stable_mosaic.version = 11 : i64} {
  func.func @_conv_mm_res_kernel(%arg0: i32, %arg1: memref<128x576xbf16, #tpu.memory_space<vmem>>, %arg2: memref<576x32xbf16, #tpu.memory_space<vmem>>, %arg3: memref<1x32xf32, #tpu.memory_space<vmem>>, %arg4: memref<128x32xbf16, #tpu.memory_space<vmem>>, %arg5: memref<128x32xbf16, #tpu.memory_space<vmem>>) attributes {dimension_semantics = [#tpu.dimension_semantics<parallel>], iteration_bounds = array<i64: 1>, scalar_prefetch = 0 : i64, scratch_operands = 0 : i64, tpu.core_type = #tpu.core_type<tc>, window_params = [{transform_indices = @transform_0, window_bounds = array<i64: 128, 576>}, {pipeline_mode = #tpu.pipeline_mode<synchronous>, transform_indices = @transform_1, window_bounds = array<i64: 576, 32>}, {pipeline_mode = #tpu.pipeline_mode<synchronous>, transform_indices = @transform_2, window_bounds = array<i64: 1, 32>}, {transform_indices = @transform_3, window_bounds = array<i64: 128, 32>}, {transform_indices = @transform_4, window_bounds = array<i64: 128, 32>}]} {
    %c0 = arith.constant 0 : index
    %c0_0 = arith.constant 0 : index
    %0 = vector.load %arg1[%c0, %c0_0] : memref<128x576xbf16, #tpu.memory_space<vmem>>, vector<128x576xbf16>
    %c0_1 = arith.constant 0 : index
    %c0_2 = arith.constant 0 : index
    %1 = vector.load %arg2[%c0_1, %c0_2] : memref<576x32xbf16, #tpu.memory_space<vmem>>, vector<576x32xbf16>
    %cst = arith.constant dense<0.000000e+00> : vector<128x32xf32>
    %2 = tpu.matmul %0, %1, %cst {dimension_numbers = #tpu.dot_dimension_numbers<[1], [0], [0], [1], [0, 0, 1, 1], [], []>} : vector<128x576xbf16>, vector<576x32xbf16>, vector<128x32xf32> -> vector<128x32xf32>
    %c0_3 = arith.constant 0 : index
    %c0_4 = arith.constant 0 : index
    %3 = vector.load %arg3[%c0_3, %c0_4] : memref<1x32xf32, #tpu.memory_space<vmem>>, vector<1x32xf32>
    %4 = vector.broadcast %3 : vector<1x32xf32> to vector<128x32xf32>
    %5 = arith.addf %2, %4 : vector<128x32xf32>
    %cst_5 = arith.constant 0.000000e+00 : f32
    %6 = vector.broadcast %cst_5 : f32 to vector<128x32xf32>
    %7 = arith.cmpf oge, %5, %6 : vector<128x32xf32>
    %cst_6 = arith.constant 2.000000e-01 : f32
    %8 = vector.broadcast %cst_6 : f32 to vector<128x32xf32>
    %9 = arith.mulf %8, %5 : vector<128x32xf32>
    %10 = arith.select %7, %5, %9 : vector<128x32xi1>, vector<128x32xf32>
    %c0_7 = arith.constant 0 : index
    %c0_8 = arith.constant 0 : index
    %11 = vector.load %arg4[%c0_7, %c0_8] : memref<128x32xbf16, #tpu.memory_space<vmem>>, vector<128x32xbf16>
    %12 = arith.extf %11 : vector<128x32xbf16> to vector<128x32xf32>
    %13 = arith.addf %10, %12 : vector<128x32xf32>
    %14 = arith.truncf %13 : vector<128x32xf32> to vector<128x32xbf16>
    %c0_9 = arith.constant 0 : index
    %c0_10 = arith.constant 0 : index
    %15 = vector.load %arg5[%c0_9, %c0_10] : memref<128x32xbf16, #tpu.memory_space<vmem>>, vector<128x32xbf16>
    tpu.vector_store %arg5[%c0_9, %c0_10], %14 {strides = array<i32>} : memref<128x32xbf16, #tpu.memory_space<vmem>>, vector<128x32xbf16>,
    return
  }
  func.func @transform_0(%arg0: i32) -> (i32, i32) {
    %c0_i32 = arith.constant 0 : i32
    %c0_i32_0 = arith.constant 0 : i32
    return %arg0, %c0_i32 : i32, i32
  }
  func.func @transform_1(%arg0: i32) -> (i32, i32) {
    %c0_i32 = arith.constant 0 : i32
    %c0_i32_0 = arith.constant 0 : i32
    %c0_i32_1 = arith.constant 0 : i32
    return %c0_i32, %c0_i32_0 : i32, i32
  }
  func.func @transform_2(%arg0: i32) -> (i32, i32) {
    %c0_i32 = arith.constant 0 : i32
    %c0_i32_0 = arith.constant 0 : i32
    %c0_i32_1 = arith.constant 0 : i32
    return %c0_i32, %c0_i32_0 : i32, i32
  }
  func.func @transform_3(%arg0: i32) -> (i32, i32) {
    %c0_i32 = arith.constant 0 : i32
    %c0_i32_0 = arith.constant 0 : i32
    return %arg0, %c0_i32 : i32, i32
  }
  func.func @transform_4(%arg0: i32) -> (i32, i32) {
    %c0_i32 = arith.constant 0 : i32
    %c0_i32_0 = arith.constant 0 : i32
    return %arg0, %c0_i32 : i32, i32
  }
}

module attributes {stable_mosaic.version = 11 : i64} {
  func.func @_upsample2x_kernel(%arg0: i32, %arg1: memref<1x8x8x32xbf16, #tpu.memory_space<vmem>>, %arg2: memref<1x8x8x32xbf16, #tpu.memory_space<vmem>>, %arg3: memref<1x8x8x32xbf16, #tpu.memory_space<vmem>>, %arg4: memref<1x8x8x32xbf16, #tpu.memory_space<vmem>>, %arg5: memref<1x8x8x32xbf16, #tpu.memory_space<vmem>>) attributes {dimension_semantics = [#tpu.dimension_semantics<parallel>], iteration_bounds = array<i64: 2>, scalar_prefetch = 0 : i64, scratch_operands = 0 : i64, tpu.core_type = #tpu.core_type<tc>, window_params = [{transform_indices = @transform_0, window_bounds = array<i64: 1, 8, 8, 32>}, {transform_indices = @transform_1, window_bounds = array<i64: 1, 8, 8, 32>}, {transform_indices = @transform_2, window_bounds = array<i64: 1, 8, 8, 32>}, {transform_indices = @transform_3, window_bounds = array<i64: 1, 8, 8, 32>}, {transform_indices = @transform_4, window_bounds = array<i64: 1, 8, 8, 32>}]} {
    %c0 = arith.constant 0 : index
    %c0_0 = arith.constant 0 : index
    %c0_1 = arith.constant 0 : index
    %c0_2 = arith.constant 0 : index
    %0 = vector.load %arg1[%c0, %c0_0, %c0_1, %c0_2] : memref<1x8x8x32xbf16, #tpu.memory_space<vmem>>, vector<1x8x8x32xbf16>
    %1 = arith.extf %0 : vector<1x8x8x32xbf16> to vector<1x8x8x32xf32>
    %2 = vector.extract_strided_slice %1 {offsets = [0, 0, 0, 0], sizes = [1, 1, 8, 32], strides = [1, 1, 1, 1]} : vector<1x8x8x32xf32> to vector<1x1x8x32xf32>
    %3 = vector.extract_strided_slice %1 {offsets = [0, 0, 0, 0], sizes = [1, 7, 8, 32], strides = [1, 1, 1, 1]} : vector<1x8x8x32xf32> to vector<1x7x8x32xf32>
    %4 = tpu.concatenate %2, %3 in 1 : vector<1x1x8x32xf32>, vector<1x7x8x32xf32> -> vector<1x8x8x32xf32>
    %5 = vector.extract_strided_slice %1 {offsets = [0, 1, 0, 0], sizes = [1, 7, 8, 32], strides = [1, 1, 1, 1]} : vector<1x8x8x32xf32> to vector<1x7x8x32xf32>
    %6 = vector.extract_strided_slice %1 {offsets = [0, 7, 0, 0], sizes = [1, 1, 8, 32], strides = [1, 1, 1, 1]} : vector<1x8x8x32xf32> to vector<1x1x8x32xf32>
    %7 = tpu.concatenate %5, %6 in 1 : vector<1x7x8x32xf32>, vector<1x1x8x32xf32> -> vector<1x8x8x32xf32>
    %cst = arith.constant 2.500000e-01 : f32
    %8 = vector.broadcast %cst : f32 to vector<1x8x8x32xf32>
    %9 = arith.mulf %8, %4 : vector<1x8x8x32xf32>
    %cst_3 = arith.constant 7.500000e-01 : f32
    %10 = vector.broadcast %cst_3 : f32 to vector<1x8x8x32xf32>
    %11 = arith.mulf %10, %1 : vector<1x8x8x32xf32>
    %12 = arith.addf %9, %11 : vector<1x8x8x32xf32>
    %cst_4 = arith.constant 7.500000e-01 : f32
    %13 = vector.broadcast %cst_4 : f32 to vector<1x8x8x32xf32>
    %14 = arith.mulf %13, %1 : vector<1x8x8x32xf32>
    %cst_5 = arith.constant 2.500000e-01 : f32
    %15 = vector.broadcast %cst_5 : f32 to vector<1x8x8x32xf32>
    %16 = arith.mulf %15, %7 : vector<1x8x8x32xf32>
    %17 = arith.addf %14, %16 : vector<1x8x8x32xf32>
    %18 = vector.extract_strided_slice %12 {offsets = [0, 0, 0, 0], sizes = [1, 8, 1, 32], strides = [1, 1, 1, 1]} : vector<1x8x8x32xf32> to vector<1x8x1x32xf32>
    %19 = vector.extract_strided_slice %12 {offsets = [0, 0, 0, 0], sizes = [1, 8, 7, 32], strides = [1, 1, 1, 1]} : vector<1x8x8x32xf32> to vector<1x8x7x32xf32>
    %20 = tpu.concatenate %18, %19 in 2 : vector<1x8x1x32xf32>, vector<1x8x7x32xf32> -> vector<1x8x8x32xf32>
    %21 = vector.extract_strided_slice %12 {offsets = [0, 0, 1, 0], sizes = [1, 8, 7, 32], strides = [1, 1, 1, 1]} : vector<1x8x8x32xf32> to vector<1x8x7x32xf32>
    %22 = vector.extract_strided_slice %12 {offsets = [0, 0, 7, 0], sizes = [1, 8, 1, 32], strides = [1, 1, 1, 1]} : vector<1x8x8x32xf32> to vector<1x8x1x32xf32>
    %23 = tpu.concatenate %21, %22 in 2 : vector<1x8x7x32xf32>, vector<1x8x1x32xf32> -> vector<1x8x8x32xf32>
    %cst_6 = arith.constant 2.500000e-01 : f32
    %24 = vector.broadcast %cst_6 : f32 to vector<1x8x8x32xf32>
    %25 = arith.mulf %24, %20 : vector<1x8x8x32xf32>
    %cst_7 = arith.constant 7.500000e-01 : f32
    %26 = vector.broadcast %cst_7 : f32 to vector<1x8x8x32xf32>
    %27 = arith.mulf %26, %12 : vector<1x8x8x32xf32>
    %28 = arith.addf %25, %27 : vector<1x8x8x32xf32>
    %cst_8 = arith.constant 7.500000e-01 : f32
    %29 = vector.broadcast %cst_8 : f32 to vector<1x8x8x32xf32>
    %30 = arith.mulf %29, %12 : vector<1x8x8x32xf32>
    %cst_9 = arith.constant 2.500000e-01 : f32
    %31 = vector.broadcast %cst_9 : f32 to vector<1x8x8x32xf32>
    %32 = arith.mulf %31, %23 : vector<1x8x8x32xf32>
    %33 = arith.addf %30, %32 : vector<1x8x8x32xf32>
    %34 = vector.extract_strided_slice %17 {offsets = [0, 0, 0, 0], sizes = [1, 8, 1, 32], strides = [1, 1, 1, 1]} : vector<1x8x8x32xf32> to vector<1x8x1x32xf32>
    %35 = vector.extract_strided_slice %17 {offsets = [0, 0, 0, 0], sizes = [1, 8, 7, 32], strides = [1, 1, 1, 1]} : vector<1x8x8x32xf32> to vector<1x8x7x32xf32>
    %36 = tpu.concatenate %34, %35 in 2 : vector<1x8x1x32xf32>, vector<1x8x7x32xf32> -> vector<1x8x8x32xf32>
    %37 = vector.extract_strided_slice %17 {offsets = [0, 0, 1, 0], sizes = [1, 8, 7, 32], strides = [1, 1, 1, 1]} : vector<1x8x8x32xf32> to vector<1x8x7x32xf32>
    %38 = vector.extract_strided_slice %17 {offsets = [0, 0, 7, 0], sizes = [1, 8, 1, 32], strides = [1, 1, 1, 1]} : vector<1x8x8x32xf32> to vector<1x8x1x32xf32>
    %39 = tpu.concatenate %37, %38 in 2 : vector<1x8x7x32xf32>, vector<1x8x1x32xf32> -> vector<1x8x8x32xf32>
    %cst_10 = arith.constant 2.500000e-01 : f32
    %40 = vector.broadcast %cst_10 : f32 to vector<1x8x8x32xf32>
    %41 = arith.mulf %40, %36 : vector<1x8x8x32xf32>
    %cst_11 = arith.constant 7.500000e-01 : f32
    %42 = vector.broadcast %cst_11 : f32 to vector<1x8x8x32xf32>
    %43 = arith.mulf %42, %17 : vector<1x8x8x32xf32>
    %44 = arith.addf %41, %43 : vector<1x8x8x32xf32>
    %cst_12 = arith.constant 7.500000e-01 : f32
    %45 = vector.broadcast %cst_12 : f32 to vector<1x8x8x32xf32>
    %46 = arith.mulf %45, %17 : vector<1x8x8x32xf32>
    %cst_13 = arith.constant 2.500000e-01 : f32
    %47 = vector.broadcast %cst_13 : f32 to vector<1x8x8x32xf32>
    %48 = arith.mulf %47, %39 : vector<1x8x8x32xf32>
    %49 = arith.addf %46, %48 : vector<1x8x8x32xf32>
    %50 = arith.truncf %28 : vector<1x8x8x32xf32> to vector<1x8x8x32xbf16>
    %c0_14 = arith.constant 0 : index
    %c0_15 = arith.constant 0 : index
    %c0_16 = arith.constant 0 : index
    %c0_17 = arith.constant 0 : index
    %51 = vector.load %arg2[%c0_14, %c0_15, %c0_16, %c0_17] : memref<1x8x8x32xbf16, #tpu.memory_space<vmem>>, vector<1x8x8x32xbf16>
    tpu.vector_store %arg2[%c0_14, %c0_15, %c0_16, %c0_17], %50 {strides = array<i32>} : memref<1x8x8x32xbf16, #tpu.memory_space<vmem>>, vector<1x8x8x32xbf16>,
    %52 = arith.truncf %33 : vector<1x8x8x32xf32> to vector<1x8x8x32xbf16>
    %c0_18 = arith.constant 0 : index
    %c0_19 = arith.constant 0 : index
    %c0_20 = arith.constant 0 : index
    %c0_21 = arith.constant 0 : index
    %53 = vector.load %arg3[%c0_18, %c0_19, %c0_20, %c0_21] : memref<1x8x8x32xbf16, #tpu.memory_space<vmem>>, vector<1x8x8x32xbf16>
    tpu.vector_store %arg3[%c0_18, %c0_19, %c0_20, %c0_21], %52 {strides = array<i32>} : memref<1x8x8x32xbf16, #tpu.memory_space<vmem>>, vector<1x8x8x32xbf16>,
    %54 = arith.truncf %44 : vector<1x8x8x32xf32> to vector<1x8x8x32xbf16>
    %c0_22 = arith.constant 0 : index
    %c0_23 = arith.constant 0 : index
    %c0_24 = arith.constant 0 : index
    %c0_25 = arith.constant 0 : index
    %55 = vector.load %arg4[%c0_22, %c0_23, %c0_24, %c0_25] : memref<1x8x8x32xbf16, #tpu.memory_space<vmem>>, vector<1x8x8x32xbf16>
    tpu.vector_store %arg4[%c0_22, %c0_23, %c0_24, %c0_25], %54 {strides = array<i32>} : memref<1x8x8x32xbf16, #tpu.memory_space<vmem>>, vector<1x8x8x32xbf16>,
    %56 = arith.truncf %49 : vector<1x8x8x32xf32> to vector<1x8x8x32xbf16>
    %c0_26 = arith.constant 0 : index
    %c0_27 = arith.constant 0 : index
    %c0_28 = arith.constant 0 : index
    %c0_29 = arith.constant 0 : index
    %57 = vector.load %arg5[%c0_26, %c0_27, %c0_28, %c0_29] : memref<1x8x8x32xbf16, #tpu.memory_space<vmem>>, vector<1x8x8x32xbf16>
    tpu.vector_store %arg5[%c0_26, %c0_27, %c0_28, %c0_29], %56 {strides = array<i32>} : memref<1x8x8x32xbf16, #tpu.memory_space<vmem>>, vector<1x8x8x32xbf16>,
    return
  }
  func.func @transform_0(%arg0: i32) -> (i32, i32, i32, i32) {
    %c0_i32 = arith.constant 0 : i32
    %c0_i32_0 = arith.constant 0 : i32
    %c0_i32_1 = arith.constant 0 : i32
    %c0_i32_2 = arith.constant 0 : i32
    return %arg0, %c0_i32, %c0_i32_0, %c0_i32_1 : i32, i32, i32, i32
  }
  func.func @transform_1(%arg0: i32) -> (i32, i32, i32, i32) {
    %c0_i32 = arith.constant 0 : i32
    %c0_i32_0 = arith.constant 0 : i32
    %c0_i32_1 = arith.constant 0 : i32
    %c0_i32_2 = arith.constant 0 : i32
    return %arg0, %c0_i32, %c0_i32_0, %c0_i32_1 : i32, i32, i32, i32
  }
  func.func @transform_2(%arg0: i32) -> (i32, i32, i32, i32) {
    %c0_i32 = arith.constant 0 : i32
    %c0_i32_0 = arith.constant 0 : i32
    %c0_i32_1 = arith.constant 0 : i32
    %c0_i32_2 = arith.constant 0 : i32
    return %arg0, %c0_i32, %c0_i32_0, %c0_i32_1 : i32, i32, i32, i32
  }
  func.func @transform_3(%arg0: i32) -> (i32, i32, i32, i32) {
    %c0_i32 = arith.constant 0 : i32
    %c0_i32_0 = arith.constant 0 : i32
    %c0_i32_1 = arith.constant 0 : i32
    %c0_i32_2 = arith.constant 0 : i32
    return %arg0, %c0_i32, %c0_i32_0, %c0_i32_1 : i32, i32, i32, i32
  }
  func.func @transform_4(%arg0: i32) -> (i32, i32, i32, i32) {
    %c0_i32 = arith.constant 0 : i32
    %c0_i32_0 = arith.constant 0 : i32
    %c0_i32_1 = arith.constant 0 : i32
    %c0_i32_2 = arith.constant 0 : i32
    return %arg0, %c0_i32, %c0_i32_0, %c0_i32_1 : i32, i32, i32, i32
  }
}

module attributes {stable_mosaic.version = 11 : i64} {
  func.func @_conv_mm_res_kernel(%arg0: i32, %arg1: memref<128x288xbf16, #tpu.memory_space<vmem>>, %arg2: memref<288x16xbf16, #tpu.memory_space<vmem>>, %arg3: memref<1x16xf32, #tpu.memory_space<vmem>>, %arg4: memref<128x16xbf16, #tpu.memory_space<vmem>>, %arg5: memref<128x16xbf16, #tpu.memory_space<vmem>>) attributes {dimension_semantics = [#tpu.dimension_semantics<parallel>], iteration_bounds = array<i64: 4>, scalar_prefetch = 0 : i64, scratch_operands = 0 : i64, tpu.core_type = #tpu.core_type<tc>, window_params = [{transform_indices = @transform_0, window_bounds = array<i64: 128, 288>}, {pipeline_mode = #tpu.pipeline_mode<synchronous>, transform_indices = @transform_1, window_bounds = array<i64: 288, 16>}, {pipeline_mode = #tpu.pipeline_mode<synchronous>, transform_indices = @transform_2, window_bounds = array<i64: 1, 16>}, {transform_indices = @transform_3, window_bounds = array<i64: 128, 16>}, {transform_indices = @transform_4, window_bounds = array<i64: 128, 16>}]} {
    %c0 = arith.constant 0 : index
    %c0_0 = arith.constant 0 : index
    %0 = vector.load %arg1[%c0, %c0_0] : memref<128x288xbf16, #tpu.memory_space<vmem>>, vector<128x288xbf16>
    %c0_1 = arith.constant 0 : index
    %c0_2 = arith.constant 0 : index
    %1 = vector.load %arg2[%c0_1, %c0_2] : memref<288x16xbf16, #tpu.memory_space<vmem>>, vector<288x16xbf16>
    %cst = arith.constant dense<0.000000e+00> : vector<128x16xf32>
    %2 = tpu.matmul %0, %1, %cst {dimension_numbers = #tpu.dot_dimension_numbers<[1], [0], [0], [1], [0, 0, 1, 1], [], []>} : vector<128x288xbf16>, vector<288x16xbf16>, vector<128x16xf32> -> vector<128x16xf32>
    %c0_3 = arith.constant 0 : index
    %c0_4 = arith.constant 0 : index
    %3 = vector.load %arg3[%c0_3, %c0_4] : memref<1x16xf32, #tpu.memory_space<vmem>>, vector<1x16xf32>
    %4 = vector.broadcast %3 : vector<1x16xf32> to vector<128x16xf32>
    %5 = arith.addf %2, %4 : vector<128x16xf32>
    %cst_5 = arith.constant 0.000000e+00 : f32
    %6 = vector.broadcast %cst_5 : f32 to vector<128x16xf32>
    %7 = arith.cmpf oge, %5, %6 : vector<128x16xf32>
    %cst_6 = arith.constant 2.000000e-01 : f32
    %8 = vector.broadcast %cst_6 : f32 to vector<128x16xf32>
    %9 = arith.mulf %8, %5 : vector<128x16xf32>
    %10 = arith.select %7, %5, %9 : vector<128x16xi1>, vector<128x16xf32>
    %c0_7 = arith.constant 0 : index
    %c0_8 = arith.constant 0 : index
    %11 = vector.load %arg4[%c0_7, %c0_8] : memref<128x16xbf16, #tpu.memory_space<vmem>>, vector<128x16xbf16>
    %12 = arith.extf %11 : vector<128x16xbf16> to vector<128x16xf32>
    %13 = arith.addf %10, %12 : vector<128x16xf32>
    %14 = arith.truncf %13 : vector<128x16xf32> to vector<128x16xbf16>
    %c0_9 = arith.constant 0 : index
    %c0_10 = arith.constant 0 : index
    %15 = vector.load %arg5[%c0_9, %c0_10] : memref<128x16xbf16, #tpu.memory_space<vmem>>, vector<128x16xbf16>
    tpu.vector_store %arg5[%c0_9, %c0_10], %14 {strides = array<i32>} : memref<128x16xbf16, #tpu.memory_space<vmem>>, vector<128x16xbf16>,
    return
  }
  func.func @transform_0(%arg0: i32) -> (i32, i32) {
    %c0_i32 = arith.constant 0 : i32
    %c0_i32_0 = arith.constant 0 : i32
    return %arg0, %c0_i32 : i32, i32
  }
  func.func @transform_1(%arg0: i32) -> (i32, i32) {
    %c0_i32 = arith.constant 0 : i32
    %c0_i32_0 = arith.constant 0 : i32
    %c0_i32_1 = arith.constant 0 : i32
    return %c0_i32, %c0_i32_0 : i32, i32
  }
  func.func @transform_2(%arg0: i32) -> (i32, i32) {
    %c0_i32 = arith.constant 0 : i32
    %c0_i32_0 = arith.constant 0 : i32
    %c0_i32_1 = arith.constant 0 : i32
    return %c0_i32, %c0_i32_0 : i32, i32
  }
  func.func @transform_3(%arg0: i32) -> (i32, i32) {
    %c0_i32 = arith.constant 0 : i32
    %c0_i32_0 = arith.constant 0 : i32
    return %arg0, %c0_i32 : i32, i32
  }
  func.func @transform_4(%arg0: i32) -> (i32, i32) {
    %c0_i32 = arith.constant 0 : i32
    %c0_i32_0 = arith.constant 0 : i32
    return %arg0, %c0_i32 : i32, i32
  }
}

module attributes {stable_mosaic.version = 11 : i64} {
  func.func @_conv_mm_kernel(%arg0: i32, %arg1: memref<128x144xbf16, #tpu.memory_space<vmem>>, %arg2: memref<144x16xbf16, #tpu.memory_space<vmem>>, %arg3: memref<1x16xf32, #tpu.memory_space<vmem>>, %arg4: memref<128x16xbf16, #tpu.memory_space<vmem>>) attributes {dimension_semantics = [#tpu.dimension_semantics<parallel>], iteration_bounds = array<i64: 4>, scalar_prefetch = 0 : i64, scratch_operands = 0 : i64, tpu.core_type = #tpu.core_type<tc>, window_params = [{transform_indices = @transform_0, window_bounds = array<i64: 128, 144>}, {pipeline_mode = #tpu.pipeline_mode<synchronous>, transform_indices = @transform_1, window_bounds = array<i64: 144, 16>}, {pipeline_mode = #tpu.pipeline_mode<synchronous>, transform_indices = @transform_2, window_bounds = array<i64: 1, 16>}, {transform_indices = @transform_3, window_bounds = array<i64: 128, 16>}]} {
    %c0 = arith.constant 0 : index
    %c0_0 = arith.constant 0 : index
    %0 = vector.load %arg1[%c0, %c0_0] : memref<128x144xbf16, #tpu.memory_space<vmem>>, vector<128x144xbf16>
    %c0_1 = arith.constant 0 : index
    %c0_2 = arith.constant 0 : index
    %1 = vector.load %arg2[%c0_1, %c0_2] : memref<144x16xbf16, #tpu.memory_space<vmem>>, vector<144x16xbf16>
    %cst = arith.constant dense<0.000000e+00> : vector<128x16xf32>
    %2 = tpu.matmul %0, %1, %cst {dimension_numbers = #tpu.dot_dimension_numbers<[1], [0], [0], [1], [0, 0, 1, 1], [], []>} : vector<128x144xbf16>, vector<144x16xbf16>, vector<128x16xf32> -> vector<128x16xf32>
    %c0_3 = arith.constant 0 : index
    %c0_4 = arith.constant 0 : index
    %3 = vector.load %arg3[%c0_3, %c0_4] : memref<1x16xf32, #tpu.memory_space<vmem>>, vector<1x16xf32>
    %4 = vector.broadcast %3 : vector<1x16xf32> to vector<128x16xf32>
    %5 = arith.addf %2, %4 : vector<128x16xf32>
    %cst_5 = arith.constant 0.000000e+00 : f32
    %6 = vector.broadcast %cst_5 : f32 to vector<128x16xf32>
    %7 = arith.cmpf oge, %5, %6 : vector<128x16xf32>
    %cst_6 = arith.constant 2.000000e-01 : f32
    %8 = vector.broadcast %cst_6 : f32 to vector<128x16xf32>
    %9 = arith.mulf %8, %5 : vector<128x16xf32>
    %10 = arith.select %7, %5, %9 : vector<128x16xi1>, vector<128x16xf32>
    %11 = arith.truncf %10 : vector<128x16xf32> to vector<128x16xbf16>
    %c0_7 = arith.constant 0 : index
    %c0_8 = arith.constant 0 : index
    %12 = vector.load %arg4[%c0_7, %c0_8] : memref<128x16xbf16, #tpu.memory_space<vmem>>, vector<128x16xbf16>
    tpu.vector_store %arg4[%c0_7, %c0_8], %11 {strides = array<i32>} : memref<128x16xbf16, #tpu.memory_space<vmem>>, vector<128x16xbf16>,
    return
  }
  func.func @transform_0(%arg0: i32) -> (i32, i32) {
    %c0_i32 = arith.constant 0 : i32
    %c0_i32_0 = arith.constant 0 : i32
    return %arg0, %c0_i32 : i32, i32
  }
  func.func @transform_1(%arg0: i32) -> (i32, i32) {
    %c0_i32 = arith.constant 0 : i32
    %c0_i32_0 = arith.constant 0 : i32
    %c0_i32_1 = arith.constant 0 : i32
    return %c0_i32, %c0_i32_0 : i32, i32
  }
  func.func @transform_2(%arg0: i32) -> (i32, i32) {
    %c0_i32 = arith.constant 0 : i32
    %c0_i32_0 = arith.constant 0 : i32
    %c0_i32_1 = arith.constant 0 : i32
    return %c0_i32, %c0_i32_0 : i32, i32
  }
  func.func @transform_3(%arg0: i32) -> (i32, i32) {
    %c0_i32 = arith.constant 0 : i32
    %c0_i32_0 = arith.constant 0 : i32
    return %arg0, %c0_i32 : i32, i32
  }
}

module attributes {stable_mosaic.version = 11 : i64} {
  func.func @_conv_mm_kernel(%arg0: i32, %arg1: memref<128x144xbf16, #tpu.memory_space<vmem>>, %arg2: memref<144x1xbf16, #tpu.memory_space<vmem>>, %arg3: memref<1x1xf32, #tpu.memory_space<vmem>>, %arg4: memref<128x1xf32, #tpu.memory_space<vmem>>) attributes {dimension_semantics = [#tpu.dimension_semantics<parallel>], iteration_bounds = array<i64: 4>, scalar_prefetch = 0 : i64, scratch_operands = 0 : i64, tpu.core_type = #tpu.core_type<tc>, window_params = [{transform_indices = @transform_0, window_bounds = array<i64: 128, 144>}, {pipeline_mode = #tpu.pipeline_mode<synchronous>, transform_indices = @transform_1, window_bounds = array<i64: 144, 1>}, {pipeline_mode = #tpu.pipeline_mode<synchronous>, transform_indices = @transform_2, window_bounds = array<i64: 1, 1>}, {transform_indices = @transform_3, window_bounds = array<i64: 128, 1>}]} {
    %c0 = arith.constant 0 : index
    %c0_0 = arith.constant 0 : index
    %0 = vector.load %arg1[%c0, %c0_0] : memref<128x144xbf16, #tpu.memory_space<vmem>>, vector<128x144xbf16>
    %c0_1 = arith.constant 0 : index
    %c0_2 = arith.constant 0 : index
    %1 = vector.load %arg2[%c0_1, %c0_2] : memref<144x1xbf16, #tpu.memory_space<vmem>>, vector<144x1xbf16>
    %cst = arith.constant dense<0.000000e+00> : vector<128x1xf32>
    %2 = tpu.matmul %0, %1, %cst {dimension_numbers = #tpu.dot_dimension_numbers<[1], [0], [0], [1], [0, 0, 1, 1], [], []>} : vector<128x144xbf16>, vector<144x1xbf16>, vector<128x1xf32> -> vector<128x1xf32>
    %c0_3 = arith.constant 0 : index
    %c0_4 = arith.constant 0 : index
    %3 = vector.load %arg3[%c0_3, %c0_4] : memref<1x1xf32, #tpu.memory_space<vmem>>, vector<1x1xf32>
    %4 = vector.broadcast %3 : vector<1x1xf32> to vector<128x1xf32>
    %5 = arith.addf %2, %4 : vector<128x1xf32>
    %c0_5 = arith.constant 0 : index
    %c0_6 = arith.constant 0 : index
    %6 = vector.load %arg4[%c0_5, %c0_6] : memref<128x1xf32, #tpu.memory_space<vmem>>, vector<128x1xf32>
    tpu.vector_store %arg4[%c0_5, %c0_6], %5 {strides = array<i32>} : memref<128x1xf32, #tpu.memory_space<vmem>>, vector<128x1xf32>,
    return
  }
  func.func @transform_0(%arg0: i32) -> (i32, i32) {
    %c0_i32 = arith.constant 0 : i32
    %c0_i32_0 = arith.constant 0 : i32
    return %arg0, %c0_i32 : i32, i32
  }
  func.func @transform_1(%arg0: i32) -> (i32, i32) {
    %c0_i32 = arith.constant 0 : i32
    %c0_i32_0 = arith.constant 0 : i32
    %c0_i32_1 = arith.constant 0 : i32
    return %c0_i32, %c0_i32_0 : i32, i32
  }
  func.func @transform_2(%arg0: i32) -> (i32, i32) {
    %c0_i32 = arith.constant 0 : i32
    %c0_i32_0 = arith.constant 0 : i32
    %c0_i32_1 = arith.constant 0 : i32
    return %c0_i32, %c0_i32_0 : i32, i32
  }
  func.func @transform_3(%arg0: i32) -> (i32, i32) {
    %c0_i32 = arith.constant 0 : i32
    %c0_i32_0 = arith.constant 0 : i32
    return %arg0, %c0_i32 : i32, i32
  }
}

</mosaic_0001>

<bundles_post_ra>
// kernel: unet_discriminator_sn.13
= control target key start
LH: loop header
LB: loop body
LE: loop exit
PB: predicated region body
PF: predicated region fallthrough
CT: control target
= control target key end

     0   :  { %s582_s12 = smov 0   ;;  %s678_s0 = inlined_call_operand.vmem [shape: bf16[512,27], index: 0, kind: input, shape index: {}]   ;;  %s679_s1 = inlined_call_operand.vmem [shape: bf16[27,16], index: 1, kind: input, shape index: {}]   ;;  %s680_s2 = inlined_call_operand.vmem [shape: f32[1,16], index: 2, kind: input, shape index: {}]   ;;  %s681_s3 = inlined_call_operand.vmem [shape: bf16[512,16], index: 3, kind: output, shape index: {}]  }
   0x1 LB: > { %s468_s13 = sadd.s32 4294967295, %s559_s12   ;;  %p472_p0 = scmp.ge.s32.totalorder %s559_s12, 1  ;;  %s559_s12 = sphi %s582_s12, %s13_s12  }
   0x2   : > { %p138_p1 = scmp.lt.s32.totalorder %s559_s12, 5 }
   0x4   : > { %p139_p2 = pnand %p472_p0, %p138_p1 }
   0x5   : > { %s473_s18 = sshll.u32 (!%p139_p2), %s468_s13, 4 }
   0x6   : > { %142 = sbr.rel (%p139_p2) target bundleno = 190 (0xbe), region = 32  ;;  %p163_p3 = scmp.lt.s32.totalorder (!%p139_p2), %s473_s18, 63 }
   0xb   : > { %v515_v0 = vld [vmem:[%s679_s1 + $0x8] sm:$0xf]  ;;  %v536_v1 = vld [vmem:[%s679_s1 + $0x8] sm:$0x30]  ;;  %vm275_vm0 = vcmask 1044480   ;;  %vm276_vm1 = vcmask 1045504  }
   0xc   : > { %v516_v2 = vor.u32 %v536_v1, %v515_v0  ;;  %v561_v3 = vmov 65535   ;;  %s683_s18 = smov (!%p163_p3, %s473_s18), 63  ;;  %v535_v7 = vld [vmem:[%s679_s1] sm:$0xff]  ;;  %vm250_vm2 = vcmask 220160   ;;  %vm395_vm5 = vcmask 125952  }
   0xd   : > { %v277_v4 = vsel %vm275_vm0, 4294967295, %v561_v3  ;;  %s474_s21 = sshll.u32 %s683_s18, 2  ;;  %v618_v16 = vld [vmem:[%s680_s2] ss:$0 sm:$0xff] }
   0xe   : > { %v278_v5 = vsel %vm276_vm1, %v277_v4, 0  ;;  %s166_s24 = scalar_lea.vmem %s678_s0, %s474_s21  ;;  %s627_s29 = scalar_lea.vmem %s681_s3, %s474_s21 }
   0xf   : > { %v280_v6 = vand.u32 %v516_v2, %v278_v5  ;;  %v527_v8 = vld [vmem:[%s166_s24] sm:$0xff]  ;;  %v529_v9 = vld [vmem:[%s166_s24 + $0x10] sm:$0xff]  ;;  %v528_v12 = vld [vmem:[%s166_s24 + $0x8] sm:$0xff] }
  0x10   : > { %v531_v10 = vld [vmem:[%s166_s24 + $0x20] sm:$0xff]  ;;  %v533_v11 = vld [vmem:[%s166_s24 + $0x30] sm:$0xff]  ;;  %v530_v13 = vld [vmem:[%s166_s24 + $0x18] sm:$0xff] }
  0x11   : > { %288 = vmatpush.bf16.msra.mxu0 %v280_v6  ;;  %537 = vmatpush.bf16.msra.mxu1 %v280_v6  ;;  %v532_v14 = vld [vmem:[%s166_s24 + $0x28] sm:$0xff]  ;;  %v534_v15 = vld [vmem:[%s166_s24 + $0x38] sm:$0xff] }
  0x12   : > { %538 = vmatpush.bf16.msra.mxu2 %v280_v6  ;;  %539 = vmatpush.bf16.msra.mxu3 %v280_v6 }
  0x15   : > { %289 = vmatpush.bf16.msra.mxu0 %v535_v7  ;;  %540 = vmatpush.bf16.msra.mxu1 %v535_v7 }
  0x16   : > { %541 = vmatpush.bf16.msra.mxu2 %v535_v7  ;;  %542 = vmatpush.bf16.msra.mxu3 %v535_v7 }
  0x18   : > { %517 = vmatmul.msk.bf16.vlgmr.msra.gmra.mxu0 %vm250_vm2, %v527_v8  ;;  %519 = vmatmul.msk.bf16.vlgmr.msra.gmra.mxu1 %vm250_vm2, %v529_v9 }
  0x19   : > { %521 = vmatmul.msk.bf16.vlgmr.msra.gmra.mxu2 %vm250_vm2, %v531_v10  ;;  %523 = vmatmul.msk.bf16.vlgmr.msra.gmra.mxu3 %vm250_vm2, %v533_v11 }
  0x28   : > { %518 = vmatmul.msk.bf16.gmra.mxu0 %vm250_vm2, %v528_v12  ;;  %520 = vmatmul.msk.bf16.gmra.mxu1 %vm250_vm2, %v530_v13 }
  0x29   : > { %522 = vmatmul.msk.bf16.gmra.mxu2 %vm250_vm2, %v532_v14  ;;  %524 = vmatmul.msk.bf16.gmra.mxu3 %vm250_vm2, %v534_v15 }
  0x95   : > { %v291_v17 = vpop.f32.mrf.mxu0  ;;  %v301_v18 = vpop.f32.mrf.mxu1 }
  0x96   : > { %v292_v19 = vadd.f32 %v618_v16, %v291_v17  ;;  %v302_v20 = vadd.f32 %v618_v16, %v301_v18 }
  0x98   : > { %vm331_vm3 = vcmp.ge.f32.partialorder %v292_v19, 0.0  ;;  %v347_v21 = vmul.f32 0.2, %v292_v19  ;;  %vm335_vm4 = vcmp.ge.f32.partialorder %v302_v20, 0.0  ;;  %v351_v22 = vmul.f32 0.2, %v302_v20 }
  0x9a   : > { %v363_v23 = vsel %vm331_vm3, %v292_v19, %v347_v21  ;;  %v367_v24 = vsel %vm335_vm4, %v302_v20, %v351_v22 }
  0x9b   : > { %v379_v25 = vpack.c.bf16 %v363_v23, %v363_v23  ;;  %v383_v26 = vpack.c.bf16 %v367_v24, %v367_v24 }
  0x9c   : > { %v311_v27 = vpop.f32.mrf.mxu2  ;;  %v321_v28 = vpop.f32.mrf.mxu3 }
  0x9d   : > { %396 = vst.msk [vmem:[%s627_s29] sm:$0xf] %vm395_vm5, %v379_v25  ;;  %v312_v29 = vadd.f32 %v618_v16, %v311_v27  ;;  %v322_v30 = vadd.f32 %v618_v16, %v321_v28  ;;  %v293_v31 = vpop.f32.mrf.mxu0  ;;  %v303_v32 = vpop.f32.mrf.mxu1 }
  0x9e   : > { %400 = vst.msk [vmem:[%s627_s29 + $0x10] sm:$0xf] %vm395_vm5, %v383_v26  ;;  %v294_v33 = vadd.f32 %v618_v16, %v293_v31  ;;  %v304_v34 = vadd.f32 %v618_v16, %v303_v32 }
  0x9f   : > { %vm339_vm6 = vcmp.ge.f32.partialorder %v312_v29, 0.0  ;;  %v355_v35 = vmul.f32 0.2, %v312_v29  ;;  %vm343_vm7 = vcmp.ge.f32.partialorder %v322_v30, 0.0  ;;  %v359_v36 = vmul.f32 0.2, %v322_v30 }
  0xa0   : > { %vm332_vm8 = vcmp.ge.f32.partialorder %v294_v33, 0.0  ;;  %v348_v37 = vmul.f32 0.2, %v294_v33  ;;  %vm336_vm9 = vcmp.ge.f32.partialorder %v304_v34, 0.0  ;;  %v352_v38 = vmul.f32 0.2, %v304_v34 }
  0xa1   : > { %v371_v39 = vsel %vm339_vm6, %v312_v29, %v355_v35  ;;  %v375_v40 = vsel %vm343_vm7, %v322_v30, %v359_v36 }
  0xa2   : > { %v387_v41 = vpack.c.bf16 %v371_v39, %v371_v39  ;;  %v391_v42 = vpack.c.bf16 %v375_v40, %v375_v40  ;;  %v364_v43 = vsel %vm332_vm8, %v294_v33, %v348_v37  ;;  %v368_v44 = vsel %vm336_vm9, %v304_v34, %v352_v38 }
  0xa3   : > { %v380_v45 = vpack.c.bf16 %v364_v43, %v364_v43  ;;  %v384_v46 = vpack.c.bf16 %v368_v44, %v368_v44 }
  0xa4   : > { %404 = vst.msk [vmem:[%s627_s29 + $0x20] sm:$0xf] %vm395_vm5, %v387_v41  ;;  %v313_v47 = vpop.f32.mrf.mxu2  ;;  %v323_v48 = vpop.f32.mrf.mxu3 }
  0xa5   : > { %408 = vst.msk [vmem:[%s627_s29 + $0x30] sm:$0xf] %vm395_vm5, %v391_v42  ;;  %v314_v49 = vadd.f32 %v618_v16, %v313_v47  ;;  %v324_v50 = vadd.f32 %v618_v16, %v323_v48  ;;  %v296_v51 = vpop.f32.mrf.mxu0  ;;  %v306_v52 = vpop.f32.mrf.mxu1 }
  0xa6   : > { %397 = vst.msk [vmem:[%s627_s29 + $0x4] sm:$0xf] %vm395_vm5, %v380_v45  ;;  %v297_v53 = vadd.f32 %v618_v16, %v296_v51  ;;  %v307_v54 = vadd.f32 %v618_v16, %v306_v52 }
  0xa7   : > { %401 = vst.msk [vmem:[%s627_s29 + $0x14] sm:$0xf] %vm395_vm5, %v384_v46  ;;  %vm340_vm10 = vcmp.ge.f32.partialorder %v314_v49, 0.0  ;;  %v356_v55 = vmul.f32 0.2, %v314_v49  ;;  %vm344_vm11 = vcmp.ge.f32.partialorder %v324_v50, 0.0 }
  0xa8   : > { %v360_v56 = vmul.f32 0.2, %v324_v50  ;;  %vm333_vm12 = vcmp.ge.f32.partialorder %v297_v53, 0.0  ;;  %v349_v57 = vmul.f32 0.2, %v297_v53  ;;  %vm337_vm13 = vcmp.ge.f32.partialorder %v307_v54, 0.0 }
  0xa9   : > { %v372_v58 = vsel %vm340_vm10, %v314_v49, %v356_v55  ;;  %v353_v59 = vmul.f32 0.2, %v307_v54 }
  0xaa   : > { %v388_v60 = vpack.c.bf16 %v372_v58, %v372_v58  ;;  %v376_v61 = vsel %vm344_vm11, %v324_v50, %v360_v56  ;;  %v365_v62 = vsel %vm333_vm12, %v297_v53, %v349_v57 }
  0xab   : > { %v392_v63 = vpack.c.bf16 %v376_v61, %v376_v61  ;;  %v381_v0 = vpack.c.bf16 %v365_v62, %v365_v62  ;;  %v369_v1 = vsel %vm337_vm13, %v307_v54, %v353_v59 }
  0xac   : > { %405 = vst.msk [vmem:[%s627_s29 + $0x24] sm:$0xf] %vm395_vm5, %v388_v60  ;;  %v385_v2 = vpack.c.bf16 %v369_v1, %v369_v1  ;;  %v316_v3 = vpop.f32.mrf.mxu2  ;;  %v326_v4 = vpop.f32.mrf.mxu3 }
  0xad   : > { %409 = vst.msk [vmem:[%s627_s29 + $0x34] sm:$0xf] %vm395_vm5, %v392_v63  ;;  %v317_v5 = vadd.f32 %v618_v16, %v316_v3  ;;  %v327_v6 = vadd.f32 %v618_v16, %v326_v4  ;;  %v298_v7 = vpop.f32.mrf.mxu0  ;;  %v308_v8 = vpop.f32.mrf.mxu1 }
  0xae   : > { %398 = vst.msk [vmem:[%s627_s29 + $0x8] sm:$0xf] %vm395_vm5, %v381_v0  ;;  %v299_v9 = vadd.f32 %v618_v16, %v298_v7  ;;  %v309_v10 = vadd.f32 %v618_v16, %v308_v8 }
  0xaf   : > { %402 = vst.msk [vmem:[%s627_s29 + $0x18] sm:$0xf] %vm395_vm5, %v385_v2  ;;  %vm341_vm14 = vcmp.ge.f32.partialorder %v317_v5, 0.0  ;;  %v357_v11 = vmul.f32 0.2, %v317_v5  ;;  %vm345_vm15 = vcmp.ge.f32.partialorder %v327_v6, 0.0 }
  0xb0   : > { %v361_v12 = vmul.f32 0.2, %v327_v6  ;;  %vm334_vm0 = vcmp.ge.f32.partialorder %v299_v9, 0.0  ;;  %v350_v13 = vmul.f32 0.2, %v299_v9  ;;  %vm338_vm1 = vcmp.ge.f32.partialorder %v309_v10, 0.0 }
  0xb1   : > { %v373_v14 = vsel %vm341_vm14, %v317_v5, %v357_v11  ;;  %v354_v15 = vmul.f32 0.2, %v309_v10 }
  0xb2   : > { %v389_v17 = vpack.c.bf16 %v373_v14, %v373_v14  ;;  %v377_v18 = vsel %vm345_vm15, %v327_v6, %v361_v12  ;;  %v366_v19 = vsel %vm334_vm0, %v299_v9, %v350_v13 }
  0xb3   : > { %v393_v20 = vpack.c.bf16 %v377_v18, %v377_v18  ;;  %v382_v21 = vpack.c.bf16 %v366_v19, %v366_v19  ;;  %v370_v22 = vsel %vm338_vm1, %v309_v10, %v354_v15 }
  0xb4   : > { %406 = vst.msk [vmem:[%s627_s29 + $0x28] sm:$0xf] %vm395_vm5, %v389_v17  ;;  %v386_v23 = vpack.c.bf16 %v370_v22, %v370_v22  ;;  %v318_v24 = vpop.f32.mrf.mxu2  ;;  %v328_v25 = vpop.f32.mrf.mxu3 }
  0xb5   : > { %410 = vst.msk [vmem:[%s627_s29 + $0x38] sm:$0xf] %vm395_vm5, %v393_v20  ;;  %v319_v26 = vadd.f32 %v618_v16, %v318_v24  ;;  %v329_v27 = vadd.f32 %v618_v16, %v328_v25 }
  0xb6   : > { %399 = vst.msk [vmem:[%s627_s29 + $0xc] sm:$0xf] %vm395_vm5, %v382_v21 }
  0xb7   : > { %403 = vst.msk [vmem:[%s627_s29 + $0x1c] sm:$0xf] %vm395_vm5, %v386_v23  ;;  %vm342_vm2 = vcmp.ge.f32.partialorder %v319_v26, 0.0  ;;  %v358_v28 = vmul.f32 0.2, %v319_v26  ;;  %vm346_vm3 = vcmp.ge.f32.partialorder %v329_v27, 0.0 }
  0xb8   : > { %v362_v29 = vmul.f32 0.2, %v329_v27 }
  0xb9   : > { %v374_v30 = vsel %vm342_vm2, %v319_v26, %v358_v28 }
  0xba   : > { %v390_v31 = vpack.c.bf16 %v374_v30, %v374_v30  ;;  %v378_v32 = vsel %vm346_vm3, %v329_v27, %v362_v29 }
  0xbb   : > { %v394_v33 = vpack.c.bf16 %v378_v32, %v378_v32 }
  0xbc   : > { %407 = vst.msk [vmem:[%s627_s29 + $0x2c] sm:$0xf] %vm395_vm5, %v390_v31 }
  0xbd   : > { %411 = vst.msk [vmem:[%s627_s29 + $0x3c] sm:$0xf] %vm395_vm5, %v394_v33 }
  0xbe PF: > { %s13_s12 = sadd.s32 1, %s559_s12  }
  0xbf   : > { %p10_p4 = scmp.ge.s32.totalorder %s13_s12, 6  }
  0xc1   :  { %12 = sbr.rel (!%p10_p4) target bundleno = 1 (0x1), region = 62 }

// kernel: unet_discriminator_sn.14
= control target key start
LH: loop header
LB: loop body
LE: loop exit
PB: predicated region body
PF: predicated region fallthrough
CT: control target
= control target key end

     0   :  { %vm404_vm1 = vcmask 257024   ;;  %s851_s1 = inlined_call_operand.vmem [shape: bf16[256,32], index: 1, kind: input, shape index: {}]   ;;  %s852_s2 = inlined_call_operand.vmem [shape: f32[1,32], index: 2, kind: input, shape index: {}]   ;;  %s853_s0 = inlined_call_operand.vmem [shape: bf16[128,256], index: 0, kind: input, shape index: {}]   ;;  %s854_s3 = inlined_call_operand.vmem [shape: bf16[128,32], index: 3, kind: output, shape index: {}]  }
   0x1   :  { %v576_v0 = vld [vmem:[%s851_s1 + $0x38] sm:$0xff]  ;;  %v575_v2 = vld [vmem:[%s851_s1 + $0x30] sm:$0xff]  ;;  %v574_v4 = vld [vmem:[%s851_s1 + $0x28] sm:$0xff] }
   0x2   :  { %v584_v1 = vld [vmem:[%s851_s1 + $0x78] sm:$0xff]  ;;  %242 = vmatpush.bf16.msra.mxu0 %v576_v0  ;;  %585 = vmatpush.bf16.msra.mxu2 %v576_v0  ;;  %v583_v3 = vld [vmem:[%s851_s1 + $0x70] sm:$0xff]  ;;  %v582_v5 = vld [vmem:[%s851_s1 + $0x68] sm:$0xff] }
   0x3   :  { %291 = vmatpush.bf16.msra.mxu1 %v584_v1  ;;  %593 = vmatpush.bf16.msra.mxu3 %v584_v1  ;;  %v573_v6 = vld [vmem:[%s851_s1 + $0x20] sm:$0xff]  ;;  %v572_v8 = vld [vmem:[%s851_s1 + $0x18] sm:$0xff]  ;;  %v571_v10 = vld [vmem:[%s851_s1 + $0x10] sm:$0xff] }
   0x4   :  { %v581_v7 = vld [vmem:[%s851_s1 + $0x60] sm:$0xff]  ;;  %v580_v9 = vld [vmem:[%s851_s1 + $0x58] sm:$0xff]  ;;  %v579_v11 = vld [vmem:[%s851_s1 + $0x50] sm:$0xff] }
   0x5   :  { %v570_v12 = vld [vmem:[%s851_s1 + $0x8] sm:$0xff]  ;;  %v569_v14 = vld [vmem:[%s851_s1] sm:$0xff]  ;;  %v435_v28 = vld [vmem:[%s853_s0 + $0x10] sm:$0xf] }
   0x6   :  { %243 = vmatpush.bf16.msra.mxu0 %v575_v2  ;;  %586 = vmatpush.bf16.msra.mxu2 %v575_v2  ;;  %v578_v13 = vld [vmem:[%s851_s1 + $0x48] sm:$0xff]  ;;  %v577_v15 = vld [vmem:[%s851_s1 + $0x40] sm:$0xff]  ;;  %v556_v29 = vld [vmem:[%s853_s0 + $0x14] sm:$0xf0] }
   0x7   :  { %292 = vmatpush.bf16.msra.mxu1 %v583_v3  ;;  %594 = vmatpush.bf16.msra.mxu3 %v583_v3  ;;  %v427_v16 = vld [vmem:[%s853_s0] sm:$0xf]  ;;  %v554_v17 = vld [vmem:[%s853_s0 + $0x4] sm:$0xf0]  ;;  %v553_v20 = vld [vmem:[%s853_s0 + $0x4] sm:$0xf]  ;;  %v436_v36 = vor.u32 %v556_v29, %v435_v28 }
   0x8   :  { %v459_v18 = vld [vmem:[%s853_s0 + $0x40] sm:$0xf]  ;;  %v562_v19 = vld [vmem:[%s853_s0 + $0x44] sm:$0xf0]  ;;  %v429_v21 = vld [vmem:[%s853_s0 + $0x8] sm:$0xf0]  ;;  %v428_v24 = vor.u32 %v554_v17, %v427_v16 }
   0x9   :  { %v561_v22 = vld [vmem:[%s853_s0 + $0x44] sm:$0xf]  ;;  %v461_v23 = vld [vmem:[%s853_s0 + $0x48] sm:$0xf0]  ;;  %v460_v25 = vor.u32 %v562_v19, %v459_v18  ;;  %v432_v26 = vor.u32 %v553_v20, %v429_v21  ;;  %v467_v30 = vld [vmem:[%s853_s0 + $0x50] sm:$0xf] }
   0xa   :  { %244 = vmatpush.bf16.msra.mxu0 %v574_v4  ;;  %587 = vmatpush.bf16.msra.mxu2 %v574_v4  ;;  %v464_v27 = vor.u32 %v561_v22, %v461_v23  ;;  %v564_v31 = vld [vmem:[%s853_s0 + $0x54] sm:$0xf0]  ;;  %v555_v32 = vld [vmem:[%s853_s0 + $0x14] sm:$0xf]  ;;  %v437_v33 = vld [vmem:[%s853_s0 + $0x18] sm:$0xf0] }
   0xb   :  { %293 = vmatpush.bf16.msra.mxu1 %v582_v5  ;;  %595 = vmatpush.bf16.msra.mxu3 %v582_v5  ;;  %v563_v34 = vld [vmem:[%s853_s0 + $0x54] sm:$0xf]  ;;  %v469_v35 = vld [vmem:[%s853_s0 + $0x58] sm:$0xf0]  ;;  %v468_v37 = vor.u32 %v564_v31, %v467_v30  ;;  %v440_v38 = vor.u32 %v555_v32, %v437_v33  ;;  %v443_v40 = vld [vmem:[%s853_s0 + $0x20] sm:$0xf] }
   0xc   :  { %v472_v39 = vor.u32 %v563_v34, %v469_v35  ;;  %v558_v41 = vld [vmem:[%s853_s0 + $0x24] sm:$0xf0]  ;;  %v475_v42 = vld [vmem:[%s853_s0 + $0x60] sm:$0xf]  ;;  %v557_v44 = vld [vmem:[%s853_s0 + $0x24] sm:$0xf] }
   0xd   :  { %v566_v43 = vld [vmem:[%s853_s0 + $0x64] sm:$0xf0]  ;;  %v445_v45 = vld [vmem:[%s853_s0 + $0x28] sm:$0xf0]  ;;  %v565_v46 = vld [vmem:[%s853_s0 + $0x64] sm:$0xf]  ;;  %v444_v48 = vor.u32 %v558_v41, %v443_v40 }
   0xe   :  { %245 = vmatpush.bf16.msra.mxu0 %v573_v6  ;;  %588 = vmatpush.bf16.msra.mxu2 %v573_v6  ;;  %v477_v47 = vld [vmem:[%s853_s0 + $0x68] sm:$0xf0]  ;;  %v476_v49 = vor.u32 %v566_v43, %v475_v42  ;;  %v448_v50 = vor.u32 %v557_v44, %v445_v45  ;;  %v451_v52 = vld [vmem:[%s853_s0 + $0x30] sm:$0xf]  ;;  %v560_v53 = vld [vmem:[%s853_s0 + $0x34] sm:$0xf0] }
   0xf   :  { %294 = vmatpush.bf16.msra.mxu1 %v581_v7  ;;  %596 = vmatpush.bf16.msra.mxu3 %v581_v7  ;;  %v480_v51 = vor.u32 %v565_v46, %v477_v47  ;;  %v483_v54 = vld [vmem:[%s853_s0 + $0x70] sm:$0xf]  ;;  %v568_v55 = vld [vmem:[%s853_s0 + $0x74] sm:$0xf0]  ;;  %v559_v56 = vld [vmem:[%s853_s0 + $0x34] sm:$0xf]  ;;  %v452_v60 = vor.u32 %v560_v53, %v451_v52 }
  0x10   :  { %v453_v57 = vld [vmem:[%s853_s0 + $0x38] sm:$0xf0]  ;;  %v567_v58 = vld [vmem:[%s853_s0 + $0x74] sm:$0xf]  ;;  %v484_v61 = vor.u32 %v568_v55, %v483_v54  ;;  %v769_v0 = vld [vmem:[%s852_s2] ss:$0 sm:$0xff] }
  0x11   :  { %v485_v59 = vld [vmem:[%s853_s0 + $0x78] sm:$0xf0]  ;;  %v456_v62 = vor.u32 %v559_v56, %v453_v57 }
  0x12   :  { %246 = vmatpush.bf16.msra.mxu0 %v572_v8  ;;  %589 = vmatpush.bf16.msra.mxu2 %v572_v8  ;;  %v488_v63 = vor.u32 %v567_v58, %v485_v59 }
  0x13   :  { %295 = vmatpush.bf16.msra.mxu1 %v580_v9  ;;  %597 = vmatpush.bf16.msra.mxu3 %v580_v9 }
  0x16   :  { %247 = vmatpush.bf16.msra.mxu0 %v571_v10  ;;  %590 = vmatpush.bf16.msra.mxu2 %v571_v10 }
  0x17   :  { %296 = vmatpush.bf16.msra.mxu1 %v579_v11  ;;  %598 = vmatpush.bf16.msra.mxu3 %v579_v11 }
  0x1a   :  { %248 = vmatpush.bf16.msra.mxu0 %v570_v12  ;;  %591 = vmatpush.bf16.msra.mxu2 %v570_v12 }
  0x1b   :  { %297 = vmatpush.bf16.msra.mxu1 %v578_v13  ;;  %599 = vmatpush.bf16.msra.mxu3 %v578_v13 }
  0x1e   :  { %249 = vmatpush.bf16.msra.mxu0 %v569_v14  ;;  %592 = vmatpush.bf16.msra.mxu2 %v569_v14 }
  0x1f   :  { %298 = vmatpush.bf16.msra.mxu1 %v577_v15  ;;  %600 = vmatpush.bf16.msra.mxu3 %v577_v15 }
  0x21   :  { %250 = vmatmul.bf16.vlgmr.msra.gmra.mxu0 %v428_v24  ;;  %270 = vmatmul.bf16.vlgmr.msra.gmra.mxu2 %v460_v25 }
  0x22   :  { %299 = vmatmul.bf16.vlgmr.msra.gmra.mxu1 %v432_v26  ;;  %319 = vmatmul.bf16.vlgmr.msra.gmra.mxu3 %v464_v27 }
  0x31   :  { %255 = vmatmul.bf16.gmra.mxu0 %v436_v36  ;;  %275 = vmatmul.bf16.gmra.mxu2 %v468_v37 }
  0x32   :  { %304 = vmatmul.bf16.gmra.mxu1 %v440_v38  ;;  %324 = vmatmul.bf16.gmra.mxu3 %v472_v39 }
  0x41   :  { %260 = vmatmul.bf16.gmra.mxu0 %v444_v48  ;;  %280 = vmatmul.bf16.gmra.mxu2 %v476_v49 }
  0x42   :  { %309 = vmatmul.bf16.gmra.mxu1 %v448_v50  ;;  %329 = vmatmul.bf16.gmra.mxu3 %v480_v51 }
  0x51   :  { %265 = vmatmul.bf16.gmra.mxu0 %v452_v60  ;;  %285 = vmatmul.bf16.gmra.mxu2 %v484_v61 }
  0x52   :  { %314 = vmatmul.bf16.gmra.mxu1 %v456_v62  ;;  %334 = vmatmul.bf16.gmra.mxu3 %v488_v63 }
  0x9e   :  { %v251_v1 = vpop.f32.mrf.mxu0 }
  0x9f   :  { %v252_v2 = vadd.f32 %v769_v0, %v251_v1  ;;  %v300_v3 = vpop.f32.mrf.mxu1 }
  0xa1   :  { %v301_v4 = vadd.f32 %v300_v3, %v252_v2 }
  0xa3   :  { %vm340_vm0 = vcmp.ge.f32.partialorder %v301_v4, 0.0  ;;  %v356_v5 = vmul.f32 0.2, %v301_v4 }
  0xa4   :  { %v271_v6 = vpop.f32.mrf.mxu2 }
  0xa5   :  { %v372_v7 = vsel %vm340_vm0, %v301_v4, %v356_v5  ;;  %v272_v8 = vadd.f32 %v769_v0, %v271_v6  ;;  %v320_v9 = vpop.f32.mrf.mxu3 }
  0xa6   :  { %v388_v10 = vpack.c.bf16 %v372_v7, %v372_v7  ;;  %v253_v11 = vpop.f32.mrf.mxu0 }
  0xa7   :  { %v321_v12 = vadd.f32 %v320_v9, %v272_v8  ;;  %v254_v13 = vadd.f32 %v769_v0, %v253_v11  ;;  %v302_v14 = vpop.f32.mrf.mxu1 }
  0xa8   :  { %405 = vst.msk [vmem:[%s854_s3] sm:$0xf] %vm404_vm1, %v388_v10 }
  0xa9   :  { %vm348_vm2 = vcmp.ge.f32.partialorder %v321_v12, 0.0  ;;  %v364_v15 = vmul.f32 0.2, %v321_v12  ;;  %v303_v16 = vadd.f32 %v302_v14, %v254_v13 }
  0xab   :  { %v380_v17 = vsel %vm348_vm2, %v321_v12, %v364_v15  ;;  %vm341_vm3 = vcmp.ge.f32.partialorder %v303_v16, 0.0  ;;  %v357_v18 = vmul.f32 0.2, %v303_v16 }
  0xac   :  { %v396_v19 = vpack.c.bf16 %v380_v17, %v380_v17  ;;  %v273_v20 = vpop.f32.mrf.mxu2 }
  0xad   :  { %v373_v21 = vsel %vm341_vm3, %v303_v16, %v357_v18  ;;  %v274_v22 = vadd.f32 %v769_v0, %v273_v20  ;;  %v322_v23 = vpop.f32.mrf.mxu3 }
  0xae   :  { %413 = vst.msk [vmem:[%s854_s3 + $0x20] sm:$0xf] %vm404_vm1, %v396_v19  ;;  %v389_v24 = vpack.c.bf16 %v373_v21, %v373_v21  ;;  %v256_v25 = vpop.f32.mrf.mxu0 }
  0xaf   :  { %v323_v26 = vadd.f32 %v322_v23, %v274_v22  ;;  %v257_v27 = vadd.f32 %v769_v0, %v256_v25  ;;  %v305_v28 = vpop.f32.mrf.mxu1 }
  0xb0   :  { %406 = vst.msk [vmem:[%s854_s3 + $0x4] sm:$0xf] %vm404_vm1, %v389_v24 }
  0xb1   :  { %vm349_vm4 = vcmp.ge.f32.partialorder %v323_v26, 0.0  ;;  %v365_v29 = vmul.f32 0.2, %v323_v26  ;;  %v306_v30 = vadd.f32 %v305_v28, %v257_v27 }
  0xb3   :  { %v381_v31 = vsel %vm349_vm4, %v323_v26, %v365_v29  ;;  %vm342_vm5 = vcmp.ge.f32.partialorder %v306_v30, 0.0  ;;  %v358_v32 = vmul.f32 0.2, %v306_v30 }
  0xb4   :  { %v397_v33 = vpack.c.bf16 %v381_v31, %v381_v31  ;;  %v276_v34 = vpop.f32.mrf.mxu2 }
  0xb5   :  { %v374_v35 = vsel %vm342_vm5, %v306_v30, %v358_v32  ;;  %v277_v36 = vadd.f32 %v769_v0, %v276_v34  ;;  %v325_v37 = vpop.f32.mrf.mxu3 }
  0xb6   :  { %414 = vst.msk [vmem:[%s854_s3 + $0x24] sm:$0xf] %vm404_vm1, %v397_v33  ;;  %v390_v38 = vpack.c.bf16 %v374_v35, %v374_v35  ;;  %v258_v39 = vpop.f32.mrf.mxu0 }
  0xb7   :  { %v326_v40 = vadd.f32 %v325_v37, %v277_v36  ;;  %v259_v41 = vadd.f32 %v769_v0, %v258_v39  ;;  %v307_v42 = vpop.f32.mrf.mxu1 }
  0xb8   :  { %407 = vst.msk [vmem:[%s854_s3 + $0x8] sm:$0xf] %vm404_vm1, %v390_v38 }
  0xb9   :  { %vm350_vm6 = vcmp.ge.f32.partialorder %v326_v40, 0.0  ;;  %v366_v43 = vmul.f32 0.2, %v326_v40  ;;  %v308_v44 = vadd.f32 %v307_v42, %v259_v41 }
  0xbb   :  { %v382_v45 = vsel %vm350_vm6, %v326_v40, %v366_v43  ;;  %vm343_vm7 = vcmp.ge.f32.partialorder %v308_v44, 0.0  ;;  %v359_v46 = vmul.f32 0.2, %v308_v44 }
  0xbc   :  { %v398_v47 = vpack.c.bf16 %v382_v45, %v382_v45  ;;  %v278_v48 = vpop.f32.mrf.mxu2 }
  0xbd   :  { %v375_v49 = vsel %vm343_vm7, %v308_v44, %v359_v46  ;;  %v279_v50 = vadd.f32 %v769_v0, %v278_v48  ;;  %v327_v51 = vpop.f32.mrf.mxu3 }
  0xbe   :  { %415 = vst.msk [vmem:[%s854_s3 + $0x28] sm:$0xf] %vm404_vm1, %v398_v47  ;;  %v391_v52 = vpack.c.bf16 %v375_v49, %v375_v49  ;;  %v261_v53 = vpop.f32.mrf.mxu0 }
  0xbf   :  { %v328_v54 = vadd.f32 %v327_v51, %v279_v50  ;;  %v262_v55 = vadd.f32 %v769_v0, %v261_v53  ;;  %v310_v56 = vpop.f32.mrf.mxu1 }
  0xc0   :  { %408 = vst.msk [vmem:[%s854_s3 + $0xc] sm:$0xf] %vm404_vm1, %v391_v52 }
  0xc1   :  { %vm351_vm8 = vcmp.ge.f32.partialorder %v328_v54, 0.0  ;;  %v367_v57 = vmul.f32 0.2, %v328_v54  ;;  %v311_v58 = vadd.f32 %v310_v56, %v262_v55 }
  0xc3   :  { %v383_v59 = vsel %vm351_vm8, %v328_v54, %v367_v57  ;;  %vm344_vm9 = vcmp.ge.f32.partialorder %v311_v58, 0.0  ;;  %v360_v60 = vmul.f32 0.2, %v311_v58 }
  0xc4   :  { %v399_v61 = vpack.c.bf16 %v383_v59, %v383_v59  ;;  %v281_v62 = vpop.f32.mrf.mxu2 }
  0xc5   :  { %v376_v63 = vsel %vm344_vm9, %v311_v58, %v360_v60  ;;  %v282_v1 = vadd.f32 %v769_v0, %v281_v62  ;;  %v330_v2 = vpop.f32.mrf.mxu3 }
  0xc6   :  { %416 = vst.msk [vmem:[%s854_s3 + $0x2c] sm:$0xf] %vm404_vm1, %v399_v61  ;;  %v392_v3 = vpack.c.bf16 %v376_v63, %v376_v63  ;;  %v263_v4 = vpop.f32.mrf.mxu0 }
  0xc7   :  { %v331_v5 = vadd.f32 %v330_v2, %v282_v1  ;;  %v264_v6 = vadd.f32 %v769_v0, %v263_v4  ;;  %v312_v7 = vpop.f32.mrf.mxu1 }
  0xc8   :  { %409 = vst.msk [vmem:[%s854_s3 + $0x10] sm:$0xf] %vm404_vm1, %v392_v3 }
  0xc9   :  { %vm352_vm10 = vcmp.ge.f32.partialorder %v331_v5, 0.0  ;;  %v368_v8 = vmul.f32 0.2, %v331_v5  ;;  %v313_v9 = vadd.f32 %v312_v7, %v264_v6 }
  0xcb   :  { %v384_v10 = vsel %vm352_vm10, %v331_v5, %v368_v8  ;;  %vm345_vm11 = vcmp.ge.f32.partialorder %v313_v9, 0.0  ;;  %v361_v11 = vmul.f32 0.2, %v313_v9 }
  0xcc   :  { %v400_v12 = vpack.c.bf16 %v384_v10, %v384_v10  ;;  %v283_v13 = vpop.f32.mrf.mxu2 }
  0xcd   :  { %v377_v14 = vsel %vm345_vm11, %v313_v9, %v361_v11  ;;  %v284_v15 = vadd.f32 %v769_v0, %v283_v13  ;;  %v332_v16 = vpop.f32.mrf.mxu3 }
  0xce   :  { %417 = vst.msk [vmem:[%s854_s3 + $0x30] sm:$0xf] %vm404_vm1, %v400_v12  ;;  %v393_v17 = vpack.c.bf16 %v377_v14, %v377_v14  ;;  %v266_v18 = vpop.f32.mrf.mxu0 }
  0xcf   :  { %v333_v19 = vadd.f32 %v332_v16, %v284_v15  ;;  %v267_v20 = vadd.f32 %v769_v0, %v266_v18  ;;  %v315_v21 = vpop.f32.mrf.mxu1 }
  0xd0   :  { %410 = vst.msk [vmem:[%s854_s3 + $0x14] sm:$0xf] %vm404_vm1, %v393_v17 }
  0xd1   :  { %vm353_vm12 = vcmp.ge.f32.partialorder %v333_v19, 0.0  ;;  %v369_v22 = vmul.f32 0.2, %v333_v19  ;;  %v316_v23 = vadd.f32 %v315_v21, %v267_v20 }
  0xd3   :  { %v385_v24 = vsel %vm353_vm12, %v333_v19, %v369_v22  ;;  %vm346_vm13 = vcmp.ge.f32.partialorder %v316_v23, 0.0  ;;  %v362_v25 = vmul.f32 0.2, %v316_v23 }
  0xd4   :  { %v401_v26 = vpack.c.bf16 %v385_v24, %v385_v24  ;;  %v286_v27 = vpop.f32.mrf.mxu2 }
  0xd5   :  { %v378_v28 = vsel %vm346_vm13, %v316_v23, %v362_v25  ;;  %v287_v29 = vadd.f32 %v769_v0, %v286_v27  ;;  %v335_v30 = vpop.f32.mrf.mxu3 }
  0xd6   :  { %418 = vst.msk [vmem:[%s854_s3 + $0x34] sm:$0xf] %vm404_vm1, %v401_v26  ;;  %v394_v31 = vpack.c.bf16 %v378_v28, %v378_v28  ;;  %v268_v32 = vpop.f32.mrf.mxu0 }
  0xd7   :  { %v336_v33 = vadd.f32 %v335_v30, %v287_v29  ;;  %v269_v34 = vadd.f32 %v769_v0, %v268_v32  ;;  %v317_v35 = vpop.f32.mrf.mxu1 }
  0xd8   :  { %411 = vst.msk [vmem:[%s854_s3 + $0x18] sm:$0xf] %vm404_vm1, %v394_v31 }
  0xd9   :  { %vm354_vm14 = vcmp.ge.f32.partialorder %v336_v33, 0.0  ;;  %v370_v36 = vmul.f32 0.2, %v336_v33  ;;  %v318_v37 = vadd.f32 %v317_v35, %v269_v34 }
  0xdb   :  { %v386_v38 = vsel %vm354_vm14, %v336_v33, %v370_v36  ;;  %vm347_vm15 = vcmp.ge.f32.partialorder %v318_v37, 0.0  ;;  %v363_v39 = vmul.f32 0.2, %v318_v37 }
  0xdc   :  { %v402_v40 = vpack.c.bf16 %v386_v38, %v386_v38  ;;  %v288_v41 = vpop.f32.mrf.mxu2 }
  0xdd   :  { %v379_v42 = vsel %vm347_vm15, %v318_v37, %v363_v39  ;;  %v289_v43 = vadd.f32 %v769_v0, %v288_v41  ;;  %v337_v45 = vpop.f32.mrf.mxu3 }
  0xde   :  { %419 = vst.msk [vmem:[%s854_s3 + $0x38] sm:$0xf] %vm404_vm1, %v402_v40  ;;  %v395_v44 = vpack.c.bf16 %v379_v42, %v379_v42 }
  0xdf   :  { %v338_v46 = vadd.f32 %v337_v45, %v289_v43 }
  0xe0   :  { %412 = vst.msk [vmem:[%s854_s3 + $0x1c] sm:$0xf] %vm404_vm1, %v395_v44 }
  0xe1   :  { %vm355_vm0 = vcmp.ge.f32.partialorder %v338_v46, 0.0  ;;  %v371_v47 = vmul.f32 0.2, %v338_v46 }
  0xe3   :  { %v387_v48 = vsel %vm355_vm0, %v338_v46, %v371_v47 }
  0xe4   :  { %v403_v49 = vpack.c.bf16 %v387_v48, %v387_v48 }
  0xe6   :  { %420 = vst.msk [vmem:[%s854_s3 + $0x3c] sm:$0xf] %vm404_vm1, %v403_v49 }

// kernel: unet_discriminator_sn.15
= control target key start
LH: loop header
LB: loop body
LE: loop exit
PB: predicated region body
PF: predicated region fallthrough
CT: control target
= control target key end

     0   :  { %vm414_vm1 = vcmask 519168   ;;  %s807_s1 = inlined_call_operand.vmem [shape: bf16[512,64], index: 1, kind: input, shape index: {}]   ;;  %s808_s2 = inlined_call_operand.vmem [shape: f32[1,64], index: 2, kind: input, shape index: {}]   ;;  %s809_s0 = inlined_call_operand.vmem [shape: bf16[32,512], index: 0, kind: input, shape index: {}]   ;;  %s810_s3 = inlined_call_operand.vmem [shape: bf16[32,64], index: 3, kind: output, shape index: {}]  }
   0x1   :  { %v598_v0 = vld [vmem:[%s807_s1 + $0x38] sm:$0xff]  ;;  %v597_v4 = vld [vmem:[%s807_s1 + $0x30] sm:$0xff]  ;;  %v596_v8 = vld [vmem:[%s807_s1 + $0x28] sm:$0xff] }
   0x2   :  { %v606_v1 = vld [vmem:[%s807_s1 + $0x78] sm:$0xff]  ;;  %322 = vmatpush.bf16.msra.mxu0 %v598_v0  ;;  %v605_v5 = vld [vmem:[%s807_s1 + $0x70] sm:$0xff]  ;;  %v604_v9 = vld [vmem:[%s807_s1 + $0x68] sm:$0xff] }
   0x3   :  { %v614_v2 = vld [vmem:[%s807_s1 + $0xb8] sm:$0xff]  ;;  %341 = vmatpush.bf16.msra.mxu1 %v606_v1  ;;  %v613_v6 = vld [vmem:[%s807_s1 + $0xb0] sm:$0xff]  ;;  %v612_v10 = vld [vmem:[%s807_s1 + $0xa8] sm:$0xff] }
   0x4   :  { %v622_v3 = vld [vmem:[%s807_s1 + $0xf8] sm:$0xff]  ;;  %360 = vmatpush.bf16.msra.mxu2 %v614_v2  ;;  %v621_v7 = vld [vmem:[%s807_s1 + $0xf0] sm:$0xff]  ;;  %v620_v11 = vld [vmem:[%s807_s1 + $0xe8] sm:$0xff] }
   0x5   :  { %379 = vmatpush.bf16.msra.mxu3 %v622_v3  ;;  %v595_v12 = vld [vmem:[%s807_s1 + $0x20] sm:$0xff]  ;;  %v594_v16 = vld [vmem:[%s807_s1 + $0x18] sm:$0xff]  ;;  %v593_v20 = vld [vmem:[%s807_s1 + $0x10] sm:$0xff] }
   0x6   :  { %323 = vmatpush.bf16.msra.mxu0 %v597_v4  ;;  %v603_v13 = vld [vmem:[%s807_s1 + $0x60] sm:$0xff]  ;;  %v602_v17 = vld [vmem:[%s807_s1 + $0x58] sm:$0xff]  ;;  %v601_v21 = vld [vmem:[%s807_s1 + $0x50] sm:$0xff] }
   0x7   :  { %342 = vmatpush.bf16.msra.mxu1 %v605_v5  ;;  %v611_v14 = vld [vmem:[%s807_s1 + $0xa0] sm:$0xff]  ;;  %v610_v18 = vld [vmem:[%s807_s1 + $0x98] sm:$0xff]  ;;  %v609_v22 = vld [vmem:[%s807_s1 + $0x90] sm:$0xff] }
   0x8   :  { %361 = vmatpush.bf16.msra.mxu2 %v613_v6  ;;  %v619_v15 = vld [vmem:[%s807_s1 + $0xe0] sm:$0xff]  ;;  %v618_v19 = vld [vmem:[%s807_s1 + $0xd8] sm:$0xff]  ;;  %v617_v23 = vld [vmem:[%s807_s1 + $0xd0] sm:$0xff] }
   0x9   :  { %380 = vmatpush.bf16.msra.mxu3 %v621_v7  ;;  %v592_v24 = vld [vmem:[%s807_s1 + $0x8] sm:$0xff]  ;;  %v591_v28 = vld [vmem:[%s807_s1] sm:$0xff]  ;;  %v585_v33 = vld [vmem:[%s809_s0 + $0xc] sm:$0xf0] }
   0xa   :  { %324 = vmatpush.bf16.msra.mxu0 %v596_v8  ;;  %v600_v25 = vld [vmem:[%s807_s1 + $0x48] sm:$0xff]  ;;  %v599_v29 = vld [vmem:[%s807_s1 + $0x40] sm:$0xff]  ;;  %v427_v35 = vld [vmem:[%s809_s0 + $0x10] sm:$0xf0] }
   0xb   :  { %343 = vmatpush.bf16.msra.mxu1 %v604_v9  ;;  %v608_v26 = vld [vmem:[%s807_s1 + $0x88] sm:$0xff]  ;;  %v607_v30 = vld [vmem:[%s807_s1 + $0x80] sm:$0xff]  ;;  %v586_v37 = vld [vmem:[%s809_s0 + $0x14] sm:$0xf0] }
   0xc   :  { %362 = vmatpush.bf16.msra.mxu2 %v612_v10  ;;  %v616_v27 = vld [vmem:[%s807_s1 + $0xc8] sm:$0xff]  ;;  %v615_v31 = vld [vmem:[%s807_s1 + $0xc0] sm:$0xff]  ;;  %v435_v39 = vld [vmem:[%s809_s0 + $0x18] sm:$0xf0] }
   0xd   :  { %381 = vmatpush.bf16.msra.mxu3 %v620_v11  ;;  %v425_v32 = vld [vmem:[%s809_s0] sm:$0xf]  ;;  %v583_v34 = vld [vmem:[%s809_s0 + $0x4] sm:$0xf]  ;;  %v433_v36 = vld [vmem:[%s809_s0 + $0x8] sm:$0xf] }
   0xe   :  { %325 = vmatpush.bf16.msra.mxu0 %v595_v12  ;;  %v584_v38 = vld [vmem:[%s809_s0 + $0xc] sm:$0xf]  ;;  %v426_v40 = vor.u32 %v585_v33, %v425_v32  ;;  %v430_v41 = vor.u32 %v583_v34, %v427_v35  ;;  %v434_v42 = vor.u32 %v586_v37, %v433_v36  ;;  %v441_v44 = vld [vmem:[%s809_s0 + $0x20] sm:$0xf]  ;;  %v589_v45 = vld [vmem:[%s809_s0 + $0x2c] sm:$0xf0] }
   0xf   :  { %344 = vmatpush.bf16.msra.mxu1 %v603_v13  ;;  %v438_v43 = vor.u32 %v584_v38, %v435_v39  ;;  %v587_v46 = vld [vmem:[%s809_s0 + $0x24] sm:$0xf]  ;;  %v443_v47 = vld [vmem:[%s809_s0 + $0x30] sm:$0xf0]  ;;  %v449_v48 = vld [vmem:[%s809_s0 + $0x28] sm:$0xf]  ;;  %v442_v52 = vor.u32 %v589_v45, %v441_v44 }
  0x10   :  { %363 = vmatpush.bf16.msra.mxu2 %v611_v14  ;;  %v590_v49 = vld [vmem:[%s809_s0 + $0x34] sm:$0xf0]  ;;  %v588_v50 = vld [vmem:[%s809_s0 + $0x2c] sm:$0xf]  ;;  %v451_v51 = vld [vmem:[%s809_s0 + $0x38] sm:$0xf0]  ;;  %v446_v53 = vor.u32 %v587_v46, %v443_v47 }
  0x11   :  { %382 = vmatpush.bf16.msra.mxu3 %v619_v15  ;;  %v450_v54 = vor.u32 %v590_v49, %v449_v48  ;;  %v454_v55 = vor.u32 %v588_v50, %v451_v51  ;;  %v623_v56 = vld [vmem:[%s808_s2] ss:$0 sm:$0xff] }
  0x12   :  { %326 = vmatpush.bf16.msra.mxu0 %v594_v16 }
  0x13   :  { %345 = vmatpush.bf16.msra.mxu1 %v602_v17 }
  0x14   :  { %364 = vmatpush.bf16.msra.mxu2 %v610_v18 }
  0x15   :  { %383 = vmatpush.bf16.msra.mxu3 %v618_v19 }
  0x16   :  { %327 = vmatpush.bf16.msra.mxu0 %v593_v20 }
  0x17   :  { %346 = vmatpush.bf16.msra.mxu1 %v601_v21 }
  0x18   :  { %365 = vmatpush.bf16.msra.mxu2 %v609_v22 }
  0x19   :  { %384 = vmatpush.bf16.msra.mxu3 %v617_v23 }
  0x1a   :  { %328 = vmatpush.bf16.msra.mxu0 %v592_v24 }
  0x1b   :  { %347 = vmatpush.bf16.msra.mxu1 %v600_v25 }
  0x1c   :  { %366 = vmatpush.bf16.msra.mxu2 %v608_v26 }
  0x1d   :  { %385 = vmatpush.bf16.msra.mxu3 %v616_v27 }
  0x1e   :  { %329 = vmatpush.bf16.msra.mxu0 %v591_v28 }
  0x1f   :  { %348 = vmatpush.bf16.msra.mxu1 %v599_v29 }
  0x20   :  { %367 = vmatpush.bf16.msra.mxu2 %v607_v30 }
  0x21   :  { %386 = vmatpush.bf16.msra.mxu3 %v615_v31  ;;  %330 = vmatmul.bf16.vlgmr.msra.gmra.mxu0 %v426_v40 }
  0x22   :  { %349 = vmatmul.bf16.vlgmr.msra.gmra.mxu1 %v430_v41 }
  0x23   :  { %368 = vmatmul.bf16.vlgmr.msra.gmra.mxu2 %v434_v42 }
  0x24   :  { %387 = vmatmul.bf16.vlgmr.msra.gmra.mxu3 %v438_v43 }
  0x31   :  { %335 = vmatmul.bf16.gmra.mxu0 %v442_v52 }
  0x32   :  { %354 = vmatmul.bf16.gmra.mxu1 %v446_v53 }
  0x33   :  { %373 = vmatmul.bf16.gmra.mxu2 %v450_v54 }
  0x34   :  { %392 = vmatmul.bf16.gmra.mxu3 %v454_v55 }
  0x9e   :  { %v331_v57 = vpop.f32.mrf.mxu0 }
  0x9f   :  { %v350_v58 = vpop.f32.mrf.mxu1  ;;  %v332_v59 = vadd.f32 %v623_v56, %v331_v57 }
  0xa1   :  { %v351_v60 = vadd.f32 %v350_v58, %v332_v59 }
  0xa6   :  { %v369_v61 = vpop.f32.mrf.mxu2  ;;  %v333_v0 = vpop.f32.mrf.mxu0 }
  0xa7   :  { %v388_v62 = vpop.f32.mrf.mxu3  ;;  %v370_v63 = vadd.f32 %v369_v61, %v351_v60  ;;  %v352_v1 = vpop.f32.mrf.mxu1  ;;  %v334_v3 = vadd.f32 %v623_v56, %v333_v0 }
  0xa9   :  { %v389_v2 = vadd.f32 %v388_v62, %v370_v63  ;;  %v353_v6 = vadd.f32 %v352_v1, %v334_v3 }
  0xab   :  { %vm398_vm0 = vcmp.ge.f32.partialorder %v389_v2, 0.0  ;;  %v402_v4 = vmul.f32 0.2, %v389_v2 }
  0xad   :  { %v406_v5 = vsel %vm398_vm0, %v389_v2, %v402_v4 }
  0xae   :  { %v410_v7 = vpack.c.bf16 %v406_v5, %v406_v5  ;;  %v371_v8 = vpop.f32.mrf.mxu2  ;;  %v336_v11 = vpop.f32.mrf.mxu0 }
  0xaf   :  { %v390_v9 = vpop.f32.mrf.mxu3  ;;  %v372_v10 = vadd.f32 %v371_v8, %v353_v6  ;;  %v337_v12 = vadd.f32 %v623_v56, %v336_v11  ;;  %v355_v14 = vpop.f32.mrf.mxu1 }
  0xb0   :  { %415 = vst.msk [vmem:[%s810_s3] sm:$0xf] %vm414_vm1, %v410_v7 }
  0xb1   :  { %v391_v13 = vadd.f32 %v390_v9, %v372_v10  ;;  %v356_v16 = vadd.f32 %v355_v14, %v337_v12 }
  0xb3   :  { %vm399_vm2 = vcmp.ge.f32.partialorder %v391_v13, 0.0  ;;  %v403_v15 = vmul.f32 0.2, %v391_v13 }
  0xb5   :  { %v407_v17 = vsel %vm399_vm2, %v391_v13, %v403_v15 }
  0xb6   :  { %v411_v18 = vpack.c.bf16 %v407_v17, %v407_v17  ;;  %v374_v19 = vpop.f32.mrf.mxu2  ;;  %v338_v22 = vpop.f32.mrf.mxu0 }
  0xb7   :  { %v393_v20 = vpop.f32.mrf.mxu3  ;;  %v375_v21 = vadd.f32 %v374_v19, %v356_v16  ;;  %v339_v24 = vadd.f32 %v623_v56, %v338_v22  ;;  %v357_v26 = vpop.f32.mrf.mxu1 }
  0xb8   :  { %416 = vst.msk [vmem:[%s810_s3 + $0x4] sm:$0xf] %vm414_vm1, %v411_v18 }
  0xb9   :  { %v394_v23 = vadd.f32 %v393_v20, %v375_v21  ;;  %v358_v28 = vadd.f32 %v357_v26, %v339_v24 }
  0xbb   :  { %vm400_vm3 = vcmp.ge.f32.partialorder %v394_v23, 0.0  ;;  %v404_v25 = vmul.f32 0.2, %v394_v23 }
  0xbd   :  { %v408_v27 = vsel %vm400_vm3, %v394_v23, %v404_v25 }
  0xbe   :  { %v412_v29 = vpack.c.bf16 %v408_v27, %v408_v27  ;;  %v376_v30 = vpop.f32.mrf.mxu2 }
  0xbf   :  { %v377_v31 = vadd.f32 %v376_v30, %v358_v28  ;;  %v395_v32 = vpop.f32.mrf.mxu3 }
  0xc0   :  { %417 = vst.msk [vmem:[%s810_s3 + $0x8] sm:$0xf] %vm414_vm1, %v412_v29 }
  0xc1   :  { %v396_v33 = vadd.f32 %v395_v32, %v377_v31 }
  0xc3   :  { %vm401_vm4 = vcmp.ge.f32.partialorder %v396_v33, 0.0  ;;  %v405_v34 = vmul.f32 0.2, %v396_v33 }
  0xc5   :  { %v409_v35 = vsel %vm401_vm4, %v396_v33, %v405_v34 }
  0xc6   :  { %v413_v36 = vpack.c.bf16 %v409_v35, %v409_v35 }
  0xc8   :  { %418 = vst.msk [vmem:[%s810_s3 + $0xc] sm:$0xf] %vm414_vm1, %v413_v36 }

// kernel: unet_discriminator_sn.17
= control target key start
LH: loop header
LB: loop body
LE: loop exit
PB: predicated region body
PF: predicated region fallthrough
CT: control target
= control target key end

     0   :  { %s500_s15 = smov 0   ;;  %s541_s0 = inlined_call_operand.vmem [shape: bf16[2,2,2,128], index: 0, kind: input, shape index: {}]   ;;  %s542_s1 = inlined_call_operand.vmem [shape: bf16[2,2,2,128], index: 1, kind: output, shape index: {0}]   ;;  %s543_s2 = inlined_call_operand.vmem [shape: bf16[2,2,2,128], index: 2, kind: output, shape index: {1}]   ;;  %s544_s3 = inlined_call_operand.vmem [shape: bf16[2,2,2,128], index: 3, kind: output, shape index: {2}]   ;;  %s545_s4 = inlined_call_operand.vmem [shape: bf16[2,2,2,128], index: 4, kind: output, shape index: {3}]  }
   0x1 LB: > { %s447_s16 = sadd.s32 4294967295, %s473_s15   ;;  %p451_p0 = scmp.ge.s32.totalorder %s473_s15, 1  ;;  %s473_s15 = sphi %s500_s15, %s15_s15  }
   0x2   : > { %p168_p1 = scmp.lt.s32.totalorder %s473_s15, 3 }
   0x4   : > { %p169_p2 = pnand %p451_p0, %p168_p1 }
   0x5   : > { %p204_p3 = scmp.lt.s32.totalorder (!%p169_p2), %s447_s16, 1 }
   0x6   : > { %172 = sbr.rel (%p169_p2) target bundleno = 38 (0x26), region = 24 }
   0xb   : > { %s547_s16 = smov (!%p204_p3, %s447_s16), 1  ;;  %vm242_vm0 = vcmask 1040384  }
   0xc   : > { %s508_s17 = sshll.u32 %s547_s16, 1 }
   0xd   : > { %s207_s20 = scalar_lea.vmem %s541_s0, %s508_s17  ;;  %s211_s23 = scalar_lea.vmem %s542_s1, %s508_s17 }
   0xe   : > { %v224_v0 = vld [vmem:[%s207_s20] sm:$0x1]  ;;  %v225_v1 = vld [vmem:[%s207_s20 + $0x1] sm:$0x1]  ;;  %s215_s26 = scalar_lea.vmem %s543_s2, %s508_s17  ;;  %s219_s29 = scalar_lea.vmem %s544_s3, %s508_s17 }
   0xf   : > { %v226_v2 = vunpack.c.l.bf16 %v224_v0  ;;  %v227_v3 = vunpack.c.l.bf16 %v225_v1  ;;  %s223_s6 = scalar_lea.vmem %s545_s4, %s508_s17 }
  0x11   : > { %v228_v4 = vmul.f32 0.25, %v226_v2  ;;  %v229_v5 = vmul.f32 0.75, %v226_v2  ;;  %v230_v6 = vmul.f32 0.75, %v227_v3  ;;  %v233_v7 = vmul.f32 0.25, %v227_v3 }
  0x13   : > { %v231_v8 = vadd.f32 %v229_v5, %v228_v4  ;;  %v232_v9 = vadd.f32 %v230_v6, %v228_v4  ;;  %v234_v10 = vadd.f32 %v233_v7, %v229_v5  ;;  %v235_v11 = vadd.f32 %v233_v7, %v230_v6 }
  0x15   : > { %v238_v12 = vperm.slane %v231_v8, 0  ;;  %v253_v13 = vmul.f32 0.75, %v231_v8  ;;  %v239_v14 = vperm.slane %v232_v9, 0  ;;  %v254_v15 = vmul.f32 0.75, %v232_v9 }
  0x16   : > { %v245_v16 = vperm.slane %v231_v8, 1  ;;  %v246_v17 = vperm.slane %v232_v9, 1  ;;  %v263_v18 = vperm.slane %v234_v10, 0  ;;  %v277_v19 = vmul.f32 0.75, %v234_v10 }
  0x17   : > { %v243_v20 = vsel %vm242_vm0, %v231_v8, %v238_v12  ;;  %v244_v21 = vsel %vm242_vm0, %v232_v9, %v239_v14  ;;  %v264_v22 = vperm.slane %v235_v11, 0  ;;  %v278_v23 = vmul.f32 0.75, %v235_v11 }
  0x18   : > { %v251_v24 = vmul.f32 0.25, %v243_v20  ;;  %v252_v25 = vmul.f32 0.25, %v244_v21  ;;  %v249_v26 = vsel %vm242_vm0, %v245_v16, %v231_v8  ;;  %v250_v27 = vsel %vm242_vm0, %v246_v17, %v232_v9 }
  0x19   : > { %v257_v28 = vmul.f32 0.25, %v249_v26  ;;  %v258_v29 = vmul.f32 0.25, %v250_v27  ;;  %v267_v30 = vsel %vm242_vm0, %v234_v10, %v263_v18  ;;  %v268_v31 = vsel %vm242_vm0, %v235_v11, %v264_v22 }
  0x1a   : > { %v255_v32 = vadd.f32 %v253_v13, %v251_v24  ;;  %v256_v33 = vadd.f32 %v254_v15, %v252_v25  ;;  %v275_v34 = vmul.f32 0.25, %v267_v30  ;;  %v276_v35 = vmul.f32 0.25, %v268_v31 }
  0x1b   : > { %v259_v36 = vadd.f32 %v257_v28, %v253_v13  ;;  %v260_v37 = vadd.f32 %v258_v29, %v254_v15  ;;  %v269_v38 = vperm.slane %v234_v10, 1  ;;  %v270_v39 = vperm.slane %v235_v11, 1 }
  0x1c   : > { %v285_v40 = vpack.c.bf16 %v255_v32, %v255_v32  ;;  %v286_v41 = vpack.c.bf16 %v256_v33, %v256_v33  ;;  %v279_v42 = vadd.f32 %v277_v19, %v275_v34  ;;  %v280_v43 = vadd.f32 %v278_v23, %v276_v35 }
  0x1d   : > { %v289_v44 = vpack.c.bf16 %v259_v36, %v259_v36  ;;  %v290_v45 = vpack.c.bf16 %v260_v37, %v260_v37  ;;  %v273_v46 = vsel %vm242_vm0, %v269_v38, %v234_v10  ;;  %v274_v47 = vsel %vm242_vm0, %v270_v39, %v235_v11 }
  0x1e   : > { %287 = vst [vmem:[%s211_s23] sm:$0x1] %v285_v40  ;;  %v293_v48 = vpack.c.bf16 %v279_v42, %v279_v42  ;;  %v281_v49 = vmul.f32 0.25, %v273_v46  ;;  %v282_v50 = vmul.f32 0.25, %v274_v47  ;;  %v294_v51 = vpack.c.bf16 %v280_v43, %v280_v43 }
  0x1f   : > { %288 = vst [vmem:[%s211_s23 + $0x1] sm:$0x1] %v286_v41 }
  0x20   : > { %291 = vst [vmem:[%s215_s26] sm:$0x1] %v289_v44  ;;  %v283_v52 = vadd.f32 %v281_v49, %v277_v19  ;;  %v284_v53 = vadd.f32 %v282_v50, %v278_v23 }
  0x21   : > { %292 = vst [vmem:[%s215_s26 + $0x1] sm:$0x1] %v290_v45 }
  0x22   : > { %295 = vst [vmem:[%s219_s29] sm:$0x1] %v293_v48  ;;  %v297_v54 = vpack.c.bf16 %v283_v52, %v283_v52  ;;  %v298_v55 = vpack.c.bf16 %v284_v53, %v284_v53 }
  0x23   : > { %296 = vst [vmem:[%s219_s29 + $0x1] sm:$0x1] %v294_v51 }
  0x24   : > { %299 = vst [vmem:[%s223_s6] sm:$0x1] %v297_v54 }
  0x25   : > { %300 = vst [vmem:[%s223_s6 + $0x1] sm:$0x1] %v298_v55 }
  0x26 PF: > { %s15_s15 = sadd.s32 1, %s473_s15  }
  0x27   : > { %p12_p4 = scmp.ge.s32.totalorder %s15_s15, 4  }
  0x29   :  { %14 = sbr.rel (!%p12_p4) target bundleno = 1 (0x1), region = 90 }

// kernel: unet_discriminator_sn.16
= control target key start
LH: loop header
LB: loop body
LE: loop exit
PB: predicated region body
PF: predicated region fallthrough
CT: control target
= control target key end

     0   :  { %s1226_s1 = inlined_call_operand.vmem [shape: bf16[1024,128], index: 1, kind: input, shape index: {}]   ;;  %s1227_s2 = inlined_call_operand.vmem [shape: f32[1,128], index: 2, kind: input, shape index: {}]   ;;  %s1228_s0 = inlined_call_operand.vmem [shape: bf16[8,1024], index: 0, kind: input, shape index: {}]   ;;  %s1229_s3 = inlined_call_operand.vmem [shape: bf16[8,128], index: 3, kind: output, shape index: {}]  }
   0x1   :  { %v938_v0 = vld [vmem:[%s1226_s1 + $0x38] sm:$0xff]  ;;  %v937_v4 = vld [vmem:[%s1226_s1 + $0x30] sm:$0xff]  ;;  %v936_v8 = vld [vmem:[%s1226_s1 + $0x28] sm:$0xff] }
   0x2   :  { %v946_v1 = vld [vmem:[%s1226_s1 + $0x78] sm:$0xff]  ;;  %562 = vmatpush.bf16.msra.mxu0 %v938_v0  ;;  %v945_v5 = vld [vmem:[%s1226_s1 + $0x70] sm:$0xff]  ;;  %v944_v9 = vld [vmem:[%s1226_s1 + $0x68] sm:$0xff] }
   0x3   :  { %v954_v2 = vld [vmem:[%s1226_s1 + $0xb8] sm:$0xff]  ;;  %575 = vmatpush.bf16.msra.mxu1 %v946_v1  ;;  %v953_v6 = vld [vmem:[%s1226_s1 + $0xb0] sm:$0xff]  ;;  %v952_v10 = vld [vmem:[%s1226_s1 + $0xa8] sm:$0xff] }
   0x4   :  { %v962_v3 = vld [vmem:[%s1226_s1 + $0xf8] sm:$0xff]  ;;  %588 = vmatpush.bf16.msra.mxu2 %v954_v2  ;;  %v961_v7 = vld [vmem:[%s1226_s1 + $0xf0] sm:$0xff]  ;;  %v960_v11 = vld [vmem:[%s1226_s1 + $0xe8] sm:$0xff] }
   0x5   :  { %601 = vmatpush.bf16.msra.mxu3 %v962_v3  ;;  %v935_v12 = vld [vmem:[%s1226_s1 + $0x20] sm:$0xff]  ;;  %v934_v16 = vld [vmem:[%s1226_s1 + $0x18] sm:$0xff]  ;;  %v933_v20 = vld [vmem:[%s1226_s1 + $0x10] sm:$0xff] }
   0x6   :  { %563 = vmatpush.bf16.msra.mxu0 %v937_v4  ;;  %v943_v13 = vld [vmem:[%s1226_s1 + $0x60] sm:$0xff]  ;;  %v942_v17 = vld [vmem:[%s1226_s1 + $0x58] sm:$0xff]  ;;  %v941_v21 = vld [vmem:[%s1226_s1 + $0x50] sm:$0xff] }
   0x7   :  { %576 = vmatpush.bf16.msra.mxu1 %v945_v5  ;;  %v951_v14 = vld [vmem:[%s1226_s1 + $0xa0] sm:$0xff]  ;;  %v950_v18 = vld [vmem:[%s1226_s1 + $0x98] sm:$0xff]  ;;  %v949_v22 = vld [vmem:[%s1226_s1 + $0x90] sm:$0xff] }
   0x8   :  { %589 = vmatpush.bf16.msra.mxu2 %v953_v6  ;;  %v959_v15 = vld [vmem:[%s1226_s1 + $0xe0] sm:$0xff]  ;;  %v958_v19 = vld [vmem:[%s1226_s1 + $0xd8] sm:$0xff]  ;;  %v957_v23 = vld [vmem:[%s1226_s1 + $0xd0] sm:$0xff] }
   0x9   :  { %602 = vmatpush.bf16.msra.mxu3 %v961_v7  ;;  %v932_v24 = vld [vmem:[%s1226_s1 + $0x8] sm:$0xff]  ;;  %v14_v29 = vld [vmem:[%s1228_s0] sm:$0xff]  ;;  %v970_v38 = vld [vmem:[%s1226_s1 + $0x138] sm:$0xff] }
   0xa   :  { %564 = vmatpush.bf16.msra.mxu0 %v936_v8  ;;  %v940_v25 = vld [vmem:[%s1226_s1 + $0x48] sm:$0xff]  ;;  %v931_v30 = vld [vmem:[%s1226_s1] sm:$0xff]  ;;  %v154_v33 = vunpack.c.l.b16 %v14_v29  ;;  %v155_v37 = vunpack.c.h.b16 %v14_v29  ;;  %v978_v39 = vld [vmem:[%s1226_s1 + $0x178] sm:$0xff] }
   0xb   :  { %577 = vmatpush.bf16.msra.mxu1 %v944_v9  ;;  %v948_v26 = vld [vmem:[%s1226_s1 + $0x88] sm:$0xff]  ;;  %v939_v31 = vld [vmem:[%s1226_s1 + $0x40] sm:$0xff]  ;;  %v986_v40 = vld [vmem:[%s1226_s1 + $0x1b8] sm:$0xff] }
   0xc   :  { %590 = vmatpush.bf16.msra.mxu2 %v952_v10  ;;  %v956_v27 = vld [vmem:[%s1226_s1 + $0xc8] sm:$0xff]  ;;  %v947_v34 = vld [vmem:[%s1226_s1 + $0x80] sm:$0xff]  ;;  %v994_v41 = vld [vmem:[%s1226_s1 + $0x1f8] sm:$0xff]  ;;  %v162_v43 = vpack.c.b16 %v154_v33, %v154_v33  ;;  %v163_v45 = vpack.c.b16 %v155_v37, %v155_v37 }
   0xd   :  { %603 = vmatpush.bf16.msra.mxu3 %v960_v11  ;;  %v15_v28 = vld [vmem:[%s1228_s0 + $0x8] sm:$0xff]  ;;  %v955_v35 = vld [vmem:[%s1226_s1 + $0xc0] sm:$0xff]  ;;  %v969_v46 = vld [vmem:[%s1226_s1 + $0x130] sm:$0xff] }
   0xe   :  { %565 = vmatpush.bf16.msra.mxu0 %v935_v12  ;;  %v156_v32 = vunpack.c.l.b16 %v15_v28  ;;  %v157_v36 = vunpack.c.h.b16 %v15_v28  ;;  %v977_v47 = vld [vmem:[%s1226_s1 + $0x170] sm:$0xff]  ;;  %v968_v50 = vld [vmem:[%s1226_s1 + $0x128] sm:$0xff]  ;;  %v967_v54 = vld [vmem:[%s1226_s1 + $0x120] sm:$0xff] }
   0xf   :  { %578 = vmatpush.bf16.msra.mxu1 %v943_v13  ;;  %v985_v48 = vld [vmem:[%s1226_s1 + $0x1b0] sm:$0xff]  ;;  %v976_v51 = vld [vmem:[%s1226_s1 + $0x168] sm:$0xff]  ;;  %v975_v55 = vld [vmem:[%s1226_s1 + $0x160] sm:$0xff] }
  0x10   :  { %591 = vmatpush.bf16.msra.mxu2 %v951_v14  ;;  %v164_v42 = vpack.c.b16 %v156_v32, %v156_v32  ;;  %v165_v44 = vpack.c.b16 %v157_v36, %v157_v36  ;;  %v993_v49 = vld [vmem:[%s1226_s1 + $0x1f0] sm:$0xff]  ;;  %v984_v52 = vld [vmem:[%s1226_s1 + $0x1a8] sm:$0xff]  ;;  %v983_v56 = vld [vmem:[%s1226_s1 + $0x1a0] sm:$0xff] }
  0x11   :  { %604 = vmatpush.bf16.msra.mxu3 %v959_v15  ;;  %v992_v53 = vld [vmem:[%s1226_s1 + $0x1e8] sm:$0xff]  ;;  %v991_v57 = vld [vmem:[%s1226_s1 + $0x1e0] sm:$0xff]  ;;  %v966_v58 = vld [vmem:[%s1226_s1 + $0x118] sm:$0xff] }
  0x12   :  { %566 = vmatpush.bf16.msra.mxu0 %v934_v16  ;;  %v974_v59 = vld [vmem:[%s1226_s1 + $0x158] sm:$0xff]  ;;  %v965_v62 = vld [vmem:[%s1226_s1 + $0x110] sm:$0xff]  ;;  %v964_v2 = vld [vmem:[%s1226_s1 + $0x108] sm:$0xff] }
  0x13   :  { %579 = vmatpush.bf16.msra.mxu1 %v942_v17  ;;  %v982_v60 = vld [vmem:[%s1226_s1 + $0x198] sm:$0xff]  ;;  %v973_v63 = vld [vmem:[%s1226_s1 + $0x150] sm:$0xff]  ;;  %v972_v3 = vld [vmem:[%s1226_s1 + $0x148] sm:$0xff] }
  0x14   :  { %592 = vmatpush.bf16.msra.mxu2 %v950_v18  ;;  %v990_v61 = vld [vmem:[%s1226_s1 + $0x1d8] sm:$0xff]  ;;  %v981_v0 = vld [vmem:[%s1226_s1 + $0x190] sm:$0xff]  ;;  %v980_v5 = vld [vmem:[%s1226_s1 + $0x188] sm:$0xff] }
  0x15   :  { %605 = vmatpush.bf16.msra.mxu3 %v958_v19  ;;  %v989_v1 = vld [vmem:[%s1226_s1 + $0x1d0] sm:$0xff]  ;;  %v988_v6 = vld [vmem:[%s1226_s1 + $0x1c8] sm:$0xff]  ;;  %v17_v7 = vld [vmem:[%s1228_s0 + $0x18] sm:$0xff] }
  0x16   :  { %567 = vmatpush.bf16.msra.mxu0 %v933_v20  ;;  %v16_v4 = vld [vmem:[%s1228_s0 + $0x10] sm:$0xff]  ;;  %v963_v10 = vld [vmem:[%s1226_s1 + $0x100] sm:$0xff]  ;;  %v160_v12 = vunpack.c.l.b16 %v17_v7  ;;  %v161_v13 = vunpack.c.h.b16 %v17_v7 }
  0x17   :  { %580 = vmatpush.bf16.msra.mxu1 %v941_v21  ;;  %v158_v8 = vunpack.c.l.b16 %v16_v4  ;;  %v159_v9 = vunpack.c.h.b16 %v16_v4  ;;  %v971_v11 = vld [vmem:[%s1226_s1 + $0x140] sm:$0xff] }
  0x18   :  { %593 = vmatpush.bf16.msra.mxu2 %v949_v22  ;;  %v979_v14 = vld [vmem:[%s1226_s1 + $0x180] sm:$0xff]  ;;  %v168_v18 = vpack.c.b16 %v160_v12, %v160_v12  ;;  %v169_v19 = vpack.c.b16 %v161_v13, %v161_v13 }
  0x19   :  { %606 = vmatpush.bf16.msra.mxu3 %v957_v23  ;;  %v987_v15 = vld [vmem:[%s1226_s1 + $0x1c0] sm:$0xff]  ;;  %v166_v16 = vpack.c.b16 %v158_v8, %v158_v8  ;;  %v167_v17 = vpack.c.b16 %v159_v9, %v159_v9 }
  0x1a   :  { %568 = vmatpush.bf16.msra.mxu0 %v932_v24 }
  0x1b   :  { %581 = vmatpush.bf16.msra.mxu1 %v940_v25 }
  0x1c   :  { %594 = vmatpush.bf16.msra.mxu2 %v948_v26  ;;  %v995_v26 = vld [vmem:[%s1227_s2] ss:$0 sm:$0xff] }
  0x1d   :  { %607 = vmatpush.bf16.msra.mxu3 %v956_v27 }
  0x1e   :  { %569 = vmatpush.bf16.msra.mxu0 %v931_v30 }
  0x1f   :  { %582 = vmatpush.bf16.msra.mxu1 %v939_v31 }
  0x20   :  { %595 = vmatpush.bf16.msra.mxu2 %v947_v34 }
  0x21   :  { %608 = vmatpush.bf16.msra.mxu3 %v955_v35  ;;  %570 = vmatmul.bf16.vlgmr.msra.gmra.mxu0 %v162_v43 }
  0x22   :  { %614 = vmatpush.bf16.msrb.mxu0 %v970_v38  ;;  %583 = vmatmul.bf16.vlgmr.msra.gmra.mxu1 %v163_v45 }
  0x23   :  { %627 = vmatpush.bf16.msrb.mxu1 %v978_v39  ;;  %596 = vmatmul.bf16.vlgmr.msra.gmra.mxu2 %v164_v42 }
  0x24   :  { %640 = vmatpush.bf16.msrb.mxu2 %v986_v40  ;;  %609 = vmatmul.bf16.vlgmr.msra.gmra.mxu3 %v165_v44 }
  0x25   :  { %653 = vmatpush.bf16.msrb.mxu3 %v994_v41 }
  0x26   :  { %615 = vmatpush.bf16.msrb.mxu0 %v969_v46 }
  0x27   :  { %628 = vmatpush.bf16.msrb.mxu1 %v977_v47 }
  0x28   :  { %641 = vmatpush.bf16.msrb.mxu2 %v985_v48 }
  0x29   :  { %654 = vmatpush.bf16.msrb.mxu3 %v993_v49 }
  0x2a   :  { %616 = vmatpush.bf16.msrb.mxu0 %v968_v50 }
  0x2b   :  { %629 = vmatpush.bf16.msrb.mxu1 %v976_v51 }
  0x2c   :  { %642 = vmatpush.bf16.msrb.mxu2 %v984_v52 }
  0x2d   :  { %655 = vmatpush.bf16.msrb.mxu3 %v992_v53 }
  0x2e   :  { %617 = vmatpush.bf16.msrb.mxu0 %v967_v54 }
  0x2f   :  { %630 = vmatpush.bf16.msrb.mxu1 %v975_v55 }
  0x30   :  { %643 = vmatpush.bf16.msrb.mxu2 %v983_v56 }
  0x31   :  { %656 = vmatpush.bf16.msrb.mxu3 %v991_v57 }
  0x32   :  { %618 = vmatpush.bf16.msrb.mxu0 %v966_v58 }
  0x33   :  { %631 = vmatpush.bf16.msrb.mxu1 %v974_v59 }
  0x34   :  { %644 = vmatpush.bf16.msrb.mxu2 %v982_v60 }
  0x35   :  { %657 = vmatpush.bf16.msrb.mxu3 %v990_v61 }
  0x36   :  { %619 = vmatpush.bf16.msrb.mxu0 %v965_v62 }
  0x37   :  { %632 = vmatpush.bf16.msrb.mxu1 %v973_v63 }
  0x38   :  { %645 = vmatpush.bf16.msrb.mxu2 %v981_v0 }
  0x39   :  { %658 = vmatpush.bf16.msrb.mxu3 %v989_v1 }
  0x3a   :  { %620 = vmatpush.bf16.msrb.mxu0 %v964_v2 }
  0x3b   :  { %633 = vmatpush.bf16.msrb.mxu1 %v972_v3 }
  0x3c   :  { %646 = vmatpush.bf16.msrb.mxu2 %v980_v5 }
  0x3d   :  { %659 = vmatpush.bf16.msrb.mxu3 %v988_v6 }
  0x3e   :  { %621 = vmatpush.bf16.msrb.mxu0 %v963_v10 }
  0x3f   :  { %634 = vmatpush.bf16.msrb.mxu1 %v971_v11 }
  0x40   :  { %647 = vmatpush.bf16.msrb.mxu2 %v979_v14 }
  0x41   :  { %660 = vmatpush.bf16.msrb.mxu3 %v987_v15  ;;  %622 = vmatmul.bf16.vlgmr.msrb.gmra.mxu0 %v166_v16 }
  0x42   :  { %635 = vmatmul.bf16.vlgmr.msrb.gmra.mxu1 %v167_v17 }
  0x43   :  { %648 = vmatmul.bf16.vlgmr.msrb.gmra.mxu2 %v168_v18 }
  0x44   :  { %661 = vmatmul.bf16.vlgmr.msrb.gmra.mxu3 %v169_v19 }
  0x9e   :  { %v571_v20 = vpop.f32.mrf.mxu0 }
  0x9f   :  { %v584_v21 = vpop.f32.mrf.mxu1  ;;  %v572_v29 = vadd.f32 %v995_v26, %v571_v20 }
  0xa1   :  { %v585_v30 = vadd.f32 %v584_v21, %v572_v29 }
  0xa6   :  { %v597_v22 = vpop.f32.mrf.mxu2  ;;  %v573_v24 = vpop.f32.mrf.mxu0 }
  0xa7   :  { %v610_v23 = vpop.f32.mrf.mxu3  ;;  %v586_v25 = vpop.f32.mrf.mxu1  ;;  %v598_v31 = vadd.f32 %v597_v22, %v585_v30 }
  0xa9   :  { %v611_v32 = vadd.f32 %v610_v23, %v598_v31 }
  0xae   :  { %v599_v27 = vpop.f32.mrf.mxu2 }
  0xaf   :  { %v612_v28 = vpop.f32.mrf.mxu3 }
  0xbe   :  { %v623_v33 = vpop.f32.mrf.mxu0 }
  0xbf   :  { %v636_v34 = vpop.f32.mrf.mxu1  ;;  %v624_v35 = vadd.f32 %v623_v33, %v611_v32 }
  0xc1   :  { %v637_v36 = vadd.f32 %v636_v34, %v624_v35 }
  0xc6   :  { %v649_v37 = vpop.f32.mrf.mxu2  ;;  %v625_v40 = vpop.f32.mrf.mxu0 }
  0xc7   :  { %v662_v38 = vpop.f32.mrf.mxu3  ;;  %v650_v39 = vadd.f32 %v649_v37, %v637_v36  ;;  %v638_v41 = vpop.f32.mrf.mxu1 }
  0xc9   :  { %v663_v42 = vadd.f32 %v662_v38, %v650_v39 }
  0xcb   :  { %vm666_vm0 = vcmp.ge.f32.partialorder %v663_v42, 0.0  ;;  %v667_v43 = vmul.f32 0.2, %v663_v42 }
  0xcd   :  { %v668_v44 = vsel %vm666_vm0, %v663_v42, %v667_v43 }
  0xce   :  { %v669_v45 = vpack.c.bf16 %v668_v44, %v668_v44  ;;  %v651_v46 = vpop.f32.mrf.mxu2 }
  0xcf   :  { %v664_v47 = vpop.f32.mrf.mxu3 }
  0xd0   :  { %670 = vst [vmem:[%s1229_s3] sm:$0xf] %v669_v45 }

// kernel: unet_discriminator_sn.19
= control target key start
LH: loop header
LB: loop body
LE: loop exit
PB: predicated region body
PF: predicated region fallthrough
CT: control target
= control target key end

     0   :  { %s651_s15 = smov 0   ;;  %s777_s0 = inlined_call_operand.vmem [shape: bf16[2,4,4,64], index: 0, kind: input, shape index: {}]   ;;  %s778_s1 = inlined_call_operand.vmem [shape: bf16[2,4,4,64], index: 1, kind: output, shape index: {0}]   ;;  %s779_s2 = inlined_call_operand.vmem [shape: bf16[2,4,4,64], index: 2, kind: output, shape index: {1}]   ;;  %s780_s3 = inlined_call_operand.vmem [shape: bf16[2,4,4,64], index: 3, kind: output, shape index: {2}]   ;;  %s781_s4 = inlined_call_operand.vmem [shape: bf16[2,4,4,64], index: 4, kind: output, shape index: {3}]  }
   0x1 LB: > { %s588_s16 = sadd.s32 4294967295, %s624_s15   ;;  %p592_p0 = scmp.ge.s32.totalorder %s624_s15, 1  ;;  %s624_s15 = sphi %s651_s15, %s15_s15  }
   0x2   : > { %p169_p1 = scmp.lt.s32.totalorder %s624_s15, 3 }
   0x4   : > { %p170_p2 = pnand %p592_p0, %p169_p1 }
   0x5   : > { %p210_p3 = scmp.lt.s32.totalorder (!%p170_p2), %s588_s16, 1 }
   0x6   : > { %173 = sbr.rel (%p170_p2) target bundleno = 66 (0x42), region = 24 }
   0xb   : > { %s783_s16 = smov (!%p210_p3, %s588_s16), 1  ;;  %vm282_vm0 = vcmask 1040384   ;;  %vm405_vm1 = vcmask 517120   ;;  %vm306_vm2 = vcmask 1042432  }
   0xc   : > { %s659_s17 = sshll.u32 %s783_s16, 3 }
   0xd   : > { %s214_s20 = scalar_lea.vmem %s777_s0, %s659_s17  ;;  %s219_s23 = scalar_lea.vmem %s778_s1, %s659_s17 }
   0xe   : > { %v235_v0 = vld [vmem:[%s214_s20] sm:$0x3]  ;;  %v236_v1 = vld [vmem:[%s214_s20 + $0x2] sm:$0x3]  ;;  %v237_v2 = vld [vmem:[%s214_s20 + $0x4] sm:$0x3]  ;;  %s224_s26 = scalar_lea.vmem %s779_s2, %s659_s17  ;;  %s229_s29 = scalar_lea.vmem %s780_s3, %s659_s17 }
   0xf   : > { %v239_v3 = vunpack.c.l.bf16 %v235_v0  ;;  %v240_v4 = vunpack.c.l.bf16 %v236_v1  ;;  %v241_v5 = vunpack.c.l.bf16 %v237_v2  ;;  %v238_v6 = vld [vmem:[%s214_s20 + $0x6] sm:$0x3]  ;;  %s234_s6 = scalar_lea.vmem %s781_s4, %s659_s17 }
  0x10   : > { %v242_v7 = vunpack.c.l.bf16 %v238_v6 }
  0x11   : > { %v243_v8 = vmul.f32 0.25, %v239_v3  ;;  %v246_v9 = vmul.f32 0.75, %v239_v3  ;;  %v247_v10 = vmul.f32 0.75, %v240_v4  ;;  %v244_v11 = vmul.f32 0.25, %v240_v4 }
  0x12   : > { %v248_v12 = vmul.f32 0.75, %v241_v5  ;;  %v245_v13 = vmul.f32 0.25, %v241_v5  ;;  %v249_v14 = vmul.f32 0.75, %v242_v7  ;;  %v254_v20 = vmul.f32 0.25, %v242_v7 }
  0x13   : > { %v250_v15 = vadd.f32 %v246_v9, %v243_v8  ;;  %v665_v16 = vadd.f32 %v247_v10, %v243_v8  ;;  %v682_v34 = vadd.f32 %v246_v9, %v244_v11 }
  0x14   : > { %v667_v17 = vadd.f32 %v248_v12, %v244_v11  ;;  %v669_v18 = vadd.f32 %v249_v14, %v245_v13  ;;  %v687_v38 = vadd.f32 %v247_v10, %v245_v13  ;;  %v691_v42 = vadd.f32 %v254_v20, %v248_v12 }
  0x15   : > { %263 = vst [vmem:[#allocation1] ss:$2 sm:$0xff] %v250_v15  ;;  %v315_v21 = vmul.f32 0.75, %v250_v15  ;;  %v316_v22 = vmul.f32 0.75, %v665_v16  ;;  %v693_v46 = vadd.f32 %v254_v20, %v249_v14  ;;  %v714_v6 = vmul.f32 0.75, %v682_v34 }
  0x16   : > { %266 = vst [vmem:[#allocation1 + $0x10] ss:$2 sm:$0xff] %v665_v16  ;;  %v317_v33 = vmul.f32 0.75, %v667_v17  ;;  %v318_v37 = vmul.f32 0.75, %v669_v18  ;;  %v717_v7 = vmul.f32 0.75, %v687_v38  ;;  %v721_v10 = vmul.f32 0.75, %v691_v42 }
  0x17   : > { %269 = vst [vmem:[#allocation1 + $0x20] ss:$2 sm:$0xff] %v667_v17 }
  0x18   : > { %272 = vst [vmem:[#allocation1 + $0x30] ss:$2 sm:$0xff] %v669_v18 }
  0x1c   : > { %v264_v19 = vld.sshfl [vmem:[#allocation1] sm:$0xff pattern:$0x75316420] }
  0x1d   : > { %v274_v23 = vrot.slane %v264_v19, 7  ;;  %287 = vst [vmem:[#allocation1] ss:$2 sm:$0xff] %v250_v15  ;;  %v267_v24 = vld.sshfl [vmem:[#allocation1 + $0x10] sm:$0xff pattern:$0x75316420] }
  0x1e   : > { %v275_v25 = vrot.slane %v267_v24, 7  ;;  %290 = vst [vmem:[#allocation1 + $0x10] ss:$2 sm:$0xff] %v665_v16  ;;  %v270_v26 = vld.sshfl [vmem:[#allocation1 + $0x20] sm:$0xff pattern:$0x75316420] }
  0x1f   : > { %v276_v27 = vrot.slane %v270_v26, 7  ;;  %293 = vst [vmem:[#allocation1 + $0x20] ss:$2 sm:$0xff] %v667_v17  ;;  %v273_v28 = vld.sshfl [vmem:[#allocation1 + $0x30] sm:$0xff pattern:$0x75316420]  ;;  %v283_v29 = vsel %vm282_vm0, %v250_v15, %v274_v23 }
  0x20   : > { %v277_v30 = vrot.slane %v273_v28, 7  ;;  %296 = vst [vmem:[#allocation1 + $0x30] ss:$2 sm:$0xff] %v669_v18  ;;  %v311_v31 = vmul.f32 0.25, %v283_v29  ;;  %v284_v32 = vsel %vm282_vm0, %v665_v16, %v275_v25  ;;  %v388_v28 = vmul.f32 0.75, %v693_v46 }
  0x21   : > { %v312_v35 = vmul.f32 0.25, %v284_v32  ;;  %v285_v36 = vsel %vm282_vm0, %v667_v17, %v276_v27 }
  0x22   : > { %v319_v39 = vadd.f32 %v315_v21, %v311_v31  ;;  %v313_v40 = vmul.f32 0.25, %v285_v36  ;;  %v286_v41 = vsel %vm282_vm0, %v669_v18, %v277_v30 }
  0x23   : > { %v320_v43 = vadd.f32 %v316_v22, %v312_v35  ;;  %v314_v44 = vmul.f32 0.25, %v286_v41 }
  0x24   : > { %v288_v45 = vld.sshfl [vmem:[#allocation1] sm:$0xff pattern:$0x75316420]  ;;  %v321_v47 = vadd.f32 %v317_v33, %v313_v40  ;;  %v401_v50 = vpack.c.bf16 %v319_v39, %v319_v39 }
  0x25   : > { %v298_v48 = vrot.slane %v288_v45, 1  ;;  %335 = vst [vmem:[#allocation1] ss:$2 sm:$0xff] %v682_v34  ;;  %v291_v49 = vld.sshfl [vmem:[#allocation1 + $0x10] sm:$0xff pattern:$0x75316420]  ;;  %v322_v51 = vadd.f32 %v318_v37, %v314_v44  ;;  %v402_v54 = vpack.c.bf16 %v320_v43, %v320_v43 }
  0x26   : > { %v299_v52 = vrot.slane %v291_v49, 1  ;;  %338 = vst [vmem:[#allocation1 + $0x10] ss:$2 sm:$0xff] %v687_v38  ;;  %v294_v53 = vld.sshfl [vmem:[#allocation1 + $0x20] sm:$0xff pattern:$0x75316420]  ;;  %v403_v57 = vpack.c.bf16 %v321_v47, %v321_v47 }
  0x27   : > { %v300_v55 = vrot.slane %v294_v53, 1  ;;  %341 = vst [vmem:[#allocation1 + $0x20] ss:$2 sm:$0xff] %v691_v42  ;;  %v297_v56 = vld.sshfl [vmem:[#allocation1 + $0x30] sm:$0xff pattern:$0x75316420]  ;;  %v307_v58 = vsel %vm306_vm2, %v298_v48, %v250_v15  ;;  %v404_v60 = vpack.c.bf16 %v322_v51, %v322_v51 }
  0x28   : > { %v301_v59 = vrot.slane %v297_v56, 1  ;;  %344 = vst [vmem:[#allocation1 + $0x30] ss:$2 sm:$0xff] %v693_v46  ;;  %v323_v61 = vmul.f32 0.25, %v307_v58  ;;  %v308_v62 = vsel %vm306_vm2, %v299_v52, %v665_v16 }
  0x29   : > { %406 = vst.msk [vmem:[%s219_s23] sm:$0x3] %vm405_vm1, %v401_v50  ;;  %v324_v63 = vmul.f32 0.25, %v308_v62  ;;  %v309_v0 = vsel %vm306_vm2, %v300_v55, %v667_v17 }
  0x2a   : > { %407 = vst.msk [vmem:[%s219_s23 + $0x2] sm:$0x3] %vm405_vm1, %v402_v54  ;;  %v327_v1 = vadd.f32 %v323_v61, %v315_v21  ;;  %v325_v2 = vmul.f32 0.25, %v309_v0  ;;  %v310_v3 = vsel %vm306_vm2, %v301_v59, %v669_v18 }
  0x2b   : > { %408 = vst.msk [vmem:[%s219_s23 + $0x4] sm:$0x3] %vm405_vm1, %v403_v57  ;;  %v328_v4 = vadd.f32 %v324_v63, %v316_v22  ;;  %v326_v5 = vmul.f32 0.25, %v310_v3 }
  0x2c   : > { %409 = vst.msk [vmem:[%s219_s23 + $0x6] sm:$0x3] %vm405_vm1, %v404_v60  ;;  %v336_v8 = vld.sshfl [vmem:[#allocation1] sm:$0xff pattern:$0x75316420]  ;;  %v329_v9 = vadd.f32 %v325_v2, %v317_v33  ;;  %v410_v13 = vpack.c.bf16 %v327_v1, %v327_v1 }
  0x2d   : > { %v346_v11 = vrot.slane %v336_v8, 7  ;;  %358 = vst [vmem:[#allocation1] ss:$2 sm:$0xff] %v682_v34  ;;  %v339_v12 = vld.sshfl [vmem:[#allocation1 + $0x10] sm:$0xff pattern:$0x75316420]  ;;  %v330_v14 = vadd.f32 %v326_v5, %v318_v37  ;;  %v411_v17 = vpack.c.bf16 %v328_v4, %v328_v4 }
  0x2e   : > { %v347_v15 = vrot.slane %v339_v12, 7  ;;  %361 = vst [vmem:[#allocation1 + $0x10] ss:$2 sm:$0xff] %v687_v38  ;;  %v342_v16 = vld.sshfl [vmem:[#allocation1 + $0x20] sm:$0xff pattern:$0x75316420]  ;;  %v412_v20 = vpack.c.bf16 %v329_v9, %v329_v9 }
  0x2f   : > { %v348_v18 = vrot.slane %v342_v16, 7  ;;  %364 = vst [vmem:[#allocation1 + $0x20] ss:$2 sm:$0xff] %v691_v42  ;;  %v345_v19 = vld.sshfl [vmem:[#allocation1 + $0x30] sm:$0xff pattern:$0x75316420]  ;;  %v354_v21 = vsel %vm282_vm0, %v682_v34, %v346_v11  ;;  %v413_v23 = vpack.c.bf16 %v330_v14, %v330_v14 }
  0x30   : > { %v349_v22 = vrot.slane %v345_v19, 7  ;;  %367 = vst [vmem:[#allocation1 + $0x30] ss:$2 sm:$0xff] %v693_v46  ;;  %v381_v24 = vmul.f32 0.25, %v354_v21  ;;  %v355_v25 = vsel %vm282_vm0, %v687_v38, %v347_v15 }
  0x31   : > { %414 = vst.msk [vmem:[%s224_s26] sm:$0x3] %vm405_vm1, %v410_v13  ;;  %v382_v26 = vmul.f32 0.25, %v355_v25  ;;  %v356_v27 = vsel %vm282_vm0, %v691_v42, %v348_v18 }
  0x32   : > { %415 = vst.msk [vmem:[%s224_s26 + $0x2] sm:$0x3] %vm405_vm1, %v411_v17  ;;  %v389_v29 = vadd.f32 %v714_v6, %v381_v24  ;;  %v383_v30 = vmul.f32 0.25, %v356_v27  ;;  %v357_v31 = vsel %vm282_vm0, %v693_v46, %v349_v22 }
  0x33   : > { %416 = vst.msk [vmem:[%s224_s26 + $0x4] sm:$0x3] %vm405_vm1, %v412_v20  ;;  %v390_v32 = vadd.f32 %v717_v7, %v382_v26  ;;  %v384_v33 = vmul.f32 0.25, %v357_v31 }
  0x34   : > { %417 = vst.msk [vmem:[%s224_s26 + $0x6] sm:$0x3] %vm405_vm1, %v413_v23  ;;  %v418_v35 = vpack.c.bf16 %v389_v29, %v389_v29  ;;  %v391_v36 = vadd.f32 %v721_v10, %v383_v30  ;;  %v359_v37 = vld.sshfl [vmem:[#allocation1] sm:$0xff pattern:$0x75316420] }
  0x35   : > { %v419_v39 = vpack.c.bf16 %v390_v32, %v390_v32  ;;  %v392_v40 = vadd.f32 %v388_v28, %v384_v33  ;;  %v369_v41 = vrot.slane %v359_v37, 1  ;;  %v362_v43 = vld.sshfl [vmem:[#allocation1 + $0x10] sm:$0xff pattern:$0x75316420] }
  0x36   : > { %422 = vst.msk [vmem:[%s229_s29] sm:$0x3] %vm405_vm1, %v418_v35  ;;  %v420_v44 = vpack.c.bf16 %v391_v36, %v391_v36  ;;  %v370_v45 = vrot.slane %v362_v43, 1  ;;  %v365_v47 = vld.sshfl [vmem:[#allocation1 + $0x20] sm:$0xff pattern:$0x75316420] }
  0x37   : > { %423 = vst.msk [vmem:[%s229_s29 + $0x2] sm:$0x3] %vm405_vm1, %v419_v39  ;;  %v421_v48 = vpack.c.bf16 %v392_v40, %v392_v40  ;;  %v377_v49 = vsel %vm306_vm2, %v369_v41, %v682_v34  ;;  %v371_v50 = vrot.slane %v365_v47, 1  ;;  %v368_v51 = vld.sshfl [vmem:[#allocation1 + $0x30] sm:$0xff pattern:$0x75316420] }
  0x38   : > { %424 = vst.msk [vmem:[%s229_s29 + $0x4] sm:$0x3] %vm405_vm1, %v420_v44  ;;  %v393_v52 = vmul.f32 0.25, %v377_v49  ;;  %v378_v53 = vsel %vm306_vm2, %v370_v45, %v687_v38  ;;  %v372_v54 = vrot.slane %v368_v51, 1 }
  0x39   : > { %425 = vst.msk [vmem:[%s229_s29 + $0x6] sm:$0x3] %vm405_vm1, %v421_v48  ;;  %v394_v55 = vmul.f32 0.25, %v378_v53  ;;  %v379_v56 = vsel %vm306_vm2, %v371_v50, %v691_v42 }
  0x3a   : > { %v397_v57 = vadd.f32 %v393_v52, %v714_v6  ;;  %v395_v58 = vmul.f32 0.25, %v379_v56  ;;  %v380_v34 = vsel %vm306_vm2, %v372_v54, %v693_v46 }
  0x3b   : > { %v398_v59 = vadd.f32 %v394_v55, %v717_v7  ;;  %v396_v38 = vmul.f32 0.25, %v380_v34 }
  0x3c   : > { %v426_v60 = vpack.c.bf16 %v397_v57, %v397_v57  ;;  %v399_v61 = vadd.f32 %v395_v58, %v721_v10 }
  0x3d   : > { %v427_v62 = vpack.c.bf16 %v398_v59, %v398_v59  ;;  %v400_v63 = vadd.f32 %v396_v38, %v388_v28 }
  0x3e   : > { %430 = vst.msk [vmem:[%s234_s6] sm:$0x3] %vm405_vm1, %v426_v60  ;;  %v428_v42 = vpack.c.bf16 %v399_v61, %v399_v61 }
  0x3f   : > { %431 = vst.msk [vmem:[%s234_s6 + $0x2] sm:$0x3] %vm405_vm1, %v427_v62  ;;  %v429_v0 = vpack.c.bf16 %v400_v63, %v400_v63 }
  0x40   : > { %432 = vst.msk [vmem:[%s234_s6 + $0x4] sm:$0x3] %vm405_vm1, %v428_v42 }
  0x41   : > { %433 = vst.msk [vmem:[%s234_s6 + $0x6] sm:$0x3] %vm405_vm1, %v429_v0 }
  0x42 PF: > { %s15_s15 = sadd.s32 1, %s624_s15  }
  0x43   : > { %p12_p4 = scmp.ge.s32.totalorder %s15_s15, 4  }
  0x45   :  { %14 = sbr.rel (!%p12_p4) target bundleno = 1 (0x1), region = 102 }

// kernel: unet_discriminator_sn.18
= control target key start
LH: loop header
LB: loop body
LE: loop exit
PB: predicated region body
PF: predicated region fallthrough
CT: control target
= control target key end

     0   :  { %vm908_vm2 = vcmask 519168   ;;  %s1759_s1 = inlined_call_operand.vmem [shape: bf16[1152,64], index: 1, kind: input, shape index: {}]   ;;  %s1760_s0 = inlined_call_operand.vmem [shape: bf16[32,1152], index: 0, kind: input, shape index: {}]   ;;  %s1761_s2 = inlined_call_operand.vmem [shape: f32[1,64], index: 2, kind: input, shape index: {}]   ;;  %s1762_s3 = inlined_call_operand.vmem [shape: bf16[32,64], index: 3, kind: input, shape index: {}]   ;;  %s1763_s4 = inlined_call_operand.vmem [shape: bf16[32,64], index: 4, kind: output, shape index: {}]  }
   0x1   :  { %v1302_v0 = vld [vmem:[%s1759_s1 + $0x38] sm:$0xff]  ;;  %v1301_v4 = vld [vmem:[%s1759_s1 + $0x30] sm:$0xff]  ;;  %v1300_v8 = vld [vmem:[%s1759_s1 + $0x28] sm:$0xff] }
   0x2   :  { %v1310_v1 = vld [vmem:[%s1759_s1 + $0x78] sm:$0xff]  ;;  %709 = vmatpush.bf16.msra.mxu0 %v1302_v0  ;;  %v1309_v5 = vld [vmem:[%s1759_s1 + $0x70] sm:$0xff]  ;;  %v1308_v9 = vld [vmem:[%s1759_s1 + $0x68] sm:$0xff] }
   0x3   :  { %v1318_v2 = vld [vmem:[%s1759_s1 + $0xb8] sm:$0xff]  ;;  %728 = vmatpush.bf16.msra.mxu1 %v1310_v1  ;;  %v1317_v6 = vld [vmem:[%s1759_s1 + $0xb0] sm:$0xff]  ;;  %v1316_v10 = vld [vmem:[%s1759_s1 + $0xa8] sm:$0xff] }
   0x4   :  { %v1326_v3 = vld [vmem:[%s1759_s1 + $0xf8] sm:$0xff]  ;;  %747 = vmatpush.bf16.msra.mxu2 %v1318_v2  ;;  %v1325_v7 = vld [vmem:[%s1759_s1 + $0xf0] sm:$0xff]  ;;  %v1324_v11 = vld [vmem:[%s1759_s1 + $0xe8] sm:$0xff] }
   0x5   :  { %766 = vmatpush.bf16.msra.mxu3 %v1326_v3  ;;  %v1299_v12 = vld [vmem:[%s1759_s1 + $0x20] sm:$0xff]  ;;  %v1298_v16 = vld [vmem:[%s1759_s1 + $0x18] sm:$0xff]  ;;  %v1297_v20 = vld [vmem:[%s1759_s1 + $0x10] sm:$0xff] }
   0x6   :  { %710 = vmatpush.bf16.msra.mxu0 %v1301_v4  ;;  %v1307_v13 = vld [vmem:[%s1759_s1 + $0x60] sm:$0xff]  ;;  %v1306_v17 = vld [vmem:[%s1759_s1 + $0x58] sm:$0xff]  ;;  %v1305_v21 = vld [vmem:[%s1759_s1 + $0x50] sm:$0xff] }
   0x7   :  { %729 = vmatpush.bf16.msra.mxu1 %v1309_v5  ;;  %v1315_v14 = vld [vmem:[%s1759_s1 + $0xa0] sm:$0xff]  ;;  %v1314_v18 = vld [vmem:[%s1759_s1 + $0x98] sm:$0xff]  ;;  %v1313_v22 = vld [vmem:[%s1759_s1 + $0x90] sm:$0xff] }
   0x8   :  { %748 = vmatpush.bf16.msra.mxu2 %v1317_v6  ;;  %v1323_v15 = vld [vmem:[%s1759_s1 + $0xe0] sm:$0xff]  ;;  %v1322_v19 = vld [vmem:[%s1759_s1 + $0xd8] sm:$0xff]  ;;  %v1321_v23 = vld [vmem:[%s1759_s1 + $0xd0] sm:$0xff] }
   0x9   :  { %767 = vmatpush.bf16.msra.mxu3 %v1325_v7  ;;  %v1296_v24 = vld [vmem:[%s1759_s1 + $0x8] sm:$0xff]  ;;  %v1295_v28 = vld [vmem:[%s1759_s1] sm:$0xff]  ;;  %v929_v39 = vld [vmem:[%s1760_s0 + $0x2c] sm:$0xf0] }
   0xa   :  { %711 = vmatpush.bf16.msra.mxu0 %v1300_v8  ;;  %v1304_v25 = vld [vmem:[%s1759_s1 + $0x48] sm:$0xff]  ;;  %v1303_v29 = vld [vmem:[%s1759_s1 + $0x40] sm:$0xff]  ;;  %v1334_v40 = vld [vmem:[%s1759_s1 + $0x138] sm:$0xff] }
   0xb   :  { %730 = vmatpush.bf16.msra.mxu1 %v1308_v9  ;;  %v1312_v26 = vld [vmem:[%s1759_s1 + $0x88] sm:$0xff]  ;;  %v1311_v30 = vld [vmem:[%s1759_s1 + $0x80] sm:$0xff]  ;;  %v1342_v41 = vld [vmem:[%s1759_s1 + $0x178] sm:$0xff] }
   0xc   :  { %749 = vmatpush.bf16.msra.mxu2 %v1316_v10  ;;  %v1320_v27 = vld [vmem:[%s1759_s1 + $0xc8] sm:$0xff]  ;;  %v1319_v31 = vld [vmem:[%s1759_s1 + $0xc0] sm:$0xff]  ;;  %v1350_v46 = vld [vmem:[%s1759_s1 + $0x1b8] sm:$0xff] }
   0xd   :  { %768 = vmatpush.bf16.msra.mxu3 %v1324_v11  ;;  %v919_v32 = vld [vmem:[%s1760_s0] sm:$0xf]  ;;  %v1281_v33 = vld [vmem:[%s1760_s0 + $0x20] sm:$0xf0]  ;;  %v921_v35 = vld [vmem:[%s1760_s0 + $0x24] sm:$0xf0] }
   0xe   :  { %712 = vmatpush.bf16.msra.mxu0 %v1299_v12  ;;  %v1277_v34 = vld [vmem:[%s1760_s0 + $0x4] sm:$0xf]  ;;  %v927_v36 = vld [vmem:[%s1760_s0 + $0x8] sm:$0xf]  ;;  %v1282_v37 = vld [vmem:[%s1760_s0 + $0x28] sm:$0xf0]  ;;  %v920_v42 = vor.u32 %v1281_v33, %v919_v32 }
   0xf   :  { %731 = vmatpush.bf16.msra.mxu1 %v1307_v13  ;;  %v1278_v38 = vld [vmem:[%s1760_s0 + $0xc] sm:$0xf]  ;;  %v924_v43 = vor.u32 %v1277_v34, %v921_v35  ;;  %v928_v44 = vor.u32 %v1282_v37, %v927_v36  ;;  %v1358_v47 = vld [vmem:[%s1759_s1 + $0x1f8] sm:$0xff]  ;;  %v1333_v48 = vld [vmem:[%s1759_s1 + $0x130] sm:$0xff] }
  0x10   :  { %750 = vmatpush.bf16.msra.mxu2 %v1315_v14  ;;  %v932_v45 = vor.u32 %v1278_v38, %v929_v39  ;;  %v1341_v49 = vld [vmem:[%s1759_s1 + $0x170] sm:$0xff]  ;;  %v1332_v52 = vld [vmem:[%s1759_s1 + $0x128] sm:$0xff]  ;;  %v1331_v56 = vld [vmem:[%s1759_s1 + $0x120] sm:$0xff] }
  0x11   :  { %769 = vmatpush.bf16.msra.mxu3 %v1323_v15  ;;  %v1349_v50 = vld [vmem:[%s1759_s1 + $0x1b0] sm:$0xff]  ;;  %v1340_v53 = vld [vmem:[%s1759_s1 + $0x168] sm:$0xff]  ;;  %v1339_v57 = vld [vmem:[%s1759_s1 + $0x160] sm:$0xff] }
  0x12   :  { %713 = vmatpush.bf16.msra.mxu0 %v1298_v16  ;;  %v1357_v51 = vld [vmem:[%s1759_s1 + $0x1f0] sm:$0xff]  ;;  %v1348_v54 = vld [vmem:[%s1759_s1 + $0x1a8] sm:$0xff]  ;;  %v1347_v58 = vld [vmem:[%s1759_s1 + $0x1a0] sm:$0xff] }
  0x13   :  { %732 = vmatpush.bf16.msra.mxu1 %v1306_v17  ;;  %v1356_v55 = vld [vmem:[%s1759_s1 + $0x1e8] sm:$0xff]  ;;  %v1355_v59 = vld [vmem:[%s1759_s1 + $0x1e0] sm:$0xff]  ;;  %v957_v63 = vld [vmem:[%s1760_s0 + $0x6c] sm:$0xf0] }
  0x14   :  { %751 = vmatpush.bf16.msra.mxu2 %v1314_v18  ;;  %v955_v60 = vld [vmem:[%s1760_s0 + $0x48] sm:$0xf]  ;;  %v1290_v61 = vld [vmem:[%s1760_s0 + $0x68] sm:$0xf0]  ;;  %v963_v0 = vld [vmem:[%s1760_s0 + $0x50] sm:$0xf] }
  0x15   :  { %770 = vmatpush.bf16.msra.mxu3 %v1322_v19  ;;  %v1286_v62 = vld [vmem:[%s1760_s0 + $0x4c] sm:$0xf]  ;;  %v1291_v1 = vld [vmem:[%s1760_s0 + $0x70] sm:$0xf0]  ;;  %v965_v3 = vld [vmem:[%s1760_s0 + $0x74] sm:$0xf0]  ;;  %v956_v6 = vor.u32 %v1290_v61, %v955_v60 }
  0x16   :  { %714 = vmatpush.bf16.msra.mxu0 %v1297_v20  ;;  %v1287_v2 = vld [vmem:[%s1760_s0 + $0x54] sm:$0xf]  ;;  %v1330_v4 = vld [vmem:[%s1759_s1 + $0x118] sm:$0xff]  ;;  %v960_v7 = vor.u32 %v1286_v62, %v957_v63  ;;  %v964_v8 = vor.u32 %v1291_v1, %v963_v0  ;;  %v1328_v16 = vld [vmem:[%s1759_s1 + $0x108] sm:$0xff] }
  0x17   :  { %733 = vmatpush.bf16.msra.mxu1 %v1305_v21  ;;  %v1338_v5 = vld [vmem:[%s1759_s1 + $0x158] sm:$0xff]  ;;  %v968_v9 = vor.u32 %v1287_v2, %v965_v3  ;;  %v1329_v12 = vld [vmem:[%s1759_s1 + $0x110] sm:$0xff]  ;;  %v1336_v17 = vld [vmem:[%s1759_s1 + $0x148] sm:$0xff] }
  0x18   :  { %752 = vmatpush.bf16.msra.mxu2 %v1313_v22  ;;  %v1346_v10 = vld [vmem:[%s1759_s1 + $0x198] sm:$0xff]  ;;  %v1337_v13 = vld [vmem:[%s1759_s1 + $0x150] sm:$0xff]  ;;  %v1344_v18 = vld [vmem:[%s1759_s1 + $0x188] sm:$0xff] }
  0x19   :  { %771 = vmatpush.bf16.msra.mxu3 %v1321_v23  ;;  %v1354_v11 = vld [vmem:[%s1759_s1 + $0x1d8] sm:$0xff]  ;;  %v1345_v14 = vld [vmem:[%s1759_s1 + $0x190] sm:$0xff]  ;;  %v1352_v19 = vld [vmem:[%s1759_s1 + $0x1c8] sm:$0xff] }
  0x1a   :  { %715 = vmatpush.bf16.msra.mxu0 %v1296_v24  ;;  %v1353_v15 = vld [vmem:[%s1759_s1 + $0x1d0] sm:$0xff]  ;;  %v1327_v20 = vld [vmem:[%s1759_s1 + $0x100] sm:$0xff]  ;;  %v1364_v38 = vld [vmem:[%s1759_s1 + $0x228] sm:$0xff] }
  0x1b   :  { %734 = vmatpush.bf16.msra.mxu1 %v1304_v25  ;;  %v1335_v21 = vld [vmem:[%s1759_s1 + $0x140] sm:$0xff]  ;;  %v935_v24 = vld [vmem:[%s1760_s0 + $0x10] sm:$0xf]  ;;  %v1283_v25 = vld [vmem:[%s1760_s0 + $0x30] sm:$0xf0] }
  0x1c   :  { %753 = vmatpush.bf16.msra.mxu2 %v1312_v26  ;;  %v1343_v22 = vld [vmem:[%s1759_s1 + $0x180] sm:$0xff]  ;;  %v1366_v26 = vld [vmem:[%s1759_s1 + $0x238] sm:$0xff]  ;;  %v936_v33 = vor.u32 %v1283_v25, %v935_v24  ;;  %v1365_v37 = vld [vmem:[%s1759_s1 + $0x230] sm:$0xff] }
  0x1d   :  { %772 = vmatpush.bf16.msra.mxu3 %v1320_v27  ;;  %v1351_v23 = vld [vmem:[%s1759_s1 + $0x1c0] sm:$0xff]  ;;  %v1279_v27 = vld [vmem:[%s1760_s0 + $0x14] sm:$0xf] }
  0x1e   :  { %716 = vmatpush.bf16.msra.mxu0 %v1295_v28  ;;  %v937_v28 = vld [vmem:[%s1760_s0 + $0x34] sm:$0xf0]  ;;  %v945_v32 = vld [vmem:[%s1760_s0 + $0x3c] sm:$0xf0] }
  0x1f   :  { %735 = vmatpush.bf16.msra.mxu1 %v1303_v29  ;;  %v943_v29 = vld [vmem:[%s1760_s0 + $0x18] sm:$0xf]  ;;  %v940_v34 = vor.u32 %v1279_v27, %v937_v28  ;;  %v1363_v39 = vld [vmem:[%s1759_s1 + $0x220] sm:$0xff] }
  0x20   :  { %754 = vmatpush.bf16.msra.mxu2 %v1311_v30  ;;  %v1284_v30 = vld [vmem:[%s1760_s0 + $0x38] sm:$0xf0] }
  0x21   :  { %773 = vmatpush.bf16.msra.mxu3 %v1319_v31  ;;  %717 = vmatmul.bf16.vlgmr.msra.gmra.mxu0 %v920_v42  ;;  %v1280_v31 = vld [vmem:[%s1760_s0 + $0x1c] sm:$0xf]  ;;  %v944_v35 = vor.u32 %v1284_v30, %v943_v29 }
  0x22   :  { %785 = vmatpush.bf16.msrb.mxu0 %v1334_v40  ;;  %736 = vmatmul.bf16.vlgmr.msra.gmra.mxu1 %v924_v43  ;;  %v948_v36 = vor.u32 %v1280_v31, %v945_v32  ;;  %v971_v40 = vld [vmem:[%s1760_s0 + $0x58] sm:$0xf]  ;;  %v1288_v42 = vld [vmem:[%s1760_s0 + $0x5c] sm:$0xf]  ;;  %v973_v43 = vld [vmem:[%s1760_s0 + $0x7c] sm:$0xf0] }
  0x23   :  { %804 = vmatpush.bf16.msrb.mxu1 %v1342_v41  ;;  %755 = vmatmul.bf16.vlgmr.msra.gmra.mxu2 %v928_v44  ;;  %v1292_v41 = vld [vmem:[%s1760_s0 + $0x78] sm:$0xf0]  ;;  %v979_v44 = vld [vmem:[%s1760_s0 + $0x60] sm:$0xf] }
  0x24   :  { %774 = vmatmul.bf16.vlgmr.msra.gmra.mxu3 %v932_v45  ;;  %823 = vmatpush.bf16.msrb.mxu2 %v1350_v46  ;;  %v1293_v45 = vld [vmem:[%s1760_s0 + $0x80] sm:$0xf0] }
  0x25   :  { %842 = vmatpush.bf16.msrb.mxu3 %v1358_v47  ;;  %v1289_v46 = vld [vmem:[%s1760_s0 + $0x64] sm:$0xf]  ;;  %v981_v47 = vld [vmem:[%s1760_s0 + $0x84] sm:$0xf0] }
  0x26   :  { %786 = vmatpush.bf16.msrb.mxu0 %v1333_v48  ;;  %v1362_v48 = vld [vmem:[%s1759_s1 + $0x218] sm:$0xff] }
  0x27   :  { %805 = vmatpush.bf16.msrb.mxu1 %v1341_v49  ;;  %v972_v49 = vor.u32 %v1292_v41, %v971_v40 }
  0x28   :  { %824 = vmatpush.bf16.msrb.mxu2 %v1349_v50  ;;  %v976_v50 = vor.u32 %v1288_v42, %v973_v43 }
  0x29   :  { %843 = vmatpush.bf16.msrb.mxu3 %v1357_v51  ;;  %v980_v51 = vor.u32 %v1293_v45, %v979_v44 }
  0x2a   :  { %787 = vmatpush.bf16.msrb.mxu0 %v1332_v52  ;;  %v984_v52 = vor.u32 %v1289_v46, %v981_v47 }
  0x2b   :  { %806 = vmatpush.bf16.msrb.mxu1 %v1340_v53  ;;  %v1361_v53 = vld [vmem:[%s1759_s1 + $0x210] sm:$0xff] }
  0x2c   :  { %825 = vmatpush.bf16.msrb.mxu2 %v1348_v54  ;;  %v1360_v54 = vld [vmem:[%s1759_s1 + $0x208] sm:$0xff] }
  0x2d   :  { %844 = vmatpush.bf16.msrb.mxu3 %v1356_v55  ;;  %v1359_v55 = vld [vmem:[%s1759_s1 + $0x200] sm:$0xff] }
  0x2e   :  { %788 = vmatpush.bf16.msrb.mxu0 %v1331_v56  ;;  %v951_v56 = vld [vmem:[%s1760_s0 + $0x20] sm:$0xf] }
  0x2f   :  { %807 = vmatpush.bf16.msrb.mxu1 %v1339_v57  ;;  %v1285_v57 = vld [vmem:[%s1760_s0 + $0x40] sm:$0xf0] }
  0x30   :  { %826 = vmatpush.bf16.msrb.mxu2 %v1347_v58  ;;  %v987_v58 = vld [vmem:[%s1760_s0 + $0x68] sm:$0xf]  ;;  %v952_v60 = vor.u32 %v1285_v57, %v951_v56  ;;  %v1368_v56 = vld [vmem:[%s1762_s3] sm:$0xff]  }
  0x31   :  { %845 = vmatpush.bf16.msrb.mxu3 %v1355_v59  ;;  %722 = vmatmul.bf16.gmra.mxu0 %v956_v6  ;;  %v1294_v59 = vld [vmem:[%s1760_s0 + $0x88] sm:$0xf0] }
  0x32   :  { %789 = vmatpush.bf16.msrb.mxu0 %v1330_v4  ;;  %741 = vmatmul.bf16.gmra.mxu1 %v960_v7  ;;  %v988_v61 = vor.u32 %v1294_v59, %v987_v58  ;;  %v1375_v57 = vld [vmem:[%s1762_s3 + $0x8] sm:$0xff]  }
  0x33   :  { %808 = vmatpush.bf16.msrb.mxu1 %v1338_v5  ;;  %760 = vmatmul.bf16.gmra.mxu2 %v964_v8 }
  0x34   :  { %779 = vmatmul.bf16.gmra.mxu3 %v968_v9  ;;  %827 = vmatpush.bf16.msrb.mxu2 %v1346_v10 }
  0x35   :  { %846 = vmatpush.bf16.msrb.mxu3 %v1354_v11 }
  0x36   :  { %790 = vmatpush.bf16.msrb.mxu0 %v1329_v12 }
  0x37   :  { %809 = vmatpush.bf16.msrb.mxu1 %v1337_v13 }
  0x38   :  { %828 = vmatpush.bf16.msrb.mxu2 %v1345_v14 }
  0x39   :  { %847 = vmatpush.bf16.msrb.mxu3 %v1353_v15 }
  0x3a   :  { %791 = vmatpush.bf16.msrb.mxu0 %v1328_v16  ;;  %v1384_v16 = vld [vmem:[%s1761_s2] ss:$0 sm:$0xff] }
  0x3b   :  { %810 = vmatpush.bf16.msrb.mxu1 %v1336_v17 }
  0x3c   :  { %829 = vmatpush.bf16.msrb.mxu2 %v1344_v18 }
  0x3d   :  { %848 = vmatpush.bf16.msrb.mxu3 %v1352_v19 }
  0x3e   :  { %792 = vmatpush.bf16.msrb.mxu0 %v1327_v20 }
  0x3f   :  { %811 = vmatpush.bf16.msrb.mxu1 %v1335_v21 }
  0x40   :  { %830 = vmatpush.bf16.msrb.mxu2 %v1343_v22 }
  0x41   :  { %849 = vmatpush.bf16.msrb.mxu3 %v1351_v23  ;;  %793 = vmatmul.bf16.vlgmr.msrb.gmra.mxu0 %v936_v33 }
  0x42   :  { %861 = vmatpush.bf16.msra.mxu0 %v1366_v26  ;;  %812 = vmatmul.bf16.vlgmr.msrb.gmra.mxu1 %v940_v34 }
  0x43   :  { %1376 = vmatpush.bf16.msra.mxu1 %v1366_v26  ;;  %831 = vmatmul.bf16.vlgmr.msrb.gmra.mxu2 %v944_v35 }
  0x44   :  { %850 = vmatmul.bf16.vlgmr.msrb.gmra.mxu3 %v948_v36 }
  0x46   :  { %862 = vmatpush.bf16.msra.mxu0 %v1365_v37 }
  0x47   :  { %1377 = vmatpush.bf16.msra.mxu1 %v1365_v37 }
  0x4a   :  { %863 = vmatpush.bf16.msra.mxu0 %v1364_v38 }
  0x4b   :  { %1378 = vmatpush.bf16.msra.mxu1 %v1364_v38 }
  0x4e   :  { %864 = vmatpush.bf16.msra.mxu0 %v1363_v39 }
  0x4f   :  { %1379 = vmatpush.bf16.msra.mxu1 %v1363_v39 }
  0x51   :  { %798 = vmatmul.bf16.gmra.mxu0 %v972_v49 }
  0x52   :  { %865 = vmatpush.bf16.msra.mxu0 %v1362_v48  ;;  %817 = vmatmul.bf16.gmra.mxu1 %v976_v50 }
  0x53   :  { %1380 = vmatpush.bf16.msra.mxu1 %v1362_v48  ;;  %836 = vmatmul.bf16.gmra.mxu2 %v980_v51 }
  0x54   :  { %855 = vmatmul.bf16.gmra.mxu3 %v984_v52 }
  0x56   :  { %866 = vmatpush.bf16.msra.mxu0 %v1361_v53 }
  0x57   :  { %1381 = vmatpush.bf16.msra.mxu1 %v1361_v53 }
  0x5a   :  { %867 = vmatpush.bf16.msra.mxu0 %v1360_v54 }
  0x5b   :  { %1382 = vmatpush.bf16.msra.mxu1 %v1360_v54 }
  0x5e   :  { %868 = vmatpush.bf16.msra.mxu0 %v1359_v55 }
  0x5f   :  { %1383 = vmatpush.bf16.msra.mxu1 %v1359_v55 }
  0x61   :  { %869 = vmatmul.bf16.vlgmr.msra.gmra.mxu0 %v952_v60 }
  0x62   :  { %874 = vmatmul.bf16.vlgmr.msra.gmra.mxu1 %v988_v61 }
  0x9e   :  { %v718_v62 = vpop.f32.mrf.mxu0 }
  0x9f   :  { %v737_v63 = vpop.f32.mrf.mxu1  ;;  %v719_v21 = vadd.f32 %v1384_v16, %v718_v62 }
  0xa1   :  { %v738_v23 = vadd.f32 %v737_v63, %v719_v21  ;;  %v1374_v21 = vunpack.c.h.bf16 %v1375_v57 }
  0xa6   :  { %v756_v0 = vpop.f32.mrf.mxu2  ;;  %v720_v2 = vpop.f32.mrf.mxu0 }
  0xa7   :  { %v775_v1 = vpop.f32.mrf.mxu3  ;;  %v739_v3 = vpop.f32.mrf.mxu1  ;;  %v757_v25 = vadd.f32 %v756_v0, %v738_v23  ;;  %v721_v28 = vadd.f32 %v1384_v16, %v720_v2  ;;  %v1369_v2 = vunpack.c.l.bf16 %v1368_v56 }
  0xa9   :  { %v776_v33 = vadd.f32 %v775_v1, %v757_v25  ;;  %v740_v35 = vadd.f32 %v739_v3, %v721_v28  ;;  %v1373_v3 = vunpack.c.l.bf16 %v1375_v57 }
  0xae   :  { %v758_v4 = vpop.f32.mrf.mxu2  ;;  %v723_v6 = vpop.f32.mrf.mxu0 }
  0xaf   :  { %v777_v5 = vpop.f32.mrf.mxu3  ;;  %v742_v7 = vpop.f32.mrf.mxu1  ;;  %v724_v22 = vadd.f32 %v1384_v16, %v723_v6  ;;  %v759_v39 = vadd.f32 %v758_v4, %v740_v35 }
  0xb1   :  { %v743_v24 = vadd.f32 %v742_v7, %v724_v22  ;;  %v778_v46 = vadd.f32 %v777_v5, %v759_v39 }
  0xb6   :  { %v761_v8 = vpop.f32.mrf.mxu2  ;;  %v725_v10 = vpop.f32.mrf.mxu0 }
  0xb7   :  { %v780_v9 = vpop.f32.mrf.mxu3  ;;  %v744_v11 = vpop.f32.mrf.mxu1  ;;  %v762_v26 = vadd.f32 %v761_v8, %v743_v24  ;;  %v726_v29 = vadd.f32 %v1384_v16, %v725_v10 }
  0xb9   :  { %v781_v34 = vadd.f32 %v780_v9, %v762_v26  ;;  %v745_v36 = vadd.f32 %v744_v11, %v726_v29 }
  0xbe   :  { %v763_v12 = vpop.f32.mrf.mxu2  ;;  %v794_v14 = vpop.f32.mrf.mxu0 }
  0xbf   :  { %v782_v13 = vpop.f32.mrf.mxu3  ;;  %v813_v15 = vpop.f32.mrf.mxu1  ;;  %v795_v37 = vadd.f32 %v794_v14, %v776_v33  ;;  %v764_v40 = vadd.f32 %v763_v12, %v745_v36 }
  0xc1   :  { %v814_v44 = vadd.f32 %v813_v15, %v795_v37  ;;  %v783_v47 = vadd.f32 %v782_v13, %v764_v40 }
  0xc6   :  { %v832_v17 = vpop.f32.mrf.mxu2  ;;  %v796_v19 = vpop.f32.mrf.mxu0 }
  0xc7   :  { %v851_v18 = vpop.f32.mrf.mxu3  ;;  %v815_v20 = vpop.f32.mrf.mxu1  ;;  %v833_v48 = vadd.f32 %v832_v17, %v814_v44  ;;  %v797_v50 = vadd.f32 %v796_v19, %v778_v46  ;;  %v1370_v19 = vunpack.c.h.bf16 %v1368_v56 }
  0xc9   :  { %v852_v53 = vadd.f32 %v851_v18, %v833_v48  ;;  %v816_v58 = vadd.f32 %v815_v20, %v797_v50 }
  0xce   :  { %v834_v27 = vpop.f32.mrf.mxu2  ;;  %v799_v30 = vpop.f32.mrf.mxu0 }
  0xcf   :  { %v818_v31 = vpop.f32.mrf.mxu1  ;;  %v853_v32 = vpop.f32.mrf.mxu3  ;;  %v800_v38 = vadd.f32 %v799_v30, %v781_v34  ;;  %v835_v0 = vadd.f32 %v834_v27, %v816_v58 }
  0xd1   :  { %v819_v45 = vadd.f32 %v818_v31, %v800_v38  ;;  %v854_v11 = vadd.f32 %v853_v32, %v835_v0 }
  0xd6   :  { %v837_v41 = vpop.f32.mrf.mxu2  ;;  %v801_v42 = vpop.f32.mrf.mxu0 }
  0xd7   :  { %v820_v43 = vpop.f32.mrf.mxu1  ;;  %v838_v49 = vadd.f32 %v837_v41, %v819_v45  ;;  %v856_v51 = vpop.f32.mrf.mxu3  ;;  %v802_v52 = vadd.f32 %v801_v42, %v783_v47 }
  0xd9   :  { %v857_v54 = vadd.f32 %v856_v51, %v838_v49  ;;  %v821_v59 = vadd.f32 %v820_v43, %v802_v52 }
  0xde   :  { %v839_v55 = vpop.f32.mrf.mxu2  ;;  %v870_v60 = vpop.f32.mrf.mxu0 }
  0xdf   :  { %v875_v61 = vpop.f32.mrf.mxu1  ;;  %v871_v62 = vadd.f32 %v870_v60, %v852_v53  ;;  %v840_v1 = vadd.f32 %v839_v55, %v821_v59  ;;  %v858_v8 = vpop.f32.mrf.mxu3 }
  0xe0   :  { %v876_v63 = vadd.f32 %v875_v61, %v857_v54 }
  0xe1   :  { %vm880_vm0 = vcmp.ge.f32.partialorder %v871_v62, 0.0  ;;  %v884_v4 = vmul.f32 0.2, %v871_v62  ;;  %v859_v12 = vadd.f32 %v858_v8, %v840_v1 }
  0xe2   :  { %vm882_vm1 = vcmp.ge.f32.partialorder %v876_v63, 0.0  ;;  %v886_v5 = vmul.f32 0.2, %v876_v63 }
  0xe3   :  { %v888_v6 = vsel %vm880_vm0, %v871_v62, %v884_v4 }
  0xe4   :  { %v890_v7 = vsel %vm882_vm1, %v876_v63, %v886_v5  ;;  %v900_v9 = vadd.f32 %v1369_v2, %v888_v6 }
  0xe5   :  { %v902_v10 = vadd.f32 %v1373_v3, %v890_v7 }
  0xe6   :  { %v904_v13 = vpack.c.bf16 %v900_v9, %v900_v9  ;;  %v872_v15 = vpop.f32.mrf.mxu0 }
  0xe7   :  { %v906_v14 = vpack.c.bf16 %v902_v10, %v902_v10  ;;  %v877_v16 = vpop.f32.mrf.mxu1  ;;  %v873_v17 = vadd.f32 %v872_v15, %v854_v11 }
  0xe8   :  { %v878_v18 = vadd.f32 %v877_v16, %v859_v12  ;;  %909 = vst.msk [vmem:[%s1763_s4] sm:$0xf] %vm908_vm2, %v904_v13 }
  0xe9   :  { %911 = vst.msk [vmem:[%s1763_s4 + $0x8] sm:$0xf] %vm908_vm2, %v906_v14  ;;  %vm881_vm3 = vcmp.ge.f32.partialorder %v873_v17, 0.0  ;;  %v885_v20 = vmul.f32 0.2, %v873_v17 }
  0xea   :  { %vm883_vm4 = vcmp.ge.f32.partialorder %v878_v18, 0.0  ;;  %v887_v22 = vmul.f32 0.2, %v878_v18 }
  0xeb   :  { %v889_v23 = vsel %vm881_vm3, %v873_v17, %v885_v20 }
  0xec   :  { %v901_v24 = vadd.f32 %v1370_v19, %v889_v23  ;;  %v891_v25 = vsel %vm883_vm4, %v878_v18, %v887_v22 }
  0xed   :  { %v903_v26 = vadd.f32 %v1374_v21, %v891_v25 }
  0xee   :  { %v905_v27 = vpack.c.bf16 %v901_v24, %v901_v24 }
  0xef   :  { %v907_v28 = vpack.c.bf16 %v903_v26, %v903_v26 }
  0xf0   :  { %910 = vst.msk [vmem:[%s1763_s4 + $0x4] sm:$0xf] %vm908_vm2, %v905_v27 }
  0xf1   :  { %912 = vst.msk [vmem:[%s1763_s4 + $0xc] sm:$0xf] %vm908_vm2, %v907_v28 }

// kernel: unet_discriminator_sn.20
= control target key start
LH: loop header
LB: loop body
LE: loop exit
PB: predicated region body
PF: predicated region fallthrough
CT: control target
= control target key end

     0   :  { %vm558_vm0 = vcmask 523264   ;;  %vm940_vm2 = vcmask 257024   ;;  %s1939_s1 = inlined_call_operand.vmem [shape: bf16[576,32], index: 1, kind: input, shape index: {}]   ;;  %s1940_s2 = inlined_call_operand.vmem [shape: f32[1,32], index: 2, kind: input, shape index: {}]   ;;  %s1941_s0 = inlined_call_operand.vmem [shape: bf16[128,576], index: 0, kind: input, shape index: {}]   ;;  %s1942_s3 = inlined_call_operand.vmem [shape: bf16[128,32], index: 3, kind: input, shape index: {}]   ;;  %s1943_s4 = inlined_call_operand.vmem [shape: bf16[128,32], index: 4, kind: output, shape index: {}]  }
   0x1   :  { %v1320_v0 = vld [vmem:[%s1939_s1 + $0x38] sm:$0xff]  ;;  %v1319_v1 = vld [vmem:[%s1939_s1 + $0x30] sm:$0xff]  ;;  %v1318_v2 = vld [vmem:[%s1939_s1 + $0x28] sm:$0xff] }
   0x2   :  { %1388 = vmatpush.bf16.msra.mxu1 %v1320_v0  ;;  %1389 = vmatpush.bf16.msra.mxu2 %v1320_v0  ;;  %v1317_v3 = vld [vmem:[%s1939_s1 + $0x20] sm:$0xff]  ;;  %v1316_v4 = vld [vmem:[%s1939_s1 + $0x18] sm:$0xff]  ;;  %v1315_v5 = vld [vmem:[%s1939_s1 + $0x10] sm:$0xff] }
   0x3   :  { %1390 = vmatpush.bf16.msra.mxu3 %v1320_v0  ;;  %583 = vmatpush.bf16.msra.mxu0 %v1320_v0  ;;  %v1314_v6 = vld [vmem:[%s1939_s1 + $0x8] sm:$0xff]  ;;  %v1313_v7 = vld [vmem:[%s1939_s1] sm:$0xff]  ;;  %v1003_v8 = vld [vmem:[%s1941_s0 + $0x50] sm:$0xf] }
   0x4   :  { %v1285_v9 = vld [vmem:[%s1941_s0 + $0x60] sm:$0xf0]  ;;  %v1043_v10 = vld [vmem:[%s1941_s0 + $0xa0] sm:$0xf]  ;;  %v1295_v11 = vld [vmem:[%s1941_s0 + $0xb0] sm:$0xf0] }
   0x5   :  { %v1083_v12 = vld [vmem:[%s1941_s0 + $0xf0] sm:$0xf]  ;;  %v1305_v13 = vld [vmem:[%s1941_s0 + $0x100] sm:$0xf0]  ;;  %v963_v14 = vld [vmem:[%s1941_s0] sm:$0xf]  ;;  %v1004_v18 = vor.u32 %v1285_v9, %v1003_v8  ;;  %v1044_v19 = vor.u32 %v1295_v11, %v1043_v10 }
   0x6   :  { %1391 = vmatpush.bf16.msra.mxu1 %v1319_v1  ;;  %1392 = vmatpush.bf16.msra.mxu2 %v1319_v1  ;;  %v1275_v15 = vld [vmem:[%s1941_s0 + $0x10] sm:$0xf0]  ;;  %v1336_v16 = vld [vmem:[%s1939_s1 + $0xb8] sm:$0xff]  ;;  %v1084_v20 = vor.u32 %v1305_v13, %v1083_v12  ;;  %v1334_v28 = vld [vmem:[%s1939_s1 + $0xa8] sm:$0xff] }
   0x7   :  { %1393 = vmatpush.bf16.msra.mxu3 %v1319_v1  ;;  %584 = vmatpush.bf16.msra.mxu0 %v1319_v1  ;;  %v1328_v17 = vld [vmem:[%s1939_s1 + $0x78] sm:$0xff]  ;;  %v964_v21 = vor.u32 %v1275_v15, %v963_v14  ;;  %v1335_v24 = vld [vmem:[%s1939_s1 + $0xb0] sm:$0xff]  ;;  %v1326_v29 = vld [vmem:[%s1939_s1 + $0x68] sm:$0xff] }
   0x8   :  { %v1344_v22 = vld [vmem:[%s1939_s1 + $0xf8] sm:$0xff]  ;;  %v1327_v25 = vld [vmem:[%s1939_s1 + $0x70] sm:$0xff]  ;;  %v1342_v30 = vld [vmem:[%s1939_s1 + $0xe8] sm:$0xff] }
   0x9   :  { %v1348_v23 = vld [vmem:[%s1939_s1 + $0x118] sm:$0xff]  ;;  %v1343_v26 = vld [vmem:[%s1939_s1 + $0xf0] sm:$0xff]  ;;  %v1346_v31 = vld [vmem:[%s1939_s1 + $0x108] sm:$0xff] }
   0xa   :  { %1394 = vmatpush.bf16.msra.mxu1 %v1318_v2  ;;  %1395 = vmatpush.bf16.msra.mxu2 %v1318_v2  ;;  %v1347_v27 = vld [vmem:[%s1939_s1 + $0x110] sm:$0xff]  ;;  %v1333_v32 = vld [vmem:[%s1939_s1 + $0xa0] sm:$0xff]  ;;  %v1023_v35 = vld [vmem:[%s1941_s0 + $0x78] sm:$0xf] }
   0xb   :  { %1396 = vmatpush.bf16.msra.mxu3 %v1318_v2  ;;  %585 = vmatpush.bf16.msra.mxu0 %v1318_v2  ;;  %v1325_v33 = vld [vmem:[%s1939_s1 + $0x60] sm:$0xff]  ;;  %v1290_v36 = vld [vmem:[%s1941_s0 + $0x88] sm:$0xf0]  ;;  %v1063_v37 = vld [vmem:[%s1941_s0 + $0xc8] sm:$0xf] }
   0xc   :  { %v1341_v34 = vld [vmem:[%s1939_s1 + $0xe0] sm:$0xff]  ;;  %v1300_v38 = vld [vmem:[%s1941_s0 + $0xd8] sm:$0xf0]  ;;  %v1103_v39 = vld [vmem:[%s1941_s0 + $0x118] sm:$0xf]  ;;  %v1024_v46 = vor.u32 %v1290_v36, %v1023_v35 }
   0xd   :  { %v1310_v40 = vld [vmem:[%s1941_s0 + $0x128] sm:$0xf0]  ;;  %v983_v41 = vld [vmem:[%s1941_s0 + $0x28] sm:$0xf]  ;;  %v1280_v42 = vld [vmem:[%s1941_s0 + $0x38] sm:$0xf0]  ;;  %v1064_v47 = vor.u32 %v1300_v38, %v1063_v37 }
   0xe   :  { %1397 = vmatpush.bf16.msra.mxu1 %v1317_v3  ;;  %1398 = vmatpush.bf16.msra.mxu2 %v1317_v3  ;;  %v1345_v43 = vld [vmem:[%s1939_s1 + $0x100] sm:$0xff]  ;;  %v1332_v44 = vld [vmem:[%s1939_s1 + $0x98] sm:$0xff]  ;;  %v1104_v48 = vor.u32 %v1310_v40, %v1103_v39  ;;  %v984_v49 = vor.u32 %v1280_v42, %v983_v41  ;;  %v1331_v51 = vld [vmem:[%s1939_s1 + $0x90] sm:$0xff] }
   0xf   :  { %1399 = vmatpush.bf16.msra.mxu3 %v1317_v3  ;;  %586 = vmatpush.bf16.msra.mxu0 %v1317_v3  ;;  %v1324_v45 = vld [vmem:[%s1939_s1 + $0x58] sm:$0xff]  ;;  %v1323_v52 = vld [vmem:[%s1939_s1 + $0x50] sm:$0xff]  ;;  %v1330_v54 = vld [vmem:[%s1939_s1 + $0x88] sm:$0xff] }
  0x10   :  { %v1340_v50 = vld [vmem:[%s1939_s1 + $0xd8] sm:$0xff]  ;;  %v1339_v53 = vld [vmem:[%s1939_s1 + $0xd0] sm:$0xff]  ;;  %v1322_v55 = vld [vmem:[%s1939_s1 + $0x48] sm:$0xff] }
  0x11   :  { %v1338_v56 = vld [vmem:[%s1939_s1 + $0xc8] sm:$0xff]  ;;  %v1329_v57 = vld [vmem:[%s1939_s1 + $0x80] sm:$0xff]  ;;  %v965_v61 = vld [vmem:[%s1941_s0 + $0x14] sm:$0xf0] }
  0x12   :  { %1400 = vmatpush.bf16.msra.mxu1 %v1316_v4  ;;  %1401 = vmatpush.bf16.msra.mxu2 %v1316_v4  ;;  %v1321_v58 = vld [vmem:[%s1939_s1 + $0x40] sm:$0xff]  ;;  %v971_v62 = vld [vmem:[%s1941_s0 + $0x8] sm:$0xf]  ;;  %v1276_v63 = vld [vmem:[%s1941_s0 + $0x18] sm:$0xf0] }
  0x13   :  { %1402 = vmatpush.bf16.msra.mxu3 %v1316_v4  ;;  %587 = vmatpush.bf16.msra.mxu0 %v1316_v4  ;;  %v1337_v59 = vld [vmem:[%s1939_s1 + $0xc0] sm:$0xff]  ;;  %v1274_v0 = vld [vmem:[%s1941_s0 + $0xc] sm:$0xf]  ;;  %v979_v2 = vld [vmem:[%s1941_s0 + $0x10] sm:$0xf] }
  0x14   :  { %v1273_v60 = vld [vmem:[%s1941_s0 + $0x4] sm:$0xf]  ;;  %v973_v1 = vld [vmem:[%s1941_s0 + $0x1c] sm:$0xf0]  ;;  %v1278_v8 = vld [vmem:[%s1941_s0 + $0x2c] sm:$0xf] }
  0x15   :  { %v1277_v3 = vld [vmem:[%s1941_s0 + $0x20] sm:$0xf0]  ;;  %v968_v4 = vor.u32 %v1273_v60, %v965_v61  ;;  %v985_v9 = vld [vmem:[%s1941_s0 + $0x3c] sm:$0xf0]  ;;  %v991_v10 = vld [vmem:[%s1941_s0 + $0x30] sm:$0xf] }
  0x16   :  { %1403 = vmatpush.bf16.msra.mxu1 %v1315_v5  ;;  %1404 = vmatpush.bf16.msra.mxu2 %v1315_v5  ;;  %v1281_v11 = vld [vmem:[%s1941_s0 + $0x40] sm:$0xf0]  ;;  %v1279_v12 = vld [vmem:[%s1941_s0 + $0x34] sm:$0xf]  ;;  %v993_v13 = vld [vmem:[%s1941_s0 + $0x44] sm:$0xf0] }
  0x17   :  { %1405 = vmatpush.bf16.msra.mxu3 %v1315_v5  ;;  %588 = vmatpush.bf16.msra.mxu0 %v1315_v5  ;;  %v972_v5 = vor.u32 %v1276_v63, %v971_v62  ;;  %v999_v14 = vld [vmem:[%s1941_s0 + $0x38] sm:$0xf]  ;;  %v1282_v15 = vld [vmem:[%s1941_s0 + $0x48] sm:$0xf0]  ;;  %v1291_v35 = vld [vmem:[%s1941_s0 + $0x90] sm:$0xf0] }
  0x18   :  { %v1289_v36 = vld [vmem:[%s1941_s0 + $0x84] sm:$0xf]  ;;  %v1033_v37 = vld [vmem:[%s1941_s0 + $0x94] sm:$0xf0]  ;;  %v1039_v38 = vld [vmem:[%s1941_s0 + $0x88] sm:$0xf] }
  0x19   :  { %v1292_v39 = vld [vmem:[%s1941_s0 + $0x98] sm:$0xf0]  ;;  %v1036_v42 = vor.u32 %v1289_v36, %v1033_v37  ;;  %v1299_v60 = vld [vmem:[%s1941_s0 + $0xd4] sm:$0xf]  ;;  %v1073_v61 = vld [vmem:[%s1941_s0 + $0xe4] sm:$0xf0] }
  0x1a   :  { %1406 = vmatpush.bf16.msra.mxu1 %v1314_v6  ;;  %1407 = vmatpush.bf16.msra.mxu2 %v1314_v6  ;;  %v1079_v62 = vld [vmem:[%s1941_s0 + $0xd8] sm:$0xf]  ;;  %v1302_v63 = vld [vmem:[%s1941_s0 + $0xe8] sm:$0xf0] }
  0x1b   :  { %1408 = vmatpush.bf16.msra.mxu3 %v1314_v6  ;;  %589 = vmatpush.bf16.msra.mxu0 %v1314_v6  ;;  %v976_v6 = vor.u32 %v1274_v0, %v973_v1 }
  0x1e   :  { %1409 = vmatpush.bf16.msra.mxu1 %v1313_v7  ;;  %1410 = vmatpush.bf16.msra.mxu2 %v1313_v7 }
  0x1f   :  { %1411 = vmatpush.bf16.msra.mxu3 %v1313_v7  ;;  %590 = vmatpush.bf16.msra.mxu0 %v1313_v7  ;;  %v980_v7 = vor.u32 %v1277_v3, %v979_v2  ;;  %v1076_v2 = vor.u32 %v1299_v60, %v1073_v61  ;;  %v1080_v3 = vor.u32 %v1302_v63, %v1079_v62  ;;  %v1350_v62 = vld [vmem:[%s1942_s3] sm:$0xff]  }
  0x21   :  { %601 = vmatmul.bf16.vlgmr.msra.gmra.mxu1 %v1004_v18  ;;  %611 = vmatmul.bf16.vlgmr.msra.gmra.mxu2 %v1044_v19  ;;  %v996_v18 = vor.u32 %v1279_v12, %v993_v13  ;;  %v1000_v19 = vor.u32 %v1282_v15, %v999_v14 }
  0x22   :  { %681 = vmatpush.bf16.msrb.mxu2 %v1336_v16  ;;  %632 = vmatpush.bf16.msrb.mxu1 %v1328_v17  ;;  %v988_v16 = vor.u32 %v1278_v8, %v985_v9  ;;  %v992_v17 = vor.u32 %v1281_v11, %v991_v10  ;;  %v1304_v8 = vld [vmem:[%s1941_s0 + $0xfc] sm:$0xf]  ;;  %v1093_v9 = vld [vmem:[%s1941_s0 + $0x10c] sm:$0xf0]  ;;  %v1099_v10 = vld [vmem:[%s1941_s0 + $0x100] sm:$0xf] }
  0x23   :  { %621 = vmatmul.bf16.vlgmr.msra.gmra.mxu3 %v1084_v20  ;;  %591 = vmatmul.bf16.vlgmr.msra.gmra.mxu0 %v964_v21  ;;  %v1283_v20 = vld [vmem:[%s1941_s0 + $0x54] sm:$0xf]  ;;  %v1005_v21 = vld [vmem:[%s1941_s0 + $0x64] sm:$0xf0]  ;;  %v1096_v15 = vor.u32 %v1304_v8, %v1093_v9 }
  0x24   :  { %730 = vmatpush.bf16.msrb.mxu3 %v1344_v22  ;;  %783 = vmatpush.bf16.msrb.mxu0 %v1348_v23  ;;  %v1011_v22 = vld [vmem:[%s1941_s0 + $0x58] sm:$0xf]  ;;  %v1286_v23 = vld [vmem:[%s1941_s0 + $0x68] sm:$0xf0]  ;;  %v1307_v11 = vld [vmem:[%s1941_s0 + $0x110] sm:$0xf0] }
  0x26   :  { %682 = vmatpush.bf16.msrb.mxu2 %v1335_v24  ;;  %633 = vmatpush.bf16.msrb.mxu1 %v1327_v25  ;;  %v1284_v24 = vld [vmem:[%s1941_s0 + $0x5c] sm:$0xf]  ;;  %v1013_v25 = vld [vmem:[%s1941_s0 + $0x6c] sm:$0xf0] }
  0x28   :  { %731 = vmatpush.bf16.msrb.mxu3 %v1343_v26  ;;  %784 = vmatpush.bf16.msrb.mxu0 %v1347_v27  ;;  %v1019_v26 = vld [vmem:[%s1941_s0 + $0x60] sm:$0xf]  ;;  %v1287_v27 = vld [vmem:[%s1941_s0 + $0x70] sm:$0xf0] }
  0x2a   :  { %683 = vmatpush.bf16.msrb.mxu2 %v1334_v28  ;;  %634 = vmatpush.bf16.msrb.mxu1 %v1326_v29  ;;  %v1008_v28 = vor.u32 %v1283_v20, %v1005_v21  ;;  %v1012_v29 = vor.u32 %v1286_v23, %v1011_v22 }
  0x2c   :  { %732 = vmatpush.bf16.msrb.mxu3 %v1342_v30  ;;  %785 = vmatpush.bf16.msrb.mxu0 %v1346_v31  ;;  %v1016_v30 = vor.u32 %v1284_v24, %v1013_v25  ;;  %v1020_v31 = vor.u32 %v1287_v27, %v1019_v26  ;;  %v1308_v25 = vld [vmem:[%s1941_s0 + $0x11c] sm:$0xf]  ;;  %v1105_v26 = vld [vmem:[%s1941_s0 + $0x12c] sm:$0xf0]  ;;  %v1111_v27 = vld [vmem:[%s1941_s0 + $0x120] sm:$0xf] }
  0x2d   :  { %v1108_v36 = vor.u32 %v1308_v25, %v1105_v26 }
  0x2e   :  { %684 = vmatpush.bf16.msrb.mxu2 %v1333_v32  ;;  %635 = vmatpush.bf16.msrb.mxu1 %v1325_v33  ;;  %v1288_v32 = vld [vmem:[%s1941_s0 + $0x7c] sm:$0xf]  ;;  %v1025_v33 = vld [vmem:[%s1941_s0 + $0x8c] sm:$0xf0] }
  0x2f   :  { %v1028_v40 = vor.u32 %v1288_v32, %v1025_v33  ;;  %v1312_v32 = vld [vmem:[%s1941_s0 + $0x138] sm:$0xf0] }
  0x30   :  { %733 = vmatpush.bf16.msrb.mxu3 %v1341_v34  ;;  %786 = vmatpush.bf16.msrb.mxu0 %v1345_v43  ;;  %v1031_v34 = vld [vmem:[%s1941_s0 + $0x80] sm:$0xf]  ;;  %v1040_v43 = vor.u32 %v1292_v39, %v1039_v38 }
  0x31   :  { %606 = vmatmul.bf16.gmra.mxu1 %v1024_v46  ;;  %616 = vmatmul.bf16.gmra.mxu2 %v1064_v47  ;;  %v1032_v41 = vor.u32 %v1291_v35, %v1031_v34  ;;  %v1051_v46 = vld [vmem:[%s1941_s0 + $0xa8] sm:$0xf]  ;;  %v1296_v47 = vld [vmem:[%s1941_s0 + $0xb8] sm:$0xf0] }
  0x32   :  { %685 = vmatpush.bf16.msrb.mxu2 %v1332_v44  ;;  %636 = vmatpush.bf16.msrb.mxu1 %v1324_v45  ;;  %v1293_v44 = vld [vmem:[%s1941_s0 + $0xa4] sm:$0xf]  ;;  %v1045_v45 = vld [vmem:[%s1941_s0 + $0xb4] sm:$0xf0] }
  0x33   :  { %626 = vmatmul.bf16.gmra.mxu3 %v1104_v48  ;;  %596 = vmatmul.bf16.gmra.mxu0 %v984_v49  ;;  %v1294_v48 = vld [vmem:[%s1941_s0 + $0xac] sm:$0xf]  ;;  %v1053_v49 = vld [vmem:[%s1941_s0 + $0xbc] sm:$0xf0] }
  0x34   :  { %734 = vmatpush.bf16.msrb.mxu3 %v1340_v50  ;;  %v1059_v50 = vld [vmem:[%s1941_s0 + $0xb0] sm:$0xf] }
  0x36   :  { %686 = vmatpush.bf16.msrb.mxu2 %v1331_v51  ;;  %637 = vmatpush.bf16.msrb.mxu1 %v1323_v52  ;;  %v1297_v51 = vld [vmem:[%s1941_s0 + $0xc0] sm:$0xf0]  ;;  %v1048_v52 = vor.u32 %v1293_v44, %v1045_v45 }
  0x38   :  { %735 = vmatpush.bf16.msrb.mxu3 %v1339_v53  ;;  %v1052_v53 = vor.u32 %v1296_v47, %v1051_v46 }
  0x3a   :  { %687 = vmatpush.bf16.msrb.mxu2 %v1330_v54  ;;  %638 = vmatpush.bf16.msrb.mxu1 %v1322_v55  ;;  %v1056_v54 = vor.u32 %v1294_v48, %v1053_v49  ;;  %v1060_v55 = vor.u32 %v1297_v51, %v1059_v50 }
  0x3c   :  { %736 = vmatpush.bf16.msrb.mxu3 %v1338_v56  ;;  %v1298_v56 = vld [vmem:[%s1941_s0 + $0xcc] sm:$0xf] }
  0x3e   :  { %688 = vmatpush.bf16.msrb.mxu2 %v1329_v57  ;;  %639 = vmatpush.bf16.msrb.mxu1 %v1321_v58  ;;  %v1065_v57 = vld [vmem:[%s1941_s0 + $0xdc] sm:$0xf0]  ;;  %v1071_v58 = vld [vmem:[%s1941_s0 + $0xd0] sm:$0xf] }
  0x3f   :  { %v1068_v0 = vor.u32 %v1298_v56, %v1065_v57 }
  0x40   :  { %737 = vmatpush.bf16.msrb.mxu3 %v1337_v59  ;;  %v1301_v59 = vld [vmem:[%s1941_s0 + $0xe0] sm:$0xf0] }
  0x41   :  { %640 = vmatmul.bf16.vlgmr.msrb.gmra.mxu1 %v968_v4  ;;  %689 = vmatmul.bf16.vlgmr.msrb.gmra.mxu2 %v972_v5  ;;  %v1072_v1 = vor.u32 %v1301_v59, %v1071_v58  ;;  %v1303_v4 = vld [vmem:[%s1941_s0 + $0xf4] sm:$0xf]  ;;  %v1085_v5 = vld [vmem:[%s1941_s0 + $0x104] sm:$0xf0] }
  0x42   :  { %v1088_v12 = vor.u32 %v1303_v4, %v1085_v5 }
  0x43   :  { %738 = vmatmul.bf16.vlgmr.msrb.gmra.mxu3 %v976_v6  ;;  %1265 = vmatmul.msk.bf16.vlgmr.msrb.gmra.mxu0 %vm558_vm0, %v980_v7  ;;  %v1091_v6 = vld [vmem:[%s1941_s0 + $0xf8] sm:$0xf]  ;;  %v1306_v7 = vld [vmem:[%s1941_s0 + $0x108] sm:$0xf0] }
  0x44   :  { %v1092_v13 = vor.u32 %v1306_v7, %v1091_v6 }
  0x51   :  { %645 = vmatmul.bf16.gmra.mxu1 %v988_v16  ;;  %694 = vmatmul.bf16.gmra.mxu2 %v992_v17  ;;  %v1100_v16 = vor.u32 %v1307_v11, %v1099_v10 }
  0x53   :  { %743 = vmatmul.bf16.gmra.mxu3 %v996_v18  ;;  %1266 = vmatmul.msk.bf16.gmra.mxu0 %vm558_vm0, %v1000_v19  ;;  %v1774_v18 = vld [vmem:[%s1940_s2] ss:$0 sm:$0xff] }
  0x61   :  { %650 = vmatmul.bf16.gmra.mxu1 %v1008_v28  ;;  %699 = vmatmul.bf16.gmra.mxu2 %v1012_v29  ;;  %v1311_v28 = vld [vmem:[%s1941_s0 + $0x130] sm:$0xf0]  ;;  %v1309_v29 = vld [vmem:[%s1941_s0 + $0x124] sm:$0xf] }
  0x62   :  { %v1112_v37 = vor.u32 %v1311_v28, %v1111_v27 }
  0x63   :  { %748 = vmatmul.bf16.gmra.mxu3 %v1016_v30  ;;  %1267 = vmatmul.msk.bf16.gmra.mxu0 %vm558_vm0, %v1020_v31  ;;  %v1113_v30 = vld [vmem:[%s1941_s0 + $0x134] sm:$0xf0]  ;;  %v1119_v31 = vld [vmem:[%s1941_s0 + $0x128] sm:$0xf] }
  0x71   :  { %655 = vmatmul.bf16.gmra.mxu1 %v1028_v40  ;;  %704 = vmatmul.bf16.gmra.mxu2 %v1032_v41  ;;  %v1116_v40 = vor.u32 %v1309_v29, %v1113_v30  ;;  %v1120_v41 = vor.u32 %v1312_v32, %v1119_v31  ;;  %v1381_v31 = vld [vmem:[%s1942_s3 + $0x8] sm:$0xff]  }
  0x73   :  { %753 = vmatmul.bf16.gmra.mxu3 %v1036_v42  ;;  %1268 = vmatmul.msk.bf16.gmra.mxu0 %vm558_vm0, %v1040_v43 }
  0x81   :  { %660 = vmatmul.bf16.gmra.mxu1 %v1048_v52  ;;  %709 = vmatmul.bf16.gmra.mxu2 %v1052_v53 }
  0x83   :  { %758 = vmatmul.bf16.gmra.mxu3 %v1056_v54  ;;  %1269 = vmatmul.msk.bf16.gmra.mxu0 %vm558_vm0, %v1060_v55 }
  0x91   :  { %665 = vmatmul.bf16.gmra.mxu1 %v1068_v0  ;;  %714 = vmatmul.bf16.gmra.mxu2 %v1072_v1 }
  0x93   :  { %763 = vmatmul.bf16.gmra.mxu3 %v1076_v2  ;;  %1270 = vmatmul.msk.bf16.gmra.mxu0 %vm558_vm0, %v1080_v3  ;;  %v1351_v2 = vunpack.c.l.bf16 %v1350_v62 }
  0x9e   :  { %v1768_v14 = vpop.f32.mrf.mxu1 }
  0xa0   :  { %v592_v17 = vpop.f32.mrf.mxu0 }
  0xa1   :  { %670 = vmatmul.bf16.gmra.mxu1 %v1088_v12  ;;  %719 = vmatmul.bf16.gmra.mxu2 %v1092_v13  ;;  %v593_v55 = vadd.f32 %v1774_v18, %v592_v17  ;;  %v1352_v17 = vunpack.c.h.bf16 %v1350_v62 }
  0xa3   :  { %768 = vmatmul.bf16.gmra.mxu3 %v1096_v15  ;;  %1271 = vmatmul.msk.bf16.gmra.mxu0 %vm558_vm0, %v1100_v16 }
  0xa4   :  { %v612_v19 = vpop.f32.mrf.mxu2 }
  0xa5   :  { %v1777_v20 = vadd.f32 %v1774_v18, %v612_v19 }
  0xa6   :  { %v622_v21 = vpop.f32.mrf.mxu3  ;;  %v1782_v23 = vpop.f32.mrf.mxu1 }
  0xa7   :  { %v1780_v22 = vadd.f32 %v1774_v18, %v622_v21 }
  0xa8   :  { %v594_v24 = vpop.f32.mrf.mxu0 }
  0xa9   :  { %v595_v0 = vadd.f32 %v1774_v18, %v594_v24 }
  0xac   :  { %v614_v33 = vpop.f32.mrf.mxu2 }
  0xad   :  { %v1809_v34 = vadd.f32 %v1774_v18, %v614_v33 }
  0xae   :  { %v624_v35 = vpop.f32.mrf.mxu3  ;;  %v1814_v39 = vpop.f32.mrf.mxu1 }
  0xaf   :  { %v1812_v38 = vadd.f32 %v1774_v18, %v624_v35 }
  0xb0   :  { %v597_v42 = vpop.f32.mrf.mxu0 }
  0xb1   :  { %675 = vmatmul.bf16.gmra.mxu1 %v1108_v36  ;;  %724 = vmatmul.bf16.gmra.mxu2 %v1112_v37  ;;  %v598_v15 = vadd.f32 %v1774_v18, %v597_v42  ;;  %v1355_v37 = vunpack.c.l.bf16 %v1381_v31 }
  0xb3   :  { %773 = vmatmul.bf16.gmra.mxu3 %v1116_v40  ;;  %1272 = vmatmul.msk.bf16.gmra.mxu0 %vm558_vm0, %v1120_v41 }
  0xb4   :  { %v617_v43 = vpop.f32.mrf.mxu2 }
  0xb5   :  { %v1818_v44 = vadd.f32 %v1774_v18, %v617_v43 }
  0xb6   :  { %v627_v45 = vpop.f32.mrf.mxu3  ;;  %v1823_v47 = vpop.f32.mrf.mxu1 }
  0xb7   :  { %v1821_v46 = vadd.f32 %v1774_v18, %v627_v45 }
  0xb8   :  { %v599_v48 = vpop.f32.mrf.mxu0 }
  0xb9   :  { %v600_v35 = vadd.f32 %v1774_v18, %v599_v48  ;;  %v603_v48 = vadd.f32 %v1774_v18, %v1768_v14  ;;  %v1382_v14 = vld [vmem:[%s1942_s3 + $0x10] sm:$0xff]  }
  0xbc   :  { %v619_v49 = vpop.f32.mrf.mxu2 }
  0xbd   :  { %v1826_v50 = vadd.f32 %v1774_v18, %v619_v49 }
  0xbe   :  { %v629_v51 = vpop.f32.mrf.mxu3  ;;  %v641_v53 = vpop.f32.mrf.mxu1 }
  0xbf   :  { %v1829_v52 = vadd.f32 %v1774_v18, %v629_v51  ;;  %v642_v56 = vadd.f32 %v641_v53, %v593_v55 }
  0xc0   :  { %v788_v54 = vpop.f32.mrf.mxu0 }
  0xc4   :  { %v690_v57 = vpop.f32.mrf.mxu2 }
  0xc5   :  { %v691_v58 = vadd.f32 %v690_v57, %v642_v56 }
  0xc6   :  { %v739_v59 = vpop.f32.mrf.mxu3  ;;  %v643_v60 = vpop.f32.mrf.mxu1 }
  0xc7   :  { %v740_v61 = vadd.f32 %v739_v59, %v691_v58  ;;  %v644_v4 = vadd.f32 %v643_v60, %v595_v0  ;;  %v1356_v58 = vunpack.c.h.bf16 %v1381_v31 }
  0xc8   :  { %v790_v63 = vpop.f32.mrf.mxu0 }
  0xc9   :  { %v789_v1 = vadd.f32 %v788_v54, %v740_v61 }
  0xcb   :  { %vm828_vm1 = vcmp.ge.f32.partialorder %v789_v1, 0.0  ;;  %v844_v3 = vmul.f32 0.2, %v789_v1 }
  0xcc   :  { %v692_v5 = vpop.f32.mrf.mxu2 }
  0xcd   :  { %v860_v6 = vsel %vm828_vm1, %v789_v1, %v844_v3  ;;  %v693_v7 = vadd.f32 %v692_v5, %v644_v4 }
  0xce   :  { %v741_v8 = vpop.f32.mrf.mxu3  ;;  %v908_v9 = vadd.f32 %v1351_v2, %v860_v6  ;;  %v646_v10 = vpop.f32.mrf.mxu1  ;;  %v605_v6 = vadd.f32 %v1774_v18, %v1782_v23  ;;  %v608_v23 = vadd.f32 %v1774_v18, %v1814_v39  ;;  %v1383_v39 = vld [vmem:[%s1942_s3 + $0x18] sm:$0xff]  }
  0xcf   :  { %v742_v11 = vadd.f32 %v741_v8, %v693_v7  ;;  %v647_v21 = vadd.f32 %v646_v10, %v598_v15  ;;  %v1359_v8 = vunpack.c.l.bf16 %v1382_v14 }
  0xd0   :  { %v793_v12 = vpop.f32.mrf.mxu0  ;;  %v924_v13 = vpack.c.bf16 %v908_v9, %v908_v9 }
  0xd1   :  { %v791_v16 = vadd.f32 %v790_v63, %v742_v11 }
  0xd2   :  { %941 = vst.msk [vmem:[%s1943_s4] sm:$0xf] %vm940_vm2, %v924_v13 }
  0xd3   :  { %vm829_vm3 = vcmp.ge.f32.partialorder %v791_v16, 0.0  ;;  %v845_v19 = vmul.f32 0.2, %v791_v16 }
  0xd4   :  { %v695_v24 = vpop.f32.mrf.mxu2 }
  0xd5   :  { %v861_v25 = vsel %vm829_vm3, %v791_v16, %v845_v19  ;;  %v696_v26 = vadd.f32 %v695_v24, %v647_v21 }
  0xd6   :  { %v744_v27 = vpop.f32.mrf.mxu3  ;;  %v909_v28 = vadd.f32 %v1352_v17, %v861_v25  ;;  %v648_v29 = vpop.f32.mrf.mxu1 }
  0xd7   :  { %v745_v30 = vadd.f32 %v744_v27, %v696_v26  ;;  %v649_v41 = vadd.f32 %v648_v29, %v600_v35  ;;  %v1360_v26 = vunpack.c.h.bf16 %v1382_v14 }
  0xd8   :  { %v795_v32 = vpop.f32.mrf.mxu0  ;;  %v925_v33 = vpack.c.bf16 %v909_v28, %v909_v28 }
  0xd9   :  { %v794_v36 = vadd.f32 %v793_v12, %v745_v30 }
  0xda   :  { %942 = vst.msk [vmem:[%s1943_s4 + $0x4] sm:$0xf] %vm940_vm2, %v925_v33 }
  0xdb   :  { %vm830_vm4 = vcmp.ge.f32.partialorder %v794_v36, 0.0  ;;  %v846_v40 = vmul.f32 0.2, %v794_v36 }
  0xdc   :  { %v697_v42 = vpop.f32.mrf.mxu2 }
  0xdd   :  { %v862_v43 = vsel %vm830_vm4, %v794_v36, %v846_v40  ;;  %v698_v45 = vadd.f32 %v697_v42, %v649_v41  ;;  %v610_v41 = vadd.f32 %v1774_v18, %v1823_v47  ;;  %v1364_v47 = vunpack.c.h.bf16 %v1383_v39 }
  0xde   :  { %v746_v49 = vpop.f32.mrf.mxu3  ;;  %v910_v51 = vadd.f32 %v1355_v37, %v862_v43  ;;  %v651_v53 = vpop.f32.mrf.mxu1  ;;  %v1363_v43 = vunpack.c.l.bf16 %v1383_v39 }
  0xdf   :  { %v747_v54 = vadd.f32 %v746_v49, %v698_v45  ;;  %v652_v60 = vadd.f32 %v651_v53, %v603_v48 }
  0xe0   :  { %v798_v55 = vpop.f32.mrf.mxu0  ;;  %v926_v56 = vpack.c.bf16 %v910_v51, %v910_v51 }
  0xe1   :  { %v796_v57 = vadd.f32 %v795_v32, %v747_v54 }
  0xe2   :  { %943 = vst.msk [vmem:[%s1943_s4 + $0x8] sm:$0xf] %vm940_vm2, %v926_v56 }
  0xe3   :  { %vm831_vm5 = vcmp.ge.f32.partialorder %v796_v57, 0.0  ;;  %v847_v59 = vmul.f32 0.2, %v796_v57 }
  0xe4   :  { %v700_v61 = vpop.f32.mrf.mxu2 }
  0xe5   :  { %v863_v62 = vsel %vm831_vm5, %v796_v57, %v847_v59  ;;  %v701_v63 = vadd.f32 %v700_v61, %v652_v60 }
  0xe6   :  { %v749_v0 = vpop.f32.mrf.mxu3  ;;  %v911_v1 = vadd.f32 %v1356_v58, %v863_v62  ;;  %v653_v2 = vpop.f32.mrf.mxu1 }
  0xe7   :  { %v750_v3 = vadd.f32 %v749_v0, %v701_v63  ;;  %v654_v10 = vadd.f32 %v653_v2, %v605_v6 }
  0xe8   :  { %v800_v4 = vpop.f32.mrf.mxu0  ;;  %v927_v5 = vpack.c.bf16 %v911_v1, %v911_v1 }
  0xe9   :  { %v799_v7 = vadd.f32 %v798_v55, %v750_v3 }
  0xea   :  { %944 = vst.msk [vmem:[%s1943_s4 + $0xc] sm:$0xf] %vm940_vm2, %v927_v5 }
  0xeb   :  { %vm832_vm6 = vcmp.ge.f32.partialorder %v799_v7, 0.0  ;;  %v848_v9 = vmul.f32 0.2, %v799_v7 }
  0xec   :  { %v702_v11 = vpop.f32.mrf.mxu2 }
  0xed   :  { %v864_v12 = vsel %vm832_vm6, %v799_v7, %v848_v9  ;;  %v703_v13 = vadd.f32 %v702_v11, %v654_v10 }
  0xee   :  { %v751_v15 = vpop.f32.mrf.mxu3  ;;  %v912_v16 = vadd.f32 %v1359_v8, %v864_v12  ;;  %v656_v17 = vpop.f32.mrf.mxu1 }
  0xef   :  { %v752_v19 = vadd.f32 %v751_v15, %v703_v13  ;;  %v657_v28 = vadd.f32 %v656_v17, %v608_v23 }
  0xf0   :  { %v803_v21 = vpop.f32.mrf.mxu0  ;;  %v928_v24 = vpack.c.bf16 %v912_v16, %v912_v16 }
  0xf1   :  { %v801_v25 = vadd.f32 %v800_v4, %v752_v19  ;;  %v1384_v4 = vld [vmem:[%s1942_s3 + $0x20] sm:$0xff]  }
  0xf2   :  { %945 = vst.msk [vmem:[%s1943_s4 + $0x10] sm:$0xf] %vm940_vm2, %v928_v24  ;;  %v1368_v23 = vunpack.c.h.bf16 %v1384_v4 }
  0xf3   :  { %vm833_vm7 = vcmp.ge.f32.partialorder %v801_v25, 0.0  ;;  %v849_v27 = vmul.f32 0.2, %v801_v25 }
  0xf4   :  { %v705_v29 = vpop.f32.mrf.mxu2 }
  0xf5   :  { %v865_v30 = vsel %vm833_vm7, %v801_v25, %v849_v27  ;;  %v706_v31 = vadd.f32 %v705_v29, %v657_v28 }
  0xf6   :  { %v754_v32 = vpop.f32.mrf.mxu3  ;;  %v913_v33 = vadd.f32 %v1360_v26, %v865_v30  ;;  %v658_v35 = vpop.f32.mrf.mxu1 }
  0xf7   :  { %v755_v36 = vadd.f32 %v754_v32, %v706_v31  ;;  %v659_v49 = vadd.f32 %v658_v35, %v610_v41 }
  0xf8   :  { %v805_v37 = vpop.f32.mrf.mxu0  ;;  %v929_v40 = vpack.c.bf16 %v913_v33, %v913_v33  ;;  %v1385_v33 = vld [vmem:[%s1942_s3 + $0x28] sm:$0xff]  }
  0xf9   :  { %v804_v42 = vadd.f32 %v803_v21, %v755_v36 }
  0xfa   :  { %946 = vst.msk [vmem:[%s1943_s4 + $0x14] sm:$0xf] %vm940_vm2, %v929_v40 }
  0xfb   :  { %vm834_vm8 = vcmp.ge.f32.partialorder %v804_v42, 0.0  ;;  %v850_v45 = vmul.f32 0.2, %v804_v42 }
  0xfc   :  { %v707_v51 = vpop.f32.mrf.mxu2 }
  0xfd   :  { %v866_v53 = vsel %vm834_vm8, %v804_v42, %v850_v45  ;;  %v708_v54 = vadd.f32 %v707_v51, %v659_v49 }
  0xfe   :  { %v756_v55 = vpop.f32.mrf.mxu3  ;;  %v914_v56 = vadd.f32 %v1363_v43, %v866_v53  ;;  %v661_v48 = vpop.f32.mrf.mxu1 }
  0xff   :  { %v757_v57 = vadd.f32 %v756_v55, %v708_v54  ;;  %v662_v61 = vadd.f32 %v661_v48, %v1777_v20  ;;  %v1367_v20 = vunpack.c.l.bf16 %v1384_v4 }
 0x100   :  { %v808_v58 = vpop.f32.mrf.mxu0  ;;  %v930_v59 = vpack.c.bf16 %v914_v56, %v914_v56  ;;  %v1372_v56 = vunpack.c.h.bf16 %v1385_v33 }
 0x101   :  { %v806_v18 = vadd.f32 %v805_v37, %v757_v57 }
 0x102   :  { %947 = vst.msk [vmem:[%s1943_s4 + $0x18] sm:$0xf] %vm940_vm2, %v930_v59 }
 0x103   :  { %vm835_vm9 = vcmp.ge.f32.partialorder %v806_v18, 0.0  ;;  %v851_v60 = vmul.f32 0.2, %v806_v18 }
 0x104   :  { %v710_v62 = vpop.f32.mrf.mxu2 }
 0x105   :  { %v867_v63 = vsel %vm835_vm9, %v806_v18, %v851_v60  ;;  %v711_v0 = vadd.f32 %v710_v62, %v662_v61 }
 0x106   :  { %v759_v1 = vpop.f32.mrf.mxu3  ;;  %v915_v2 = vadd.f32 %v1364_v47, %v867_v63  ;;  %v663_v3 = vpop.f32.mrf.mxu1  ;;  %v1386_v63 = vld [vmem:[%s1942_s3 + $0x30] sm:$0xff]  }
 0x107   :  { %v760_v14 = vadd.f32 %v759_v1, %v711_v0  ;;  %v664_v9 = vadd.f32 %v663_v3, %v1809_v34 }
 0x108   :  { %v810_v5 = vpop.f32.mrf.mxu0  ;;  %v931_v6 = vpack.c.bf16 %v915_v2, %v915_v2  ;;  %v1375_v2 = vunpack.c.l.bf16 %v1386_v63 }
 0x109   :  { %v809_v7 = vadd.f32 %v808_v58, %v760_v14 }
 0x10a   :  { %948 = vst.msk [vmem:[%s1943_s4 + $0x1c] sm:$0xf] %vm940_vm2, %v931_v6 }
 0x10b   :  { %vm836_vm10 = vcmp.ge.f32.partialorder %v809_v7, 0.0  ;;  %v852_v8 = vmul.f32 0.2, %v809_v7 }
 0x10c   :  { %v712_v10 = vpop.f32.mrf.mxu2 }
 0x10d   :  { %v868_v11 = vsel %vm836_vm10, %v809_v7, %v852_v8  ;;  %v713_v12 = vadd.f32 %v712_v10, %v664_v9 }
 0x10e   :  { %v761_v13 = vpop.f32.mrf.mxu3  ;;  %v916_v15 = vadd.f32 %v1367_v20, %v868_v11  ;;  %v666_v16 = vpop.f32.mrf.mxu1 }
 0x10f   :  { %v762_v17 = vadd.f32 %v761_v13, %v713_v12  ;;  %v667_v34 = vadd.f32 %v666_v16, %v1818_v44  ;;  %v1371_v44 = vunpack.c.l.bf16 %v1385_v33  ;;  %v1376_v12 = vunpack.c.h.bf16 %v1386_v63 }
 0x110   :  { %v813_v19 = vpop.f32.mrf.mxu0  ;;  %v932_v21 = vpack.c.bf16 %v916_v15, %v916_v15 }
 0x111   :  { %v811_v24 = vadd.f32 %v810_v5, %v762_v17 }
 0x112   :  { %949 = vst.msk [vmem:[%s1943_s4 + $0x20] sm:$0xf] %vm940_vm2, %v932_v21 }
 0x113   :  { %vm837_vm11 = vcmp.ge.f32.partialorder %v811_v24, 0.0  ;;  %v853_v25 = vmul.f32 0.2, %v811_v24 }
 0x114   :  { %v715_v26 = vpop.f32.mrf.mxu2 }
 0x115   :  { %v869_v27 = vsel %vm837_vm11, %v811_v24, %v853_v25  ;;  %v716_v28 = vadd.f32 %v715_v26, %v667_v34  ;;  %v1387_v25 = vld [vmem:[%s1942_s3 + $0x38] sm:$0xff]  }
 0x116   :  { %v764_v29 = vpop.f32.mrf.mxu3  ;;  %v917_v30 = vadd.f32 %v1368_v23, %v869_v27  ;;  %v668_v31 = vpop.f32.mrf.mxu1 }
 0x117   :  { %v765_v32 = vadd.f32 %v764_v29, %v716_v28  ;;  %v669_v40 = vadd.f32 %v668_v31, %v1826_v50 }
 0x118   :  { %v933_v35 = vpack.c.bf16 %v917_v30, %v917_v30  ;;  %v815_v36 = vpop.f32.mrf.mxu0 }
 0x119   :  { %v814_v39 = vadd.f32 %v813_v19, %v765_v32 }
 0x11a   :  { %950 = vst.msk [vmem:[%s1943_s4 + $0x24] sm:$0xf] %vm940_vm2, %v933_v35 }
 0x11b   :  { %vm838_vm12 = vcmp.ge.f32.partialorder %v814_v39, 0.0  ;;  %v854_v37 = vmul.f32 0.2, %v814_v39 }
 0x11c   :  { %v717_v41 = vpop.f32.mrf.mxu2 }
 0x11d   :  { %v870_v42 = vsel %vm838_vm12, %v814_v39, %v854_v37  ;;  %v718_v43 = vadd.f32 %v717_v41, %v669_v40  ;;  %v1380_v40 = vunpack.c.h.bf16 %v1387_v25 }
 0x11e   :  { %v766_v45 = vpop.f32.mrf.mxu3  ;;  %v918_v49 = vadd.f32 %v1371_v44, %v870_v42  ;;  %v671_v51 = vpop.f32.mrf.mxu1 }
 0x11f   :  { %v767_v53 = vadd.f32 %v766_v45, %v718_v43  ;;  %v672_v50 = vadd.f32 %v671_v51, %v1780_v22 }
 0x120   :  { %v934_v54 = vpack.c.bf16 %v918_v49, %v918_v49  ;;  %v818_v48 = vpop.f32.mrf.mxu0 }
 0x121   :  { %v816_v55 = vadd.f32 %v815_v36, %v767_v53 }
 0x122   :  { %951 = vst.msk [vmem:[%s1943_s4 + $0x28] sm:$0xf] %vm940_vm2, %v934_v54 }
 0x123   :  { %vm839_vm13 = vcmp.ge.f32.partialorder %v816_v55, 0.0  ;;  %v855_v57 = vmul.f32 0.2, %v816_v55 }
 0x124   :  { %v720_v58 = vpop.f32.mrf.mxu2 }
 0x125   :  { %v871_v59 = vsel %vm839_vm13, %v816_v55, %v855_v57  ;;  %v721_v18 = vadd.f32 %v720_v58, %v672_v50 }
 0x126   :  { %v769_v47 = vpop.f32.mrf.mxu3  ;;  %v919_v60 = vadd.f32 %v1372_v56, %v871_v59  ;;  %v673_v61 = vpop.f32.mrf.mxu1 }
 0x127   :  { %v770_v62 = vadd.f32 %v769_v47, %v721_v18  ;;  %v674_v3 = vadd.f32 %v673_v61, %v1812_v38 }
 0x128   :  { %v935_v0 = vpack.c.bf16 %v919_v60, %v919_v60  ;;  %v820_v14 = vpop.f32.mrf.mxu0 }
 0x129   :  { %v819_v1 = vadd.f32 %v818_v48, %v770_v62 }
 0x12a   :  { %952 = vst.msk [vmem:[%s1943_s4 + $0x2c] sm:$0xf] %vm940_vm2, %v935_v0 }
 0x12b   :  { %vm840_vm14 = vcmp.ge.f32.partialorder %v819_v1, 0.0  ;;  %v856_v22 = vmul.f32 0.2, %v819_v1 }
 0x12c   :  { %v722_v4 = vpop.f32.mrf.mxu2 }
 0x12d   :  { %v872_v5 = vsel %vm840_vm14, %v819_v1, %v856_v22  ;;  %v723_v6 = vadd.f32 %v722_v4, %v674_v3 }
 0x12e   :  { %v771_v7 = vpop.f32.mrf.mxu3  ;;  %v920_v20 = vadd.f32 %v1375_v2, %v872_v5  ;;  %v676_v8 = vpop.f32.mrf.mxu1 }
 0x12f   :  { %v772_v9 = vadd.f32 %v771_v7, %v723_v6  ;;  %v677_v38 = vadd.f32 %v676_v8, %v1821_v46  ;;  %v1379_v46 = vunpack.c.l.bf16 %v1387_v25 }
 0x130   :  { %v936_v10 = vpack.c.bf16 %v920_v20, %v920_v20  ;;  %v823_v24 = vpop.f32.mrf.mxu0 }
 0x131   :  { %v821_v11 = vadd.f32 %v820_v14, %v772_v9 }
 0x132   :  { %953 = vst.msk [vmem:[%s1943_s4 + $0x30] sm:$0xf] %vm940_vm2, %v936_v10 }
 0x133   :  { %vm841_vm15 = vcmp.ge.f32.partialorder %v821_v11, 0.0  ;;  %v857_v13 = vmul.f32 0.2, %v821_v11 }
 0x134   :  { %v725_v15 = vpop.f32.mrf.mxu2 }
 0x135   :  { %v873_v16 = vsel %vm841_vm15, %v821_v11, %v857_v13  ;;  %v726_v17 = vadd.f32 %v725_v15, %v677_v38 }
 0x136   :  { %v774_v19 = vpop.f32.mrf.mxu3  ;;  %v921_v21 = vadd.f32 %v1376_v12, %v873_v16  ;;  %v678_v26 = vpop.f32.mrf.mxu1 }
 0x137   :  { %v775_v23 = vadd.f32 %v774_v19, %v726_v17  ;;  %v679_v29 = vadd.f32 %v678_v26, %v1829_v52 }
 0x138   :  { %v937_v34 = vpack.c.bf16 %v921_v21, %v921_v21  ;;  %v825_v44 = vpop.f32.mrf.mxu0 }
 0x139   :  { %v824_v27 = vadd.f32 %v823_v24, %v775_v23 }
 0x13a   :  { %954 = vst.msk [vmem:[%s1943_s4 + $0x34] sm:$0xf] %vm940_vm2, %v937_v34 }
 0x13b   :  { %vm842_vm0 = vcmp.ge.f32.partialorder %v824_v27, 0.0  ;;  %v858_v28 = vmul.f32 0.2, %v824_v27 }
 0x13c   :  { %v727_v30 = vpop.f32.mrf.mxu2 }
 0x13d   :  { %v874_v31 = vsel %vm842_vm0, %v824_v27, %v858_v28  ;;  %v728_v32 = vadd.f32 %v727_v30, %v679_v29 }
 0x13e   :  { %v922_v33 = vadd.f32 %v1379_v46, %v874_v31  ;;  %v776_v35 = vpop.f32.mrf.mxu3 }
 0x13f   :  { %v777_v36 = vadd.f32 %v776_v35, %v728_v32 }
 0x140   :  { %v938_v39 = vpack.c.bf16 %v922_v33, %v922_v33 }
 0x141   :  { %v826_v37 = vadd.f32 %v825_v44, %v777_v36 }
 0x142   :  { %955 = vst.msk [vmem:[%s1943_s4 + $0x38] sm:$0xf] %vm940_vm2, %v938_v39 }
 0x143   :  { %vm843_vm1 = vcmp.ge.f32.partialorder %v826_v37, 0.0  ;;  %v859_v41 = vmul.f32 0.2, %v826_v37 }
 0x145   :  { %v875_v42 = vsel %vm843_vm1, %v826_v37, %v859_v41 }
 0x146   :  { %v923_v43 = vadd.f32 %v1380_v40, %v875_v42 }
 0x148   :  { %v939_v52 = vpack.c.bf16 %v923_v43, %v923_v43 }
 0x14a   :  { %956 = vst.msk [vmem:[%s1943_s4 + $0x3c] sm:$0xf] %vm940_vm2, %v939_v52 }

// kernel: unet_discriminator_sn.21
= control target key start
LH: loop header
LB: loop body
LE: loop exit
PB: predicated region body
PF: predicated region fallthrough
CT: control target
= control target key end

     0   :  { %s778_s15 = smov 0   ;;  %s1104_s0 = inlined_call_operand.vmem [shape: bf16[2,8,8,32], index: 0, kind: input, shape index: {}]   ;;  %s1105_s1 = inlined_call_operand.vmem [shape: bf16[2,8,8,32], index: 1, kind: output, shape index: {0}]   ;;  %s1106_s2 = inlined_call_operand.vmem [shape: bf16[2,8,8,32], index: 2, kind: output, shape index: {1}]   ;;  %s1107_s3 = inlined_call_operand.vmem [shape: bf16[2,8,8,32], index: 3, kind: output, shape index: {2}]   ;;  %s1108_s4 = inlined_call_operand.vmem [shape: bf16[2,8,8,32], index: 4, kind: output, shape index: {3}]  }
   0x1 LB: > { %s696_s16 = sadd.s32 4294967295, %s751_s15   ;;  %p700_p0 = scmp.ge.s32.totalorder %s751_s15, 1  ;;  %s751_s15 = sphi %s778_s15, %s15_s15  }
   0x2   : > { %p169_p1 = scmp.lt.s32.totalorder %s751_s15, 3 }
   0x4   : > { %p170_p2 = pnand %p700_p0, %p169_p1 }
   0x5   : > { %p210_p3 = scmp.lt.s32.totalorder (!%p170_p2), %s696_s16, 1 }
   0x6   : > { %173 = sbr.rel (%p170_p2) target bundleno = 75 (0x4b), region = 24 }
   0xb   : > { %s1110_s16 = smov (!%p210_p3, %s696_s16), 1  ;;  %vm307_vm0 = vcmask 1040384   ;;  %vm485_vm1 = vcmask 257024   ;;  %vm332_vm2 = vcmask 1046528  }
   0xc   : > { %s786_s17 = sshll.u32 %s1110_s16, 5 }
   0xd   : > { %s214_s20 = scalar_lea.vmem %s1104_s0, %s786_s17  ;;  %s873_s23 = scalar_lea.vmem %s1105_s1, %s786_s17 }
   0xe   : > { %v719_v0 = vld [vmem:[%s214_s20] sm:$0xff]   ;;  %v734_v1 = vld [vmem:[%s214_s20 + $0x8] sm:$0xff]   ;;  %v735_v2 = vld [vmem:[%s214_s20 + $0x10] sm:$0xff]   ;;  %s923_s26 = scalar_lea.vmem %s1106_s2, %s786_s17  ;;  %s1002_s29 = scalar_lea.vmem %s1107_s3, %s786_s17 }
   0xf   : > { %v720_v3 = vunpack.c.l.bf16 %v719_v0  ;;  %v721_v4 = vunpack.c.h.bf16 %v719_v0  ;;  %v724_v5 = vunpack.c.l.bf16 %v734_v1  ;;  %v725_v6 = vunpack.c.h.bf16 %v734_v1  ;;  %v792_v7 = vld [vmem:[%s214_s20 + $0x18] sm:$0xff]   ;;  %s1060_s6 = scalar_lea.vmem %s1108_s4, %s786_s17 }
  0x10   : > { %v728_v8 = vunpack.c.l.bf16 %v735_v2  ;;  %v729_v9 = vunpack.c.h.bf16 %v735_v2  ;;  %v732_v10 = vunpack.c.l.bf16 %v792_v7  ;;  %v733_v11 = vunpack.c.h.bf16 %v792_v7 }
  0x11   : > { %v251_v12 = vmul.f32 0.25, %v720_v3  ;;  %v796_v13 = vmul.f32 0.75, %v720_v3  ;;  %v798_v14 = vmul.f32 0.75, %v721_v4  ;;  %v800_v15 = vmul.f32 0.25, %v721_v4 }
  0x12   : > { %v802_v16 = vmul.f32 0.75, %v724_v5  ;;  %v804_v17 = vmul.f32 0.25, %v724_v5  ;;  %v806_v18 = vmul.f32 0.75, %v725_v6  ;;  %v808_v19 = vmul.f32 0.25, %v725_v6 }
  0x13   : > { %v266_v20 = vadd.f32 %v796_v13, %v251_v12  ;;  %v812_v21 = vadd.f32 %v798_v14, %v251_v12  ;;  %v814_v22 = vmul.f32 0.75, %v728_v8  ;;  %v816_v23 = vmul.f32 0.25, %v728_v8 }
  0x14   : > { %v820_v24 = vadd.f32 %v802_v16, %v800_v15  ;;  %v824_v25 = vadd.f32 %v806_v18, %v804_v17  ;;  %v826_v26 = vmul.f32 0.75, %v729_v9  ;;  %v828_v27 = vmul.f32 0.25, %v729_v9 }
  0x15   : > { %v291_v28 = vrot.slane %v266_v20, 7  ;;  %v830_v29 = vmul.f32 0.75, %v266_v20  ;;  %v292_v30 = vrot.slane %v812_v21, 7  ;;  %v834_v31 = vmul.f32 0.75, %v812_v21 }
  0x16   : > { %v293_v32 = vrot.slane %v820_v24, 7  ;;  %v838_v33 = vmul.f32 0.75, %v820_v24  ;;  %v294_v34 = vrot.slane %v824_v25, 7  ;;  %v842_v35 = vmul.f32 0.75, %v824_v25 }
  0x17   : > { %v308_v36 = vsel %vm307_vm0, %v266_v20, %v291_v28  ;;  %v309_v37 = vsel %vm307_vm0, %v812_v21, %v292_v30  ;;  %v849_v38 = vadd.f32 %v814_v22, %v808_v19  ;;  %v853_v39 = vadd.f32 %v826_v26, %v816_v23 }
  0x18   : > { %v341_v40 = vmul.f32 0.25, %v308_v36  ;;  %v342_v41 = vmul.f32 0.25, %v309_v37  ;;  %v310_v42 = vsel %vm307_vm0, %v820_v24, %v293_v32  ;;  %v311_v43 = vsel %vm307_vm0, %v824_v25, %v294_v34 }
  0x19   : > { %v343_v44 = vmul.f32 0.25, %v310_v42  ;;  %v344_v45 = vmul.f32 0.25, %v311_v43  ;;  %v295_v46 = vrot.slane %v849_v38, 7  ;;  %v861_v47 = vmul.f32 0.75, %v849_v38 }
  0x1a   : > { %v357_v48 = vadd.f32 %v830_v29, %v341_v40  ;;  %v358_v49 = vadd.f32 %v834_v31, %v342_v41  ;;  %v296_v50 = vrot.slane %v853_v39, 7  ;;  %v867_v51 = vmul.f32 0.75, %v853_v39 }
  0x1b   : > { %v359_v52 = vadd.f32 %v838_v33, %v343_v44  ;;  %v360_v53 = vadd.f32 %v842_v35, %v344_v45  ;;  %v312_v54 = vsel %vm307_vm0, %v849_v38, %v295_v46  ;;  %v879_v55 = vmul.f32 0.75, %v732_v10 }
  0x1c   : > { %v477_v56 = vpack.c.bf16 %v357_v48, %v357_v48  ;;  %v478_v57 = vpack.c.bf16 %v358_v49, %v358_v49  ;;  %v345_v58 = vmul.f32 0.25, %v312_v54  ;;  %v313_v59 = vsel %vm307_vm0, %v853_v39, %v296_v50 }
  0x1d   : > { %v479_v60 = vpack.c.bf16 %v359_v52, %v359_v52  ;;  %v480_v61 = vpack.c.bf16 %v360_v53, %v360_v53  ;;  %v346_v62 = vmul.f32 0.25, %v313_v59  ;;  %v272_v63 = vadd.f32 %v879_v55, %v828_v27 }
  0x1e   : > { %486 = vst.msk [vmem:[%s873_s23] sm:$0xf] %vm485_vm1, %v477_v56  ;;  %v361_v0 = vadd.f32 %v861_v47, %v345_v58  ;;  %v888_v1 = vmul.f32 0.25, %v732_v10  ;;  %v892_v2 = vmul.f32 0.75, %v733_v11  ;;  %v316_v3 = vrot.slane %v266_v20, 1 }
  0x1f   : > { %487 = vst.msk [vmem:[%s873_s23 + $0x4] sm:$0xf] %vm485_vm1, %v478_v57  ;;  %v362_v4 = vadd.f32 %v867_v51, %v346_v62  ;;  %v297_v5 = vrot.slane %v272_v63, 7  ;;  %v355_v6 = vmul.f32 0.75, %v272_v63  ;;  %v317_v8 = vrot.slane %v812_v21, 1 }
  0x20   : > { %488 = vst.msk [vmem:[%s873_s23 + $0x8] sm:$0xf] %vm485_vm1, %v479_v60  ;;  %v481_v9 = vpack.c.bf16 %v361_v0, %v361_v0  ;;  %v273_v10 = vadd.f32 %v892_v2, %v888_v1  ;;  %v333_v12 = vsel %vm332_vm2, %v316_v3, %v266_v20  ;;  %v318_v28 = vrot.slane %v820_v24, 1 }
  0x21   : > { %489 = vst.msk [vmem:[%s873_s23 + $0xc] sm:$0xf] %vm485_vm1, %v480_v61  ;;  %v482_v30 = vpack.c.bf16 %v362_v4, %v362_v4  ;;  %v314_v32 = vsel %vm307_vm0, %v272_v63, %v297_v5  ;;  %v365_v34 = vmul.f32 0.25, %v333_v12  ;;  %v334_v36 = vsel %vm332_vm2, %v317_v8, %v812_v21 }
  0x22   : > { %490 = vst.msk [vmem:[%s873_s23 + $0x10] sm:$0xf] %vm485_vm1, %v481_v9  ;;  %v347_v37 = vmul.f32 0.25, %v314_v32  ;;  %v298_v40 = vrot.slane %v273_v10, 7  ;;  %v356_v41 = vmul.f32 0.75, %v273_v10  ;;  %v366_v42 = vmul.f32 0.25, %v334_v36 }
  0x23   : > { %491 = vst.msk [vmem:[%s873_s23 + $0x14] sm:$0xf] %vm485_vm1, %v482_v30  ;;  %v373_v20 = vadd.f32 %v365_v34, %v830_v29  ;;  %v335_v43 = vsel %vm332_vm2, %v318_v28, %v820_v24  ;;  %v319_v44 = vrot.slane %v824_v25, 1  ;;  %v320_v45 = vrot.slane %v849_v38, 1 }
  0x24   : > { %v363_v46 = vadd.f32 %v355_v6, %v347_v37  ;;  %v315_v21 = vsel %vm307_vm0, %v273_v10, %v298_v40  ;;  %v374_v48 = vadd.f32 %v366_v42, %v834_v31  ;;  %v367_v29 = vmul.f32 0.25, %v335_v43 }
  0x25   : > { %v348_v49 = vmul.f32 0.25, %v315_v21  ;;  %v494_v50 = vpack.c.bf16 %v373_v20, %v373_v20  ;;  %v336_v24 = vsel %vm332_vm2, %v319_v44, %v824_v25  ;;  %v337_v52 = vsel %vm332_vm2, %v320_v45, %v849_v38 }
  0x26   : > { %v483_v53 = vpack.c.bf16 %v363_v46, %v363_v46  ;;  %v495_v54 = vpack.c.bf16 %v374_v48, %v374_v48  ;;  %v375_v56 = vadd.f32 %v367_v29, %v838_v33  ;;  %v368_v57 = vmul.f32 0.25, %v336_v24 }
  0x27   : > { %v364_v58 = vadd.f32 %v356_v41, %v348_v49  ;;  %502 = vst.msk [vmem:[%s923_s26] sm:$0xf] %vm485_vm1, %v494_v50  ;;  %v369_v31 = vmul.f32 0.25, %v337_v52  ;;  %v321_v59 = vrot.slane %v853_v39, 1  ;;  %v322_v60 = vrot.slane %v272_v63, 1 }
  0x28   : > { %492 = vst.msk [vmem:[%s873_s23 + $0x18] sm:$0xf] %vm485_vm1, %v483_v53  ;;  %v496_v25 = vpack.c.bf16 %v375_v56, %v375_v56  ;;  %v376_v38 = vadd.f32 %v368_v57, %v842_v35  ;;  %v323_v61 = vrot.slane %v273_v10, 1  ;;  %v939_v62 = vadd.f32 %v796_v13, %v800_v15 }
  0x29   : > { %v484_v33 = vpack.c.bf16 %v364_v58, %v364_v58  ;;  %503 = vst.msk [vmem:[%s923_s26 + $0x4] sm:$0xf] %vm485_vm1, %v495_v54  ;;  %v377_v0 = vadd.f32 %v369_v31, %v861_v47  ;;  %v338_v3 = vsel %vm332_vm2, %v321_v59, %v853_v39  ;;  %v339_v4 = vsel %vm332_vm2, %v322_v60, %v272_v63 }
  0x2a   : > { %504 = vst.msk [vmem:[%s923_s26 + $0x8] sm:$0xf] %vm485_vm1, %v496_v25  ;;  %v497_v35 = vpack.c.bf16 %v376_v38, %v376_v38  ;;  %v370_v5 = vmul.f32 0.25, %v338_v3  ;;  %v371_v8 = vmul.f32 0.25, %v339_v4  ;;  %v340_v13 = vsel %vm332_vm2, %v323_v61, %v273_v10 }
  0x2b   : > { %493 = vst.msk [vmem:[%s873_s23 + $0x1c] sm:$0xf] %vm485_vm1, %v484_v33  ;;  %v498_v15 = vpack.c.bf16 %v377_v0, %v377_v0  ;;  %v372_v9 = vmul.f32 0.25, %v340_v13  ;;  %v389_v12 = vrot.slane %v939_v62, 7  ;;  %v954_v47 = vmul.f32 0.75, %v939_v62 }
  0x2c   : > { %505 = vst.msk [vmem:[%s923_s26 + $0xc] sm:$0xf] %vm485_vm1, %v497_v35  ;;  %v378_v39 = vadd.f32 %v370_v5, %v867_v51  ;;  %v379_v63 = vadd.f32 %v371_v8, %v355_v6  ;;  %v961_v28 = vadd.f32 %v798_v14, %v804_v17  ;;  %v965_v10 = vadd.f32 %v802_v16, %v808_v19 }
  0x2d   : > { %506 = vst.msk [vmem:[%s923_s26 + $0x10] sm:$0xf] %vm485_vm1, %v498_v15  ;;  %v380_v30 = vadd.f32 %v372_v9, %v356_v41  ;;  %v405_v32 = vsel %vm307_vm0, %v939_v62, %v389_v12  ;;  %v973_v51 = vadd.f32 %v806_v18, %v816_v23  ;;  %v977_v14 = vadd.f32 %v814_v22, %v828_v27 }
  0x2e   : > { %v499_v17 = vpack.c.bf16 %v378_v39, %v378_v39  ;;  %v500_v6 = vpack.c.bf16 %v379_v63, %v379_v63  ;;  %v437_v16 = vmul.f32 0.25, %v405_v32  ;;  %v390_v19 = vrot.slane %v961_v28, 7 }
  0x2f   : > { %v501_v34 = vpack.c.bf16 %v380_v30, %v380_v30  ;;  %v981_v36 = vmul.f32 0.75, %v961_v28  ;;  %v391_v37 = vrot.slane %v965_v10, 7  ;;  %v985_v18 = vmul.f32 0.75, %v965_v10 }
  0x30   : > { %507 = vst.msk [vmem:[%s923_s26 + $0x14] sm:$0xf] %vm485_vm1, %v499_v17  ;;  %v453_v22 = vadd.f32 %v954_v47, %v437_v16  ;;  %v406_v23 = vsel %vm307_vm0, %v961_v28, %v390_v19  ;;  %v392_v27 = vrot.slane %v973_v51, 7  ;;  %v994_v40 = vmul.f32 0.75, %v973_v51 }
  0x31   : > { %508 = vst.msk [vmem:[%s923_s26 + $0x18] sm:$0xf] %vm485_vm1, %v500_v6  ;;  %v438_v41 = vmul.f32 0.25, %v406_v23  ;;  %v407_v42 = vsel %vm307_vm0, %v965_v10, %v391_v37  ;;  %v393_v20 = vrot.slane %v977_v14, 7  ;;  %v1008_v43 = vmul.f32 0.75, %v977_v14 }
  0x32   : > { %509 = vst.msk [vmem:[%s923_s26 + $0x1c] sm:$0xf] %vm485_vm1, %v501_v34  ;;  %v510_v44 = vpack.c.bf16 %v453_v22, %v453_v22  ;;  %v439_v45 = vmul.f32 0.25, %v407_v42  ;;  %v408_v46 = vsel %vm307_vm0, %v973_v51, %v392_v27  ;;  %v1016_v21 = vadd.f32 %v826_v26, %v888_v1 }
  0x33   : > { %v454_v48 = vadd.f32 %v981_v36, %v438_v41  ;;  %v440_v29 = vmul.f32 0.25, %v408_v46  ;;  %v409_v49 = vsel %vm307_vm0, %v977_v14, %v393_v20  ;;  %v274_v50 = vmul.f32 0.25, %v733_v11 }
  0x34   : > { %518 = vst.msk [vmem:[%s1002_s29] sm:$0xf] %vm485_vm1, %v510_v44  ;;  %v455_v24 = vadd.f32 %v985_v18, %v439_v45  ;;  %v441_v52 = vmul.f32 0.25, %v409_v49  ;;  %v394_v53 = vrot.slane %v1016_v21, 7  ;;  %v1028_v26 = vmul.f32 0.75, %v1016_v21 }
  0x35   : > { %v511_v1 = vpack.c.bf16 %v454_v48, %v454_v48  ;;  %v456_v54 = vadd.f32 %v994_v40, %v440_v29  ;;  %v281_v56 = vadd.f32 %v274_v50, %v879_v55  ;;  %v282_v7 = vadd.f32 %v274_v50, %v892_v2 }
  0x36   : > { %v512_v11 = vpack.c.bf16 %v455_v24, %v455_v24  ;;  %v457_v57 = vadd.f32 %v1008_v43, %v441_v52  ;;  %v410_v58 = vsel %vm307_vm0, %v1016_v21, %v394_v53  ;;  %v413_v31 = vrot.slane %v939_v62, 1 }
  0x37   : > { %519 = vst.msk [vmem:[%s1002_s29 + $0x4] sm:$0xf] %vm485_vm1, %v511_v1  ;;  %v513_v59 = vpack.c.bf16 %v456_v54, %v456_v54  ;;  %v442_v60 = vmul.f32 0.25, %v410_v58  ;;  %v395_v25 = vrot.slane %v281_v56, 7  ;;  %v451_v38 = vmul.f32 0.75, %v281_v56 }
  0x38   : > { %520 = vst.msk [vmem:[%s1002_s29 + $0x8] sm:$0xf] %vm485_vm1, %v512_v11  ;;  %v514_v55 = vpack.c.bf16 %v457_v57, %v457_v57  ;;  %v396_v61 = vrot.slane %v282_v7, 7  ;;  %v452_v2 = vmul.f32 0.75, %v282_v7  ;;  %v429_v33 = vsel %vm332_vm2, %v413_v31, %v939_v62 }
  0x39   : > { %521 = vst.msk [vmem:[%s1002_s29 + $0xc] sm:$0xf] %vm485_vm1, %v513_v59  ;;  %v458_v0 = vadd.f32 %v1028_v26, %v442_v60  ;;  %v411_v3 = vsel %vm307_vm0, %v281_v56, %v395_v25  ;;  %v461_v4 = vmul.f32 0.25, %v429_v33  ;;  %v414_v35 = vrot.slane %v961_v28, 1 }
  0x3a   : > { %522 = vst.msk [vmem:[%s1002_s29 + $0x10] sm:$0xf] %vm485_vm1, %v514_v55  ;;  %v443_v5 = vmul.f32 0.25, %v411_v3  ;;  %v412_v8 = vsel %vm307_vm0, %v282_v7, %v396_v61  ;;  %v415_v13 = vrot.slane %v965_v10, 1  ;;  %v416_v62 = vrot.slane %v973_v51, 1 }
  0x3b   : > { %v515_v15 = vpack.c.bf16 %v458_v0, %v458_v0  ;;  %v444_v9 = vmul.f32 0.25, %v412_v8  ;;  %v469_v12 = vadd.f32 %v461_v4, %v954_v47  ;;  %v430_v39 = vsel %vm332_vm2, %v414_v35, %v961_v28 }
  0x3c   : > { %v459_v63 = vadd.f32 %v451_v38, %v443_v5  ;;  %v462_v30 = vmul.f32 0.25, %v430_v39  ;;  %v431_v32 = vsel %vm332_vm2, %v415_v13, %v965_v10  ;;  %v432_v17 = vsel %vm332_vm2, %v416_v62, %v973_v51 }
  0x3d   : > { %523 = vst.msk [vmem:[%s1002_s29 + $0x14] sm:$0xf] %vm485_vm1, %v515_v15  ;;  %v460_v47 = vadd.f32 %v452_v2, %v444_v9  ;;  %v526_v6 = vpack.c.bf16 %v469_v12, %v469_v12  ;;  %v463_v28 = vmul.f32 0.25, %v431_v32  ;;  %v464_v16 = vmul.f32 0.25, %v432_v17 }
  0x3e   : > { %v516_v19 = vpack.c.bf16 %v459_v63, %v459_v63  ;;  %v470_v34 = vadd.f32 %v462_v30, %v981_v36  ;;  %v417_v37 = vrot.slane %v977_v14, 1  ;;  %v418_v22 = vrot.slane %v1016_v21, 1 }
  0x3f   : > { %v517_v10 = vpack.c.bf16 %v460_v47, %v460_v47  ;;  %534 = vst.msk [vmem:[%s1060_s6] sm:$0xf] %vm485_vm1, %v526_v6  ;;  %v471_v51 = vadd.f32 %v463_v28, %v985_v18  ;;  %v472_v23 = vadd.f32 %v464_v16, %v994_v40  ;;  %v419_v27 = vrot.slane %v281_v56, 1 }
  0x40   : > { %524 = vst.msk [vmem:[%s1002_s29 + $0x18] sm:$0xf] %vm485_vm1, %v516_v19  ;;  %v527_v41 = vpack.c.bf16 %v470_v34, %v470_v34  ;;  %v433_v36 = vsel %vm332_vm2, %v417_v37, %v977_v14  ;;  %v434_v42 = vsel %vm332_vm2, %v418_v22, %v1016_v21  ;;  %v420_v20 = vrot.slane %v282_v7, 1 }
  0x41   : > { %525 = vst.msk [vmem:[%s1002_s29 + $0x1c] sm:$0xf] %vm485_vm1, %v517_v10  ;;  %v528_v44 = vpack.c.bf16 %v471_v51, %v471_v51  ;;  %v529_v45 = vpack.c.bf16 %v472_v23, %v472_v23  ;;  %v465_v18 = vmul.f32 0.25, %v433_v36  ;;  %v466_v46 = vmul.f32 0.25, %v434_v42 }
  0x42   : > { %535 = vst.msk [vmem:[%s1060_s6 + $0x4] sm:$0xf] %vm485_vm1, %v527_v41  ;;  %v435_v40 = vsel %vm332_vm2, %v419_v27, %v281_v56  ;;  %v436_v14 = vsel %vm332_vm2, %v420_v20, %v282_v7 }
  0x43   : > { %536 = vst.msk [vmem:[%s1060_s6 + $0x8] sm:$0xf] %vm485_vm1, %v528_v44  ;;  %v473_v21 = vadd.f32 %v465_v18, %v1008_v43  ;;  %v474_v48 = vadd.f32 %v466_v46, %v1028_v26  ;;  %v467_v29 = vmul.f32 0.25, %v435_v40  ;;  %v468_v49 = vmul.f32 0.25, %v436_v14 }
  0x44   : > { %537 = vst.msk [vmem:[%s1060_s6 + $0xc] sm:$0xf] %vm485_vm1, %v529_v45 }
  0x45   : > { %v530_v50 = vpack.c.bf16 %v473_v21, %v473_v21  ;;  %v531_v24 = vpack.c.bf16 %v474_v48, %v474_v48  ;;  %v475_v52 = vadd.f32 %v467_v29, %v451_v38  ;;  %v476_v53 = vadd.f32 %v468_v49, %v452_v2 }
  0x47   : > { %538 = vst.msk [vmem:[%s1060_s6 + $0x10] sm:$0xf] %vm485_vm1, %v530_v50  ;;  %v532_v1 = vpack.c.bf16 %v475_v52, %v475_v52  ;;  %v533_v54 = vpack.c.bf16 %v476_v53, %v476_v53 }
  0x48   : > { %539 = vst.msk [vmem:[%s1060_s6 + $0x14] sm:$0xf] %vm485_vm1, %v531_v24 }
  0x49   : > { %540 = vst.msk [vmem:[%s1060_s6 + $0x18] sm:$0xf] %vm485_vm1, %v532_v1 }
  0x4a   : > { %541 = vst.msk [vmem:[%s1060_s6 + $0x1c] sm:$0xf] %vm485_vm1, %v533_v54 }
  0x4b PF: > { %s15_s15 = sadd.s32 1, %s751_s15  }
  0x4c   : > { %p12_p4 = scmp.ge.s32.totalorder %s15_s15, 4  }
  0x4e   :  { %14 = sbr.rel (!%p12_p4) target bundleno = 1 (0x1), region = 90 }

// kernel: unet_discriminator_sn.22
= control target key start
LH: loop header
LB: loop body
LE: loop exit
PB: predicated region body
PF: predicated region fallthrough
CT: control target
= control target key end

     0   :  { %s1225_s15 = smov 0   ;;  %s1442_s0 = inlined_call_operand.vmem [shape: bf16[512,288], index: 0, kind: input, shape index: {}]   ;;  %s1443_s1 = inlined_call_operand.vmem [shape: bf16[288,16], index: 1, kind: input, shape index: {}]   ;;  %s1444_s2 = inlined_call_operand.vmem [shape: f32[1,16], index: 2, kind: input, shape index: {}]   ;;  %s1445_s3 = inlined_call_operand.vmem [shape: bf16[512,16], index: 3, kind: input, shape index: {}]   ;;  %s1446_s4 = inlined_call_operand.vmem [shape: bf16[512,16], index: 4, kind: output, shape index: {}]  }
   0x1 LB: > { %s896_s16 = sadd.s32 4294967295, %s1198_s15   ;;  %p900_p0 = scmp.ge.s32.totalorder %s1198_s15, 1  ;;  %s1198_s15 = sphi %s1225_s15, %s14_s15  }
   0x2   : > { %p175_p1 = scmp.lt.s32.totalorder %s1198_s15, 5 }
   0x4   : > { %p176_p2 = pnand %p900_p0, %p175_p1 }
   0x5   : > { %s901_s23 = sshll.u32 (!%p176_p2), %s896_s16, 4 }
   0x6   : > { %179 = sbr.rel (%p176_p2) target bundleno = 283 (0x11b), region = 36  ;;  %p208_p3 = scmp.lt.s32.totalorder (!%p176_p2), %s901_s23, 63 }
   0xb   : > { %v1116_v0 = vld [vmem:[%s1443_s1 + $0x38] sm:$0xff]  ;;  %v1126_v1 = vld [vmem:[%s1443_s1 + $0x88] sm:$0xff]  ;;  %v1115_v3 = vld [vmem:[%s1443_s1 + $0x30] sm:$0xff]  ;;  %s1448_s23 = smov (!%p208_p3, %s901_s23), 63  ;;  %vm527_vm0 = vcmask 261120   ;;  %vm811_vm2 = vcmask 125952  }
   0xc   : > { %v1242_v2 = vld [vmem:[%s1443_s1 + $0x78] sm:$0xff]  ;;  %552 = vmatpush.bf16.msra.mxu0 %v1116_v0  ;;  %1166 = vmatpush.bf16.msra.mxu3 %v1116_v0  ;;  %v1125_v4 = vld [vmem:[%s1443_s1 + $0x80] sm:$0xff]  ;;  %v1123_v5 = vld [vmem:[%s1443_s1 + $0x70] sm:$0xff]  ;;  %s1182_s30 = smul.u32 12, %s1448_s23  ;;  %s904_s11 = sshll.u32 %s1448_s23, 2 }
   0xd   : > { %656 = vmatpush.bf16.msra.mxu2 %v1126_v1  ;;  %601 = vmatpush.bf16.msra.mxu1 %v1242_v2  ;;  %v1114_v6 = vld [vmem:[%s1443_s1 + $0x28] sm:$0xff]  ;;  %v1113_v11 = vld [vmem:[%s1443_s1 + $0x20] sm:$0xff]  ;;  %v1112_v13 = vld [vmem:[%s1443_s1 + $0x18] sm:$0xff]  ;;  %s1364_s14 = scalar_lea.vmem %s1445_s3, %s904_s11  ;;  %s1372_s16 = scalar_lea.vmem %s1446_s4, %s904_s11 }
   0xe   : > { %s1263_s9 = scalar_lea.vmem %s1442_s0, %s1182_s30  ;;  %v1122_v7 = vld [vmem:[%s1443_s1 + $0x68] sm:$0xff]  ;;  %v1121_v12 = vld [vmem:[%s1443_s1 + $0x60] sm:$0xff]  ;;  %v1120_v14 = vld [vmem:[%s1443_s1 + $0x58] sm:$0xff] }
   0xf   : > { %v917_v8 = vld [vmem:[%s1263_s9 + $0x8] sm:$0xf]  ;;  %v1087_v9 = vld [vmem:[%s1263_s9 + $0x10] sm:$0xf0]  ;;  %v929_v17 = vld [vmem:[%s1263_s9 + $0x20] sm:$0xf] }
  0x10   : > { %553 = vmatpush.bf16.msra.mxu0 %v1115_v3  ;;  %1167 = vmatpush.bf16.msra.mxu3 %v1115_v3  ;;  %v918_v10 = vor.u32 %v1087_v9, %v917_v8  ;;  %v1111_v15 = vld [vmem:[%s1443_s1 + $0x10] sm:$0xff]  ;;  %v1090_v18 = vld [vmem:[%s1263_s9 + $0x28] sm:$0xf0]  ;;  %v1109_v22 = vld [vmem:[%s1443_s1] sm:$0xff] }
  0x11   : > { %657 = vmatpush.bf16.msra.mxu2 %v1125_v4  ;;  %602 = vmatpush.bf16.msra.mxu1 %v1123_v5  ;;  %v1119_v16 = vld [vmem:[%s1443_s1 + $0x50] sm:$0xff]  ;;  %v1110_v19 = vld [vmem:[%s1443_s1 + $0x8] sm:$0xff]  ;;  %v930_v20 = vor.u32 %v1090_v18, %v929_v17  ;;  %v909_v23 = vld [vmem:[%s1263_s9] sm:$0xf] }
  0x12   : > { %v1118_v21 = vld [vmem:[%s1443_s1 + $0x48] sm:$0xff]  ;;  %v981_v25 = vld [vmem:[%s1263_s9 + $0x90] sm:$0xf]  ;;  %v1104_v26 = vld [vmem:[%s1263_s9 + $0x98] sm:$0xf0] }
  0x13   : > { %v1086_v24 = vld [vmem:[%s1263_s9 + $0x8] sm:$0xf0]  ;;  %v1117_v27 = vld [vmem:[%s1443_s1 + $0x40] sm:$0xff]  ;;  %v911_v29 = vld [vmem:[%s1263_s9 + $0xc] sm:$0xf0]  ;;  %v982_v31 = vor.u32 %v1104_v26, %v981_v25 }
  0x14   : > { %554 = vmatpush.bf16.msra.mxu0 %v1114_v6  ;;  %1168 = vmatpush.bf16.msra.mxu3 %v1114_v6  ;;  %v1085_v28 = vld [vmem:[%s1263_s9 + $0x4] sm:$0xf]  ;;  %v910_v30 = vor.u32 %v1086_v24, %v909_v23  ;;  %v941_v33 = vld [vmem:[%s1263_s9 + $0x38] sm:$0xf]  ;;  %v993_v38 = vld [vmem:[%s1263_s9 + $0xa8] sm:$0xf] }
  0x15   : > { %1075 = vmatmul.msk.bf16.vlgmr.msra.gmra.mxu2 %vm527_vm0, %v918_v10  ;;  %603 = vmatpush.bf16.msra.mxu1 %v1122_v7  ;;  %v914_v32 = vor.u32 %v1085_v28, %v911_v29  ;;  %v1093_v34 = vld [vmem:[%s1263_s9 + $0x40] sm:$0xf0]  ;;  %v921_v36 = vld [vmem:[%s1263_s9 + $0x18] sm:$0xf]  ;;  %v1107_v39 = vld [vmem:[%s1263_s9 + $0xb0] sm:$0xf0] }
  0x16   : > { %v942_v35 = vor.u32 %v1093_v34, %v941_v33  ;;  %v1089_v37 = vld [vmem:[%s1263_s9 + $0x20] sm:$0xf0]  ;;  %v1088_v40 = vld [vmem:[%s1263_s9 + $0x1c] sm:$0xf]  ;;  %v923_v41 = vld [vmem:[%s1263_s9 + $0x24] sm:$0xf0]  ;;  %v994_v43 = vor.u32 %v1107_v39, %v993_v38 }
  0x17   : > { %v922_v42 = vor.u32 %v1089_v37, %v921_v36  ;;  %v926_v44 = vor.u32 %v1088_v40, %v923_v41  ;;  %v953_v45 = vld [vmem:[%s1263_s9 + $0x50] sm:$0xf]  ;;  %v1096_v46 = vld [vmem:[%s1263_s9 + $0x58] sm:$0xf0]  ;;  %v1103_v50 = vld [vmem:[%s1263_s9 + $0x94] sm:$0xf] }
  0x18   : > { %555 = vmatpush.bf16.msra.mxu0 %v1113_v11  ;;  %1169 = vmatpush.bf16.msra.mxu3 %v1113_v11  ;;  %v954_v47 = vor.u32 %v1096_v46, %v953_v45  ;;  %v933_v48 = vld [vmem:[%s1263_s9 + $0x30] sm:$0xf]  ;;  %v1092_v49 = vld [vmem:[%s1263_s9 + $0x38] sm:$0xf0]  ;;  %v983_v51 = vld [vmem:[%s1263_s9 + $0x9c] sm:$0xf0] }
  0x19   : > { %604 = vmatpush.bf16.msra.mxu1 %v1121_v12  ;;  %v1091_v52 = vld [vmem:[%s1263_s9 + $0x34] sm:$0xf]  ;;  %v935_v53 = vld [vmem:[%s1263_s9 + $0x3c] sm:$0xf0]  ;;  %v934_v54 = vor.u32 %v1092_v49, %v933_v48  ;;  %v986_v55 = vor.u32 %v1103_v50, %v983_v51  ;;  %v965_v57 = vld [vmem:[%s1263_s9 + $0x68] sm:$0xf] }
  0x1a   : > { %v938_v56 = vor.u32 %v1091_v52, %v935_v53  ;;  %v1099_v58 = vld [vmem:[%s1263_s9 + $0x70] sm:$0xf0]  ;;  %v945_v60 = vld [vmem:[%s1263_s9 + $0x48] sm:$0xf]  ;;  %v1106_v62 = vld [vmem:[%s1263_s9 + $0xac] sm:$0xf] }
  0x1b   : > { %v966_v59 = vor.u32 %v1099_v58, %v965_v57  ;;  %v1095_v61 = vld [vmem:[%s1263_s9 + $0x50] sm:$0xf0]  ;;  %v995_v63 = vld [vmem:[%s1263_s9 + $0xb4] sm:$0xf0]  ;;  %v1094_v0 = vld [vmem:[%s1263_s9 + $0x4c] sm:$0xf] }
  0x1c   : > { %556 = vmatpush.bf16.msra.mxu0 %v1112_v13  ;;  %1170 = vmatpush.bf16.msra.mxu3 %v1112_v13  ;;  %v947_v1 = vld [vmem:[%s1263_s9 + $0x54] sm:$0xf0]  ;;  %v998_v3 = vor.u32 %v1106_v62, %v995_v63  ;;  %v1102_v6 = vld [vmem:[%s1263_s9 + $0x88] sm:$0xf0]  ;;  %v957_v8 = vld [vmem:[%s1263_s9 + $0x60] sm:$0xf] }
  0x1d   : > { %605 = vmatpush.bf16.msra.mxu1 %v1120_v14  ;;  %v950_v4 = vor.u32 %v1094_v0, %v947_v1  ;;  %v1098_v9 = vld [vmem:[%s1263_s9 + $0x68] sm:$0xf0]  ;;  %v1097_v10 = vld [vmem:[%s1263_s9 + $0x64] sm:$0xf]  ;;  %v959_v11 = vld [vmem:[%s1263_s9 + $0x6c] sm:$0xf0] }
  0x1e   : > { %v962_v13 = vor.u32 %v1097_v10, %v959_v11  ;;  %v969_v17 = vld [vmem:[%s1263_s9 + $0x78] sm:$0xf]  ;;  %v1101_v18 = vld [vmem:[%s1263_s9 + $0x80] sm:$0xf0]  ;;  %v1001_v23 = vld [vmem:[%s1263_s9 + $0xb0] sm:$0xf] }
  0x1f   : > { %v1108_v24 = vld [vmem:[%s1263_s9 + $0xb8] sm:$0xf0]  ;;  %v1358_v28 = vld [vmem:[%s1444_s2] ss:$0 sm:$0xff] }
  0x20   : > { %557 = vmatpush.bf16.msra.mxu0 %v1111_v15  ;;  %1171 = vmatpush.bf16.msra.mxu3 %v1111_v15  ;;  %v1105_v15 = vld [vmem:[%s1263_s9 + $0xa0] sm:$0xf0]  ;;  %v1002_v25 = vor.u32 %v1108_v24, %v1001_v23 }
  0x21   : > { %606 = vmatpush.bf16.msra.mxu1 %v1119_v16  ;;  %v1128_v34 = vld [vmem:[%s1364_s14] sm:$0xff]  }
  0x22   : > { %v1129_v36 = vunpack.c.l.bf16 %v1128_v34 }
  0x24   : > { %558 = vmatpush.bf16.msra.mxu0 %v1110_v19  ;;  %1172 = vmatpush.bf16.msra.mxu3 %v1110_v19  ;;  %v1100_v19 = vld [vmem:[%s1263_s9 + $0x7c] sm:$0xf] }
  0x25   : > { %1076 = vmatmul.msk.bf16.gmra.mxu2 %vm527_vm0, %v930_v20  ;;  %607 = vmatpush.bf16.msra.mxu1 %v1118_v21  ;;  %v971_v20 = vld [vmem:[%s1263_s9 + $0x84] sm:$0xf0] }
  0x28   : > { %559 = vmatpush.bf16.msra.mxu0 %v1109_v22  ;;  %1173 = vmatpush.bf16.msra.mxu3 %v1109_v22  ;;  %v974_v22 = vor.u32 %v1100_v19, %v971_v20 }
  0x29   : > { %608 = vmatpush.bf16.msra.mxu1 %v1117_v27 }
  0x2b   : > { %560 = vmatmul.bf16.vlgmr.msra.gmra.mxu0 %v910_v30  ;;  %590 = vmatmul.bf16.vlgmr.msra.gmra.mxu3 %v982_v31 }
  0x2c   : > { %1174 = vmatpush.bf16.msrb.mxu3 %v1242_v2  ;;  %609 = vmatmul.bf16.vlgmr.msra.gmra.mxu1 %v914_v32  ;;  %v946_v2 = vor.u32 %v1095_v61, %v945_v60 }
  0x30   : > { %1175 = vmatpush.bf16.msrb.mxu3 %v1123_v5  ;;  %v977_v5 = vld [vmem:[%s1263_s9 + $0x80] sm:$0xf] }
  0x34   : > { %1176 = vmatpush.bf16.msrb.mxu3 %v1122_v7  ;;  %v978_v7 = vor.u32 %v1102_v6, %v977_v5 }
  0x35   : > { %1077 = vmatmul.msk.bf16.gmra.mxu2 %vm527_vm0, %v942_v35 }
  0x38   : > { %1177 = vmatpush.bf16.msrb.mxu3 %v1121_v12  ;;  %v958_v12 = vor.u32 %v1098_v9, %v957_v8 }
  0x3b   : > { %565 = vmatmul.bf16.gmra.mxu0 %v922_v42  ;;  %595 = vmatmul.bf16.gmra.mxu3 %v994_v43 }
  0x3c   : > { %1178 = vmatpush.bf16.msrb.mxu3 %v1120_v14  ;;  %614 = vmatmul.bf16.gmra.mxu1 %v926_v44  ;;  %v989_v14 = vld [vmem:[%s1263_s9 + $0x98] sm:$0xf] }
  0x40   : > { %1179 = vmatpush.bf16.msrb.mxu3 %v1119_v16  ;;  %v990_v16 = vor.u32 %v1105_v15, %v989_v14 }
  0x44   : > { %1180 = vmatpush.bf16.msrb.mxu3 %v1118_v21  ;;  %v970_v21 = vor.u32 %v1101_v18, %v969_v17 }
  0x45   : > { %1078 = vmatmul.msk.bf16.gmra.mxu2 %vm527_vm0, %v954_v47  ;;  %v1130_v47 = vunpack.c.h.bf16 %v1128_v34 }
  0x48   : > { %1181 = vmatpush.bf16.msrb.mxu3 %v1117_v27 }
  0x4b   : > { %570 = vmatmul.bf16.gmra.mxu0 %v934_v54  ;;  %639 = vmatmul.bf16.vlgmr.msrb.gmra.mxu3 %v986_v55 }
  0x4c   : > { %619 = vmatmul.bf16.gmra.mxu1 %v938_v56  ;;  %v1159_v56 = vld [vmem:[%s1364_s14 + $0x8] sm:$0xff]  }
  0x55   : > { %1079 = vmatmul.msk.bf16.gmra.mxu2 %vm527_vm0, %v966_v59  ;;  %v1133_v59 = vunpack.c.l.bf16 %v1159_v56 }
  0x5b   : > { %575 = vmatmul.bf16.gmra.mxu0 %v946_v2  ;;  %644 = vmatmul.bf16.gmra.mxu3 %v998_v3 }
  0x5c   : > { %624 = vmatmul.bf16.gmra.mxu1 %v950_v4 }
  0x65   : > { %1080 = vmatmul.msk.bf16.gmra.mxu2 %vm527_vm0, %v978_v7  ;;  %v1134_v7 = vunpack.c.h.bf16 %v1159_v56 }
  0x6b   : > { %580 = vmatmul.bf16.gmra.mxu0 %v958_v12 }
  0x6c   : > { %629 = vmatmul.bf16.gmra.mxu1 %v962_v13 }
  0x75   : > { %1081 = vmatmul.msk.bf16.gmra.mxu2 %vm527_vm0, %v990_v16  ;;  %v1160_v16 = vld [vmem:[%s1364_s14 + $0x10] sm:$0xff]  }
  0x76   : > { %v1137_v19 = vunpack.c.l.bf16 %v1160_v16 }
  0x7b   : > { %585 = vmatmul.bf16.gmra.mxu0 %v970_v21 }
  0x7c   : > { %634 = vmatmul.bf16.gmra.mxu1 %v974_v22 }
  0x85   : > { %1082 = vmatmul.msk.bf16.gmra.mxu2 %vm527_vm0, %v1002_v25 }
  0x98   : > { %v659_v26 = vpop.f32.mrf.mxu2 }
  0xa0   : > { %v661_v27 = vpop.f32.mrf.mxu2 }
  0xa8   : > { %v664_v29 = vpop.f32.mrf.mxu2  ;;  %v561_v30 = vpop.f32.mrf.mxu0 }
  0xa9   : > { %v562_v31 = vadd.f32 %v1358_v28, %v561_v30  ;;  %v610_v32 = vpop.f32.mrf.mxu1 }
  0xab   : > { %v611_v33 = vadd.f32 %v610_v32, %v562_v31  ;;  %v1138_v32 = vunpack.c.h.bf16 %v1160_v16 }
  0xad   : > { %v660_v35 = vadd.f32 %v659_v26, %v611_v33 }
  0xae   : > { %v1381_v5 = vpop.f32.mrf.mxu3 }
  0xaf   : > { %vm699_vm1 = vcmp.ge.f32.partialorder %v660_v35, 0.0  ;;  %v715_v37 = vmul.f32 0.2, %v660_v35 }
  0xb0   : > { %v666_v38 = vpop.f32.mrf.mxu2  ;;  %v563_v39 = vpop.f32.mrf.mxu0 }
  0xb1   : > { %v731_v40 = vsel %vm699_vm1, %v660_v35, %v715_v37  ;;  %v564_v41 = vadd.f32 %v1358_v28, %v563_v39  ;;  %v612_v42 = vpop.f32.mrf.mxu1 }
  0xb2   : > { %v779_v43 = vadd.f32 %v1129_v36, %v731_v40 }
  0xb3   : > { %v613_v44 = vadd.f32 %v612_v42, %v564_v41  ;;  %v1161_v42 = vld [vmem:[%s1364_s14 + $0x18] sm:$0xff]  }
  0xb4   : > { %v795_v45 = vpack.c.bf16 %v779_v43, %v779_v43 }
  0xb5   : > { %v662_v46 = vadd.f32 %v661_v27, %v613_v44 }
  0xb6   : > { %812 = vst.msk [vmem:[%s1372_s16] sm:$0xf] %vm811_vm2, %v795_v45  ;;  %v1389_v20 = vpop.f32.mrf.mxu3  ;;  %v1141_v45 = vunpack.c.l.bf16 %v1161_v42 }
  0xb7   : > { %vm700_vm3 = vcmp.ge.f32.partialorder %v662_v46, 0.0  ;;  %v716_v48 = vmul.f32 0.2, %v662_v46 }
  0xb8   : > { %v669_v49 = vpop.f32.mrf.mxu2  ;;  %v566_v50 = vpop.f32.mrf.mxu0 }
  0xb9   : > { %v732_v51 = vsel %vm700_vm3, %v662_v46, %v716_v48  ;;  %v567_v52 = vadd.f32 %v1358_v28, %v566_v50  ;;  %v615_v53 = vpop.f32.mrf.mxu1 }
  0xba   : > { %v780_v54 = vadd.f32 %v1130_v47, %v732_v51 }
  0xbb   : > { %v616_v55 = vadd.f32 %v615_v53, %v567_v52 }
  0xbc   : > { %v796_v57 = vpack.c.bf16 %v780_v54, %v780_v54 }
  0xbd   : > { %v665_v58 = vadd.f32 %v664_v29, %v616_v55 }
  0xbe   : > { %813 = vst.msk [vmem:[%s1372_s16 + $0x4] sm:$0xf] %vm811_vm2, %v796_v57  ;;  %v1394_v36 = vpop.f32.mrf.mxu3  ;;  %v1142_v57 = vunpack.c.h.bf16 %v1161_v42 }
  0xbf   : > { %vm701_vm4 = vcmp.ge.f32.partialorder %v665_v58, 0.0  ;;  %v717_v60 = vmul.f32 0.2, %v665_v58 }
  0xc0   : > { %v671_v61 = vpop.f32.mrf.mxu2  ;;  %v568_v62 = vpop.f32.mrf.mxu0 }
  0xc1   : > { %v733_v63 = vsel %vm701_vm4, %v665_v58, %v717_v60  ;;  %v569_v0 = vadd.f32 %v1358_v28, %v568_v62  ;;  %v617_v1 = vpop.f32.mrf.mxu1 }
  0xc2   : > { %v781_v2 = vadd.f32 %v1133_v59, %v733_v63 }
  0xc3   : > { %v618_v3 = vadd.f32 %v617_v1, %v569_v0 }
  0xc4   : > { %v797_v4 = vpack.c.bf16 %v781_v2, %v781_v2  ;;  %v1162_v2 = vld [vmem:[%s1364_s14 + $0x20] sm:$0xff]  }
  0xc5   : > { %v667_v6 = vadd.f32 %v666_v38, %v618_v3 }
  0xc6   : > { %814 = vst.msk [vmem:[%s1372_s16 + $0x8] sm:$0xf] %vm811_vm2, %v797_v4  ;;  %v1401_v53 = vpop.f32.mrf.mxu3 }
  0xc7   : > { %vm702_vm5 = vcmp.ge.f32.partialorder %v667_v6, 0.0  ;;  %v718_v8 = vmul.f32 0.2, %v667_v6 }
  0xc8   : > { %v674_v9 = vpop.f32.mrf.mxu2  ;;  %v571_v10 = vpop.f32.mrf.mxu0 }
  0xc9   : > { %v734_v11 = vsel %vm702_vm5, %v667_v6, %v718_v8  ;;  %v572_v12 = vadd.f32 %v1358_v28, %v571_v10  ;;  %v620_v13 = vpop.f32.mrf.mxu1 }
  0xca   : > { %v782_v14 = vadd.f32 %v1134_v7, %v734_v11  ;;  %v1145_v7 = vunpack.c.l.bf16 %v1162_v2 }
  0xcb   : > { %v621_v15 = vadd.f32 %v620_v13, %v572_v12 }
  0xcc   : > { %v798_v17 = vpack.c.bf16 %v782_v14, %v782_v14 }
  0xcd   : > { %v670_v18 = vadd.f32 %v669_v49, %v621_v15  ;;  %v592_v15 = vadd.f32 %v1358_v28, %v1381_v5 }
  0xce   : > { %815 = vst.msk [vmem:[%s1372_s16 + $0xc] sm:$0xf] %vm811_vm2, %v798_v17  ;;  %v640_v4 = vpop.f32.mrf.mxu3 }
  0xcf   : > { %vm703_vm6 = vcmp.ge.f32.partialorder %v670_v18, 0.0  ;;  %v719_v21 = vmul.f32 0.2, %v670_v18 }
  0xd0   : > { %v676_v22 = vpop.f32.mrf.mxu2  ;;  %v573_v23 = vpop.f32.mrf.mxu0 }
  0xd1   : > { %v735_v24 = vsel %vm703_vm6, %v670_v18, %v719_v21  ;;  %v574_v25 = vadd.f32 %v1358_v28, %v573_v23  ;;  %v622_v26 = vpop.f32.mrf.mxu1  ;;  %v641_v21 = vadd.f32 %v640_v4, %v592_v15 }
  0xd2   : > { %v783_v27 = vadd.f32 %v1137_v19, %v735_v24  ;;  %v1146_v19 = vunpack.c.h.bf16 %v1162_v2  ;;  %v1164_v24 = vld [vmem:[%s1364_s14 + $0x30] sm:$0xff]  }
  0xd3   : > { %v623_v29 = vadd.f32 %v622_v26, %v574_v25 }
  0xd4   : > { %v799_v30 = vpack.c.bf16 %v783_v27, %v783_v27 }
  0xd5   : > { %v672_v31 = vadd.f32 %v671_v61, %v623_v29 }
  0xd6   : > { %816 = vst.msk [vmem:[%s1372_s16 + $0x10] sm:$0xf] %vm811_vm2, %v799_v30 }
  0xd7   : > { %vm704_vm7 = vcmp.ge.f32.partialorder %v672_v31, 0.0  ;;  %v720_v33 = vmul.f32 0.2, %v672_v31 }
  0xd8   : > { %v679_v34 = vpop.f32.mrf.mxu2  ;;  %v576_v35 = vpop.f32.mrf.mxu0 }
  0xd9   : > { %v736_v37 = vsel %vm704_vm7, %v672_v31, %v720_v33  ;;  %v577_v38 = vadd.f32 %v1358_v28, %v576_v35  ;;  %v625_v39 = vpop.f32.mrf.mxu1  ;;  %v594_v33 = vadd.f32 %v1358_v28, %v1389_v20 }
  0xda   : > { %v784_v40 = vadd.f32 %v1138_v32, %v736_v37  ;;  %v1153_v32 = vunpack.c.l.bf16 %v1164_v24  ;;  %v1163_v37 = vld [vmem:[%s1364_s14 + $0x28] sm:$0xff]  }
  0xdb   : > { %v626_v41 = vadd.f32 %v625_v39, %v577_v38  ;;  %v1149_v42 = vunpack.c.l.bf16 %v1163_v37 }
  0xdc   : > { %v800_v43 = vpack.c.bf16 %v784_v40, %v784_v40 }
  0xdd   : > { %v675_v44 = vadd.f32 %v674_v9, %v626_v41 }
  0xde   : > { %817 = vst.msk [vmem:[%s1372_s16 + $0x14] sm:$0xf] %vm811_vm2, %v800_v43 }
  0xdf   : > { %vm705_vm8 = vcmp.ge.f32.partialorder %v675_v44, 0.0  ;;  %v721_v46 = vmul.f32 0.2, %v675_v44 }
  0xe0   : > { %v681_v47 = vpop.f32.mrf.mxu2  ;;  %v578_v48 = vpop.f32.mrf.mxu0 }
  0xe1   : > { %v737_v49 = vsel %vm705_vm8, %v675_v44, %v721_v46  ;;  %v579_v50 = vadd.f32 %v1358_v28, %v578_v48  ;;  %v627_v51 = vpop.f32.mrf.mxu1 }
  0xe2   : > { %v785_v52 = vadd.f32 %v1141_v45, %v737_v49 }
  0xe3   : > { %v628_v54 = vadd.f32 %v627_v51, %v579_v50 }
  0xe4   : > { %v801_v55 = vpack.c.bf16 %v785_v52, %v785_v52 }
  0xe5   : > { %v677_v56 = vadd.f32 %v676_v22, %v628_v54  ;;  %v642_v22 = vpop.f32.mrf.mxu3  ;;  %v1154_v54 = vunpack.c.h.bf16 %v1164_v24 }
  0xe6   : > { %818 = vst.msk [vmem:[%s1372_s16 + $0x18] sm:$0xf] %vm811_vm2, %v801_v55  ;;  %v643_v43 = vadd.f32 %v642_v22, %v594_v33  ;;  %v597_v55 = vadd.f32 %v1358_v28, %v1394_v36 }
  0xe7   : > { %vm706_vm9 = vcmp.ge.f32.partialorder %v677_v56, 0.0  ;;  %v722_v58 = vmul.f32 0.2, %v677_v56 }
  0xe8   : > { %v684_v59 = vpop.f32.mrf.mxu2  ;;  %v581_v60 = vpop.f32.mrf.mxu0 }
  0xe9   : > { %v738_v61 = vsel %vm706_vm9, %v677_v56, %v722_v58  ;;  %v582_v62 = vadd.f32 %v1358_v28, %v581_v60  ;;  %v630_v63 = vpop.f32.mrf.mxu1 }
  0xea   : > { %v786_v0 = vadd.f32 %v1142_v57, %v738_v61 }
  0xeb   : > { %v631_v1 = vadd.f32 %v630_v63, %v582_v62  ;;  %v1150_v62 = vunpack.c.h.bf16 %v1163_v37 }
  0xec   : > { %v802_v3 = vpack.c.bf16 %v786_v0, %v786_v0 }
  0xed   : > { %v680_v6 = vadd.f32 %v679_v34, %v631_v1  ;;  %v645_v51 = vpop.f32.mrf.mxu3  ;;  %v1165_v1 = vld [vmem:[%s1364_s14 + $0x38] sm:$0xff]  }
  0xee   : > { %819 = vst.msk [vmem:[%s1372_s16 + $0x1c] sm:$0xf] %vm811_vm2, %v802_v3  ;;  %v646_v63 = vadd.f32 %v645_v51, %v597_v55 }
  0xef   : > { %vm707_vm10 = vcmp.ge.f32.partialorder %v680_v6, 0.0  ;;  %v723_v8 = vmul.f32 0.2, %v680_v6 }
  0xf0   : > { %v686_v9 = vpop.f32.mrf.mxu2  ;;  %v583_v10 = vpop.f32.mrf.mxu0 }
  0xf1   : > { %v739_v11 = vsel %vm707_vm10, %v680_v6, %v723_v8  ;;  %v584_v12 = vadd.f32 %v1358_v28, %v583_v10  ;;  %v632_v13 = vpop.f32.mrf.mxu1  ;;  %v599_v8 = vadd.f32 %v1358_v28, %v1401_v53 }
  0xf2   : > { %v787_v14 = vadd.f32 %v1145_v7, %v739_v11  ;;  %v1157_v7 = vunpack.c.l.bf16 %v1165_v1 }
  0xf3   : > { %v633_v16 = vadd.f32 %v632_v13, %v584_v12 }
  0xf4   : > { %v803_v17 = vpack.c.bf16 %v787_v14, %v787_v14 }
  0xf5   : > { %v682_v18 = vadd.f32 %v681_v47, %v633_v16  ;;  %v647_v10 = vpop.f32.mrf.mxu3 }
  0xf6   : > { %820 = vst.msk [vmem:[%s1372_s16 + $0x20] sm:$0xf] %vm811_vm2, %v803_v17  ;;  %v648_v14 = vadd.f32 %v647_v10, %v599_v8 }
  0xf7   : > { %vm708_vm11 = vcmp.ge.f32.partialorder %v682_v18, 0.0  ;;  %v724_v23 = vmul.f32 0.2, %v682_v18 }
  0xf8   : > { %v689_v25 = vpop.f32.mrf.mxu2  ;;  %v586_v26 = vpop.f32.mrf.mxu0 }
  0xf9   : > { %v740_v27 = vsel %vm708_vm11, %v682_v18, %v724_v23  ;;  %v690_v29 = vadd.f32 %v689_v25, %v641_v21  ;;  %v587_v30 = vadd.f32 %v1358_v28, %v586_v26  ;;  %v635_v5 = vpop.f32.mrf.mxu1  ;;  %v1158_v18 = vunpack.c.h.bf16 %v1165_v1 }
  0xfa   : > { %v788_v31 = vadd.f32 %v1146_v19, %v740_v27 }
  0xfb   : > { %vm711_vm12 = vcmp.ge.f32.partialorder %v690_v29, 0.0  ;;  %v727_v34 = vmul.f32 0.2, %v690_v29  ;;  %v636_v35 = vadd.f32 %v635_v5, %v587_v30 }
  0xfc   : > { %v804_v38 = vpack.c.bf16 %v788_v31, %v788_v31 }
  0xfd   : > { %v743_v39 = vsel %vm711_vm12, %v690_v29, %v727_v34  ;;  %v685_v40 = vadd.f32 %v684_v59, %v636_v35 }
  0xfe   : > { %821 = vst.msk [vmem:[%s1372_s16 + $0x24] sm:$0xf] %vm811_vm2, %v804_v38  ;;  %v791_v41 = vadd.f32 %v1153_v32, %v743_v39 }
  0xff   : > { %vm709_vm13 = vcmp.ge.f32.partialorder %v685_v40, 0.0  ;;  %v725_v44 = vmul.f32 0.2, %v685_v40 }
 0x100   : > { %v807_v45 = vpack.c.bf16 %v791_v41, %v791_v41  ;;  %v691_v46 = vpop.f32.mrf.mxu2  ;;  %v588_v47 = vpop.f32.mrf.mxu0 }
 0x101   : > { %v741_v20 = vsel %vm709_vm13, %v685_v40, %v725_v44  ;;  %v692_v48 = vadd.f32 %v691_v46, %v643_v43  ;;  %v589_v49 = vadd.f32 %v1358_v28, %v588_v47  ;;  %v637_v50 = vpop.f32.mrf.mxu1 }
 0x102   : > { %824 = vst.msk [vmem:[%s1372_s16 + $0x30] sm:$0xf] %vm811_vm2, %v807_v45  ;;  %v789_v52 = vadd.f32 %v1149_v42, %v741_v20 }
 0x103   : > { %vm712_vm14 = vcmp.ge.f32.partialorder %v692_v48, 0.0  ;;  %v728_v56 = vmul.f32 0.2, %v692_v48  ;;  %v638_v57 = vadd.f32 %v637_v50, %v589_v49 }
 0x104   : > { %v805_v58 = vpack.c.bf16 %v789_v52, %v789_v52 }
 0x105   : > { %v744_v59 = vsel %vm712_vm14, %v692_v48, %v728_v56  ;;  %v687_v60 = vadd.f32 %v686_v9, %v638_v57 }
 0x106   : > { %822 = vst.msk [vmem:[%s1372_s16 + $0x28] sm:$0xf] %vm811_vm2, %v805_v58  ;;  %v792_v61 = vadd.f32 %v1154_v54, %v744_v59 }
 0x107   : > { %vm710_vm15 = vcmp.ge.f32.partialorder %v687_v60, 0.0  ;;  %v726_v0 = vmul.f32 0.2, %v687_v60 }
 0x108   : > { %v808_v2 = vpack.c.bf16 %v792_v61, %v792_v61  ;;  %v694_v3 = vpop.f32.mrf.mxu2 }
 0x109   : > { %v742_v4 = vsel %vm710_vm15, %v687_v60, %v726_v0  ;;  %v695_v36 = vadd.f32 %v694_v3, %v646_v63 }
 0x10a   : > { %825 = vst.msk [vmem:[%s1372_s16 + $0x34] sm:$0xf] %vm811_vm2, %v808_v2  ;;  %v790_v6 = vadd.f32 %v1150_v62, %v742_v4 }
 0x10b   : > { %vm713_vm0 = vcmp.ge.f32.partialorder %v695_v36, 0.0  ;;  %v729_v9 = vmul.f32 0.2, %v695_v36 }
 0x10c   : > { %v806_v11 = vpack.c.bf16 %v790_v6, %v790_v6 }
 0x10d   : > { %v745_v12 = vsel %vm713_vm0, %v695_v36, %v729_v9 }
 0x10e   : > { %823 = vst.msk [vmem:[%s1372_s16 + $0x2c] sm:$0xf] %vm811_vm2, %v806_v11  ;;  %v793_v13 = vadd.f32 %v1157_v7, %v745_v12 }
 0x110   : > { %v809_v15 = vpack.c.bf16 %v793_v13, %v793_v13  ;;  %v696_v16 = vpop.f32.mrf.mxu2 }
 0x111   : > { %v697_v17 = vadd.f32 %v696_v16, %v648_v14 }
 0x112   : > { %826 = vst.msk [vmem:[%s1372_s16 + $0x38] sm:$0xf] %vm811_vm2, %v809_v15 }
 0x113   : > { %vm714_vm1 = vcmp.ge.f32.partialorder %v697_v17, 0.0  ;;  %v730_v19 = vmul.f32 0.2, %v697_v17 }
 0x115   : > { %v746_v21 = vsel %vm714_vm1, %v697_v17, %v730_v19 }
 0x116   : > { %v794_v28 = vadd.f32 %v1158_v18, %v746_v21 }
 0x118   : > { %v810_v53 = vpack.c.bf16 %v794_v28, %v794_v28 }
 0x11a   : > { %827 = vst.msk [vmem:[%s1372_s16 + $0x3c] sm:$0xf] %vm811_vm2, %v810_v53 }
 0x11b PF: > { %s14_s15 = sadd.s32 1, %s1198_s15  }
 0x11c   : > { %p11_p4 = scmp.ge.s32.totalorder %s14_s15, 6  }
 0x11e   :  { %13 = sbr.rel (!%p11_p4) target bundleno = 1 (0x1), region = 69 }

// kernel: unet_discriminator_sn.23
= control target key start
LH: loop header
LB: loop body
LE: loop exit
PB: predicated region body
PF: predicated region fallthrough
CT: control target
= control target key end

     0   :  { %s794_s12 = smov 0   ;;  %s948_s0 = inlined_call_operand.vmem [shape: bf16[512,144], index: 0, kind: input, shape index: {}]   ;;  %s949_s1 = inlined_call_operand.vmem [shape: bf16[144,16], index: 1, kind: input, shape index: {}]   ;;  %s950_s2 = inlined_call_operand.vmem [shape: f32[1,16], index: 2, kind: input, shape index: {}]   ;;  %s951_s3 = inlined_call_operand.vmem [shape: bf16[512,16], index: 3, kind: output, shape index: {}]  }
   0x1 LB: > { %s602_s13 = sadd.s32 4294967295, %s772_s12   ;;  %p606_p0 = scmp.ge.s32.totalorder %s772_s12, 1  ;;  %s772_s12 = sphi %s794_s12, %s13_s12  }
   0x2   : > { %p139_p1 = scmp.lt.s32.totalorder %s772_s12, 5 }
   0x4   : > { %p140_p2 = pnand %p606_p0, %p139_p1 }
   0x5   : > { %s607_s18 = sshll.u32 (!%p140_p2), %s602_s13, 4 }
   0x6   : > { %143 = sbr.rel (%p140_p2) target bundleno = 241 (0xf1), region = 32  ;;  %p165_p3 = scmp.lt.s32.totalorder (!%p140_p2), %s607_s18, 63 }
   0xb   : > { %v746_v0 = vld [vmem:[%s949_s1 + $0x38] sm:$0xff]  ;;  %v747_v1 = vld [vmem:[%s949_s1 + $0x40] sm:$0xff]  ;;  %v745_v2 = vld [vmem:[%s949_s1 + $0x30] sm:$0xff]  ;;  %s953_s18 = smov (!%p165_p3, %s607_s18), 63  ;;  %vm342_vm0 = vcmask 130048   ;;  %vm529_vm2 = vcmask 125952  }
   0xc   : > { %367 = vmatpush.bf16.msra.mxu0 %v746_v0  ;;  %748 = vmatpush.bf16.msra.mxu2 %v746_v0  ;;  %s722_s21 = sshll.u32 %s953_s18, 3  ;;  %v744_v3 = vld [vmem:[%s949_s1 + $0x28] sm:$0xff]  ;;  %v743_v7 = vld [vmem:[%s949_s1 + $0x20] sm:$0xff]  ;;  %v742_v11 = vld [vmem:[%s949_s1 + $0x18] sm:$0xff]  ;;  %s611_s13 = sshll.u32 %s953_s18, 2 }
   0xd   : > { %423 = vmatpush.bf16.msra.mxu1 %v747_v1  ;;  %756 = vmatpush.bf16.msra.mxu3 %v747_v1  ;;  %s817_s24 = scalar_lea.vmem %s948_s0, %s722_s21  ;;  %v741_v12 = vld [vmem:[%s949_s1 + $0x10] sm:$0xff]  ;;  %v740_v16 = vld [vmem:[%s949_s1 + $0x8] sm:$0xff]  ;;  %v739_v19 = vld [vmem:[%s949_s1] sm:$0xff]  ;;  %s887_s16 = scalar_lea.vmem %s951_s3, %s611_s13 }
   0xe   : > { %v723_v4 = vld [vmem:[%s817_s24 + $0x4] sm:$0xf]  ;;  %v616_v5 = vld [vmem:[%s817_s24 + $0x8] sm:$0xf0]  ;;  %v733_v8 = vld [vmem:[%s817_s24 + $0x54] sm:$0xf] }
   0xf   : > { %v619_v6 = vor.u32 %v723_v4, %v616_v5  ;;  %v656_v9 = vld [vmem:[%s817_s24 + $0x58] sm:$0xf0]  ;;  %v725_v13 = vld [vmem:[%s817_s24 + $0x14] sm:$0xf]  ;;  %v735_v17 = vld [vmem:[%s817_s24 + $0x64] sm:$0xf] }
  0x10   : > { %368 = vmatpush.bf16.msra.mxu0 %v745_v2  ;;  %749 = vmatpush.bf16.msra.mxu2 %v745_v2  ;;  %v659_v10 = vor.u32 %v733_v8, %v656_v9  ;;  %v624_v14 = vld [vmem:[%s817_s24 + $0x18] sm:$0xf0]  ;;  %v664_v18 = vld [vmem:[%s817_s24 + $0x68] sm:$0xf0]  ;;  %v614_v20 = vld [vmem:[%s817_s24] sm:$0xf] }
  0x11   : > { %712 = vmatmul.msk.bf16.vlgmr.msra.gmra.mxu1 %vm342_vm0, %v619_v6  ;;  %v627_v15 = vor.u32 %v725_v13, %v624_v14  ;;  %v724_v21 = vld [vmem:[%s817_s24 + $0x4] sm:$0xf0]  ;;  %v667_v22 = vor.u32 %v735_v17, %v664_v18  ;;  %v646_v23 = vld [vmem:[%s817_s24 + $0x40] sm:$0xf]  ;;  %v727_v27 = vld [vmem:[%s817_s24 + $0x24] sm:$0xf] }
  0x12   : > { %717 = vmatmul.msk.bf16.vlgmr.msra.gmra.mxu3 %vm342_vm0, %v659_v10  ;;  %v732_v24 = vld [vmem:[%s817_s24 + $0x44] sm:$0xf0]  ;;  %v615_v25 = vor.u32 %v724_v21, %v614_v20  ;;  %v632_v28 = vld [vmem:[%s817_s24 + $0x28] sm:$0xf0]  ;;  %v737_v30 = vld [vmem:[%s817_s24 + $0x74] sm:$0xf] }
  0x13   : > { %v647_v26 = vor.u32 %v732_v24, %v646_v23  ;;  %v635_v29 = vor.u32 %v727_v27, %v632_v28  ;;  %v672_v31 = vld [vmem:[%s817_s24 + $0x78] sm:$0xf0]  ;;  %v622_v32 = vld [vmem:[%s817_s24 + $0x10] sm:$0xf]  ;;  %v726_v33 = vld [vmem:[%s817_s24 + $0x14] sm:$0xf0] }
  0x14   : > { %369 = vmatpush.bf16.msra.mxu0 %v744_v3  ;;  %750 = vmatpush.bf16.msra.mxu2 %v744_v3  ;;  %v675_v34 = vor.u32 %v737_v30, %v672_v31  ;;  %v654_v35 = vld [vmem:[%s817_s24 + $0x50] sm:$0xf]  ;;  %v734_v36 = vld [vmem:[%s817_s24 + $0x54] sm:$0xf0]  ;;  %v623_v37 = vor.u32 %v726_v33, %v622_v32  ;;  %v729_v39 = vld [vmem:[%s817_s24 + $0x34] sm:$0xf] }
  0x15   : > { %v655_v38 = vor.u32 %v734_v36, %v654_v35  ;;  %v640_v40 = vld [vmem:[%s817_s24 + $0x38] sm:$0xf0]  ;;  %v630_v42 = vld [vmem:[%s817_s24 + $0x20] sm:$0xf]  ;;  %v728_v43 = vld [vmem:[%s817_s24 + $0x24] sm:$0xf0] }
  0x16   : > { %v643_v41 = vor.u32 %v729_v39, %v640_v40  ;;  %v662_v44 = vld [vmem:[%s817_s24 + $0x60] sm:$0xf]  ;;  %v736_v45 = vld [vmem:[%s817_s24 + $0x64] sm:$0xf0]  ;;  %v631_v46 = vor.u32 %v728_v43, %v630_v42  ;;  %v731_v48 = vld [vmem:[%s817_s24 + $0x44] sm:$0xf] }
  0x17   : > { %v663_v47 = vor.u32 %v736_v45, %v662_v44  ;;  %v648_v49 = vld [vmem:[%s817_s24 + $0x48] sm:$0xf0]  ;;  %v638_v51 = vld [vmem:[%s817_s24 + $0x30] sm:$0xf]  ;;  %v730_v52 = vld [vmem:[%s817_s24 + $0x34] sm:$0xf0] }
  0x18   : > { %370 = vmatpush.bf16.msra.mxu0 %v743_v7  ;;  %751 = vmatpush.bf16.msra.mxu2 %v743_v7  ;;  %v651_v50 = vor.u32 %v731_v48, %v648_v49  ;;  %v670_v53 = vld [vmem:[%s817_s24 + $0x70] sm:$0xf]  ;;  %v738_v54 = vld [vmem:[%s817_s24 + $0x74] sm:$0xf0]  ;;  %v639_v55 = vor.u32 %v730_v52, %v638_v51  ;;  %v880_v60 = vld [vmem:[%s950_s2] ss:$0 sm:$0xff] }
  0x19   : > { %v671_v56 = vor.u32 %v738_v54, %v670_v53 }
  0x1c   : > { %371 = vmatpush.bf16.msra.mxu0 %v742_v11  ;;  %752 = vmatpush.bf16.msra.mxu2 %v742_v11 }
  0x20   : > { %372 = vmatpush.bf16.msra.mxu0 %v741_v12  ;;  %753 = vmatpush.bf16.msra.mxu2 %v741_v12 }
  0x21   : > { %713 = vmatmul.msk.bf16.gmra.mxu1 %vm342_vm0, %v627_v15 }
  0x22   : > { %718 = vmatmul.msk.bf16.gmra.mxu3 %vm342_vm0, %v667_v22 }
  0x24   : > { %373 = vmatpush.bf16.msra.mxu0 %v740_v16  ;;  %754 = vmatpush.bf16.msra.mxu2 %v740_v16 }
  0x28   : > { %374 = vmatpush.bf16.msra.mxu0 %v739_v19  ;;  %755 = vmatpush.bf16.msra.mxu2 %v739_v19 }
  0x2b   : > { %375 = vmatmul.bf16.vlgmr.msra.gmra.mxu0 %v615_v25  ;;  %395 = vmatmul.bf16.vlgmr.msra.gmra.mxu2 %v647_v26 }
  0x31   : > { %714 = vmatmul.msk.bf16.gmra.mxu1 %vm342_vm0, %v635_v29 }
  0x32   : > { %719 = vmatmul.msk.bf16.gmra.mxu3 %vm342_vm0, %v675_v34 }
  0x3b   : > { %380 = vmatmul.bf16.gmra.mxu0 %v623_v37  ;;  %400 = vmatmul.bf16.gmra.mxu2 %v655_v38 }
  0x41   : > { %715 = vmatmul.msk.bf16.gmra.mxu1 %vm342_vm0, %v643_v41 }
  0x4b   : > { %385 = vmatmul.bf16.gmra.mxu0 %v631_v46  ;;  %405 = vmatmul.bf16.gmra.mxu2 %v663_v47 }
  0x51   : > { %716 = vmatmul.msk.bf16.gmra.mxu1 %vm342_vm0, %v651_v50 }
  0x5b   : > { %390 = vmatmul.bf16.gmra.mxu0 %v639_v55  ;;  %410 = vmatmul.bf16.gmra.mxu2 %v671_v56 }
  0x8e   : > { %v425_v57 = vpop.f32.mrf.mxu1 }
  0x95   : > { %v450_v12 = vpop.f32.mrf.mxu3 }
  0x96   : > { %v427_v58 = vpop.f32.mrf.mxu1 }
  0x9d   : > { %v452_v26 = vpop.f32.mrf.mxu3 }
  0x9e   : > { %v430_v59 = vpop.f32.mrf.mxu1 }
  0xa5   : > { %v455_v42 = vpop.f32.mrf.mxu3 }
  0xa6   : > { %v432_v63 = vpop.f32.mrf.mxu1 }
  0xa8   : > { %v376_v61 = vpop.f32.mrf.mxu0 }
  0xa9   : > { %v377_v62 = vadd.f32 %v880_v60, %v376_v61 }
  0xab   : > { %v426_v0 = vadd.f32 %v425_v57, %v377_v62 }
  0xad   : > { %vm465_vm1 = vcmp.ge.f32.partialorder %v426_v0, 0.0  ;;  %v481_v1 = vmul.f32 0.2, %v426_v0  ;;  %v457_v62 = vpop.f32.mrf.mxu3 }
  0xae   : > { %v396_v3 = vpop.f32.mrf.mxu2  ;;  %v435_v7 = vpop.f32.mrf.mxu1 }
  0xaf   : > { %v497_v2 = vsel %vm465_vm1, %v426_v0, %v481_v1  ;;  %v397_v49 = vadd.f32 %v880_v60, %v396_v3 }
  0xb0   : > { %v513_v4 = vpack.c.bf16 %v497_v2, %v497_v2  ;;  %v378_v5 = vpop.f32.mrf.mxu0 }
  0xb1   : > { %v379_v6 = vadd.f32 %v880_v60, %v378_v5 }
  0xb2   : > { %530 = vst.msk [vmem:[%s887_s16] sm:$0xf] %vm529_vm2, %v513_v4 }
  0xb3   : > { %v428_v8 = vadd.f32 %v427_v58, %v379_v6 }
  0xb5   : > { %vm466_vm3 = vcmp.ge.f32.partialorder %v428_v8, 0.0  ;;  %v482_v9 = vmul.f32 0.2, %v428_v8 }
  0xb6   : > { %v892_v11 = vpop.f32.mrf.mxu2  ;;  %v437_v16 = vpop.f32.mrf.mxu1 }
  0xb7   : > { %v498_v10 = vsel %vm466_vm3, %v428_v8, %v482_v9  ;;  %v399_v5 = vadd.f32 %v880_v60, %v892_v11 }
  0xb8   : > { %v514_v13 = vpack.c.bf16 %v498_v10, %v498_v10  ;;  %v381_v14 = vpop.f32.mrf.mxu0 }
  0xb9   : > { %v382_v15 = vadd.f32 %v880_v60, %v381_v14 }
  0xba   : > { %531 = vst.msk [vmem:[%s887_s16 + $0x4] sm:$0xf] %vm529_vm2, %v514_v13 }
  0xbb   : > { %v431_v17 = vadd.f32 %v430_v59, %v382_v15 }
  0xbd   : > { %vm467_vm4 = vcmp.ge.f32.partialorder %v431_v17, 0.0  ;;  %v483_v18 = vmul.f32 0.2, %v431_v17 }
  0xbe   : > { %v401_v20 = vpop.f32.mrf.mxu2  ;;  %v899_v25 = vpop.f32.mrf.mxu1 }
  0xbf   : > { %v499_v19 = vsel %vm467_vm4, %v431_v17, %v483_v18  ;;  %v402_v22 = vadd.f32 %v880_v60, %v401_v20 }
  0xc0   : > { %v515_v21 = vpack.c.bf16 %v499_v19, %v499_v19  ;;  %v383_v23 = vpop.f32.mrf.mxu0 }
  0xc1   : > { %v384_v24 = vadd.f32 %v880_v60, %v383_v23  ;;  %v451_v27 = vadd.f32 %v450_v12, %v402_v22  ;;  %v460_v22 = vpop.f32.mrf.mxu3 }
  0xc2   : > { %532 = vst.msk [vmem:[%s887_s16 + $0x8] sm:$0xf] %vm529_vm2, %v515_v21 }
  0xc3   : > { %v433_v28 = vadd.f32 %v432_v63, %v384_v24  ;;  %vm475_vm5 = vcmp.ge.f32.partialorder %v451_v27, 0.0  ;;  %v491_v29 = vmul.f32 0.2, %v451_v27 }
  0xc5   : > { %vm468_vm6 = vcmp.ge.f32.partialorder %v433_v28, 0.0  ;;  %v484_v30 = vmul.f32 0.2, %v433_v28  ;;  %v507_v31 = vsel %vm475_vm5, %v451_v27, %v491_v29 }
  0xc6   : > { %v523_v32 = vpack.c.bf16 %v507_v31, %v507_v31  ;;  %v403_v34 = vpop.f32.mrf.mxu2  ;;  %v907_v39 = vpop.f32.mrf.mxu1 }
  0xc7   : > { %v500_v33 = vsel %vm468_vm6, %v433_v28, %v484_v30  ;;  %v404_v36 = vadd.f32 %v880_v60, %v403_v34 }
  0xc8   : > { %v516_v35 = vpack.c.bf16 %v500_v33, %v500_v33  ;;  %v386_v37 = vpop.f32.mrf.mxu0  ;;  %540 = vst.msk [vmem:[%s887_s16 + $0x28] sm:$0xf] %vm529_vm2, %v523_v32 }
  0xc9   : > { %v387_v38 = vadd.f32 %v880_v60, %v386_v37  ;;  %v453_v40 = vadd.f32 %v452_v26, %v404_v36 }
  0xca   : > { %533 = vst.msk [vmem:[%s887_s16 + $0xc] sm:$0xf] %vm529_vm2, %v516_v35 }
  0xcb   : > { %v436_v41 = vadd.f32 %v435_v7, %v387_v38  ;;  %vm476_vm7 = vcmp.ge.f32.partialorder %v453_v40, 0.0  ;;  %v492_v43 = vmul.f32 0.2, %v453_v40  ;;  %v462_v38 = vpop.f32.mrf.mxu3 }
  0xcd   : > { %vm469_vm8 = vcmp.ge.f32.partialorder %v436_v41, 0.0  ;;  %v485_v44 = vmul.f32 0.2, %v436_v41  ;;  %v508_v45 = vsel %vm476_vm7, %v453_v40, %v492_v43 }
  0xce   : > { %v524_v46 = vpack.c.bf16 %v508_v45, %v508_v45  ;;  %v406_v48 = vpop.f32.mrf.mxu2  ;;  %v445_v54 = vpop.f32.mrf.mxu1 }
  0xcf   : > { %v501_v47 = vsel %vm469_vm8, %v436_v41, %v485_v44  ;;  %v407_v51 = vadd.f32 %v880_v60, %v406_v48  ;;  %v446_v56 = vadd.f32 %v445_v54, %v397_v49 }
  0xd0   : > { %v517_v50 = vpack.c.bf16 %v501_v47, %v501_v47  ;;  %v388_v52 = vpop.f32.mrf.mxu0  ;;  %541 = vst.msk [vmem:[%s887_s16 + $0x2c] sm:$0xf] %vm529_vm2, %v524_v46 }
  0xd1   : > { %v389_v53 = vadd.f32 %v880_v60, %v388_v52  ;;  %v456_v55 = vadd.f32 %v455_v42, %v407_v51  ;;  %vm473_vm10 = vcmp.ge.f32.partialorder %v446_v56, 0.0  ;;  %v489_v59 = vmul.f32 0.2, %v446_v56 }
  0xd2   : > { %534 = vst.msk [vmem:[%s887_s16 + $0x10] sm:$0xf] %vm529_vm2, %v517_v50 }
  0xd3   : > { %v438_v57 = vadd.f32 %v437_v16, %v389_v53  ;;  %vm477_vm9 = vcmp.ge.f32.partialorder %v456_v55, 0.0  ;;  %v493_v58 = vmul.f32 0.2, %v456_v55  ;;  %v505_v0 = vsel %vm473_vm10, %v446_v56, %v489_v59 }
  0xd4   : > { %v521_v3 = vpack.c.bf16 %v505_v0, %v505_v0 }
  0xd5   : > { %vm470_vm11 = vcmp.ge.f32.partialorder %v438_v57, 0.0  ;;  %v486_v61 = vmul.f32 0.2, %v438_v57  ;;  %v509_v63 = vsel %vm477_vm9, %v456_v55, %v493_v58 }
  0xd6   : > { %v525_v1 = vpack.c.bf16 %v509_v63, %v509_v63  ;;  %v408_v4 = vpop.f32.mrf.mxu2  ;;  %v447_v10 = vpop.f32.mrf.mxu1  ;;  %538 = vst.msk [vmem:[%s887_s16 + $0x20] sm:$0xf] %vm529_vm2, %v521_v3 }
  0xd7   : > { %v502_v2 = vsel %vm470_vm11, %v438_v57, %v486_v61  ;;  %v409_v7 = vadd.f32 %v880_v60, %v408_v4  ;;  %v448_v13 = vadd.f32 %v447_v10, %v399_v5 }
  0xd8   : > { %v518_v6 = vpack.c.bf16 %v502_v2, %v502_v2  ;;  %v391_v8 = vpop.f32.mrf.mxu0  ;;  %542 = vst.msk [vmem:[%s887_s16 + $0x30] sm:$0xf] %vm529_vm2, %v525_v1 }
  0xd9   : > { %v392_v9 = vadd.f32 %v880_v60, %v391_v8  ;;  %v458_v12 = vadd.f32 %v457_v62, %v409_v7  ;;  %vm474_vm13 = vcmp.ge.f32.partialorder %v448_v13, 0.0  ;;  %v490_v15 = vmul.f32 0.2, %v448_v13 }
  0xda   : > { %535 = vst.msk [vmem:[%s887_s16 + $0x14] sm:$0xf] %vm529_vm2, %v518_v6 }
  0xdb   : > { %v441_v14 = vadd.f32 %v899_v25, %v392_v9  ;;  %vm478_vm12 = vcmp.ge.f32.partialorder %v458_v12, 0.0  ;;  %v494_v11 = vmul.f32 0.2, %v458_v12  ;;  %v506_v18 = vsel %vm474_vm13, %v448_v13, %v490_v15 }
  0xdc   : > { %v522_v21 = vpack.c.bf16 %v506_v18, %v506_v18 }
  0xdd   : > { %vm471_vm14 = vcmp.ge.f32.partialorder %v441_v14, 0.0  ;;  %v487_v16 = vmul.f32 0.2, %v441_v14  ;;  %v510_v17 = vsel %vm478_vm12, %v458_v12, %v494_v11 }
  0xde   : > { %v526_v19 = vpack.c.bf16 %v510_v17, %v510_v17  ;;  %v411_v23 = vpop.f32.mrf.mxu2  ;;  %539 = vst.msk [vmem:[%s887_s16 + $0x24] sm:$0xf] %vm529_vm2, %v522_v21 }
  0xdf   : > { %v503_v20 = vsel %vm471_vm14, %v441_v14, %v487_v16  ;;  %v412_v26 = vadd.f32 %v880_v60, %v411_v23 }
  0xe0   : > { %v519_v24 = vpack.c.bf16 %v503_v20, %v503_v20  ;;  %v393_v25 = vpop.f32.mrf.mxu0  ;;  %543 = vst.msk [vmem:[%s887_s16 + $0x34] sm:$0xf] %vm529_vm2, %v526_v19 }
  0xe1   : > { %v394_v27 = vadd.f32 %v880_v60, %v393_v25  ;;  %v461_v28 = vadd.f32 %v460_v22, %v412_v26 }
  0xe2   : > { %536 = vst.msk [vmem:[%s887_s16 + $0x18] sm:$0xf] %vm529_vm2, %v519_v24 }
  0xe3   : > { %v443_v29 = vadd.f32 %v907_v39, %v394_v27  ;;  %vm479_vm15 = vcmp.ge.f32.partialorder %v461_v28, 0.0  ;;  %v495_v30 = vmul.f32 0.2, %v461_v28 }
  0xe5   : > { %vm472_vm0 = vcmp.ge.f32.partialorder %v443_v29, 0.0  ;;  %v488_v31 = vmul.f32 0.2, %v443_v29  ;;  %v511_v32 = vsel %vm479_vm15, %v461_v28, %v495_v30 }
  0xe6   : > { %v527_v33 = vpack.c.bf16 %v511_v32, %v511_v32  ;;  %v413_v35 = vpop.f32.mrf.mxu2 }
  0xe7   : > { %v504_v34 = vsel %vm472_vm0, %v443_v29, %v488_v31  ;;  %v414_v37 = vadd.f32 %v880_v60, %v413_v35 }
  0xe8   : > { %v520_v36 = vpack.c.bf16 %v504_v34, %v504_v34  ;;  %544 = vst.msk [vmem:[%s887_s16 + $0x38] sm:$0xf] %vm529_vm2, %v527_v33 }
  0xe9   : > { %v463_v40 = vadd.f32 %v462_v38, %v414_v37 }
  0xea   : > { %537 = vst.msk [vmem:[%s887_s16 + $0x1c] sm:$0xf] %vm529_vm2, %v520_v36 }
  0xeb   : > { %vm480_vm1 = vcmp.ge.f32.partialorder %v463_v40, 0.0  ;;  %v496_v39 = vmul.f32 0.2, %v463_v40 }
  0xed   : > { %v512_v41 = vsel %vm480_vm1, %v463_v40, %v496_v39 }
  0xee   : > { %v528_v42 = vpack.c.bf16 %v512_v41, %v512_v41 }
  0xf0   : > { %545 = vst.msk [vmem:[%s887_s16 + $0x3c] sm:$0xf] %vm529_vm2, %v528_v42 }
  0xf1 PF: > { %s13_s12 = sadd.s32 1, %s772_s12  }
  0xf2   : > { %p10_p4 = scmp.ge.s32.totalorder %s13_s12, 6  }
  0xf4   :  { %12 = sbr.rel (!%p10_p4) target bundleno = 1 (0x1), region = 62 }

// kernel: unet_discriminator_sn.25
= control target key start
LH: loop header
LB: loop body
LE: loop exit
PB: predicated region body
PF: predicated region fallthrough
CT: control target
= control target key end

     0   :  { %s735_s14 = smov 0   ;;  %s880_s0 = inlined_call_operand.vmem [shape: bf16[512,144], index: 0, kind: input, shape index: {}]   ;;  %s881_s1 = inlined_call_operand.vmem [shape: bf16[144,1], index: 1, kind: input, shape index: {}]   ;;  %s882_s2 = inlined_call_operand.<no memory space> [shape: f32[1,1], index: 2, kind: input, shape index: {}]   ;;  %s883_s3 = inlined_call_operand.vmem [shape: f32[512,1], index: 3, kind: output, shape index: {}]  }
   0x1   :  { %v8_v0 = vstv %s882_s2 }
   0x2   :  { %9 = vst [vmem:[#allocation2] sm:$0x1] %v8_v0 }
   0x3 LB: > { %s540_s15 = sadd.s32 4294967295, %s710_s14   ;;  %p544_p0 = scmp.ge.s32.totalorder %s710_s14, 1  ;;  %s710_s14 = sphi %s735_s14, %s15_s14  }
   0x4   : > { %p141_p1 = scmp.lt.s32.totalorder %s710_s14, 5 }
   0x6   : > { %p142_p2 = pnand %p544_p0, %p141_p1 }
   0x7   : > { %s545_s19 = sshll.u32 (!%p142_p2), %s540_s15, 4 }
   0x8   : > { %145 = sbr.rel (%p142_p2) target bundleno = 238 (0xee), region = 32  ;;  %p167_p3 = scmp.lt.s32.totalorder (!%p142_p2), %s545_s19, 63 }
   0xd   : > { %v684_v1 = vld [vmem:[%s881_s1 + $0x38] sm:$0xff]  ;;  %v685_v2 = vld [vmem:[%s881_s1 + $0x40] sm:$0xff]  ;;  %v683_v3 = vld [vmem:[%s881_s1 + $0x30] sm:$0xff]  ;;  %s885_s19 = smov (!%p167_p3, %s545_s19), 63  ;;  %vm344_vm0 = vcmask 130048   ;;  %vm467_vm1 = vcmask 7168  }
   0xe   : > { %369 = vmatpush.bf16.msra.mxu0 %v684_v1  ;;  %686 = vmatpush.bf16.msra.mxu2 %v684_v1  ;;  %s660_s22 = sshll.u32 %s885_s19, 3  ;;  %v682_v4 = vld [vmem:[%s881_s1 + $0x28] sm:$0xff]  ;;  %v681_v8 = vld [vmem:[%s881_s1 + $0x20] sm:$0xff]  ;;  %v680_v12 = vld [vmem:[%s881_s1 + $0x18] sm:$0xff] }
   0xf   : > { %425 = vmatpush.bf16.msra.mxu1 %v685_v2  ;;  %694 = vmatpush.bf16.msra.mxu3 %v685_v2  ;;  %s760_s25 = scalar_lea.vmem %s880_s0, %s660_s22  ;;  %v679_v13 = vld [vmem:[%s881_s1 + $0x10] sm:$0xff]  ;;  %v678_v17 = vld [vmem:[%s881_s1 + $0x8] sm:$0xff]  ;;  %v677_v20 = vld [vmem:[%s881_s1] sm:$0xff]  ;;  %s828_s13 = scalar_lea.vmem %s883_s3, %s660_s22 }
  0x10   : > { %v661_v5 = vld [vmem:[%s760_s25 + $0x4] sm:$0xf]  ;;  %v554_v6 = vld [vmem:[%s760_s25 + $0x8] sm:$0xf0]  ;;  %v671_v9 = vld [vmem:[%s760_s25 + $0x54] sm:$0xf] }
  0x11   : > { %v557_v7 = vor.u32 %v661_v5, %v554_v6  ;;  %v594_v10 = vld [vmem:[%s760_s25 + $0x58] sm:$0xf0]  ;;  %v663_v14 = vld [vmem:[%s760_s25 + $0x14] sm:$0xf]  ;;  %v673_v18 = vld [vmem:[%s760_s25 + $0x64] sm:$0xf] }
  0x12   : > { %370 = vmatpush.bf16.msra.mxu0 %v683_v3  ;;  %687 = vmatpush.bf16.msra.mxu2 %v683_v3  ;;  %v597_v11 = vor.u32 %v671_v9, %v594_v10  ;;  %v562_v15 = vld [vmem:[%s760_s25 + $0x18] sm:$0xf0]  ;;  %v602_v19 = vld [vmem:[%s760_s25 + $0x68] sm:$0xf0]  ;;  %v552_v21 = vld [vmem:[%s760_s25] sm:$0xf] }
  0x13   : > { %650 = vmatmul.msk.bf16.vlgmr.msra.gmra.mxu1 %vm344_vm0, %v557_v7  ;;  %v565_v16 = vor.u32 %v663_v14, %v562_v15  ;;  %v662_v22 = vld [vmem:[%s760_s25 + $0x4] sm:$0xf0]  ;;  %v605_v23 = vor.u32 %v673_v18, %v602_v19  ;;  %v584_v24 = vld [vmem:[%s760_s25 + $0x40] sm:$0xf]  ;;  %v665_v28 = vld [vmem:[%s760_s25 + $0x24] sm:$0xf] }
  0x14   : > { %655 = vmatmul.msk.bf16.vlgmr.msra.gmra.mxu3 %vm344_vm0, %v597_v11  ;;  %v670_v25 = vld [vmem:[%s760_s25 + $0x44] sm:$0xf0]  ;;  %v553_v26 = vor.u32 %v662_v22, %v552_v21  ;;  %v570_v29 = vld [vmem:[%s760_s25 + $0x28] sm:$0xf0]  ;;  %v675_v31 = vld [vmem:[%s760_s25 + $0x74] sm:$0xf] }
  0x15   : > { %v585_v27 = vor.u32 %v670_v25, %v584_v24  ;;  %v573_v30 = vor.u32 %v665_v28, %v570_v29  ;;  %v610_v32 = vld [vmem:[%s760_s25 + $0x78] sm:$0xf0]  ;;  %v560_v33 = vld [vmem:[%s760_s25 + $0x10] sm:$0xf]  ;;  %v664_v34 = vld [vmem:[%s760_s25 + $0x14] sm:$0xf0] }
  0x16   : > { %371 = vmatpush.bf16.msra.mxu0 %v682_v4  ;;  %688 = vmatpush.bf16.msra.mxu2 %v682_v4  ;;  %v613_v35 = vor.u32 %v675_v31, %v610_v32  ;;  %v592_v36 = vld [vmem:[%s760_s25 + $0x50] sm:$0xf]  ;;  %v672_v37 = vld [vmem:[%s760_s25 + $0x54] sm:$0xf0]  ;;  %v561_v38 = vor.u32 %v664_v34, %v560_v33  ;;  %v667_v40 = vld [vmem:[%s760_s25 + $0x34] sm:$0xf] }
  0x17   : > { %v593_v39 = vor.u32 %v672_v37, %v592_v36  ;;  %v578_v41 = vld [vmem:[%s760_s25 + $0x38] sm:$0xf0]  ;;  %v568_v43 = vld [vmem:[%s760_s25 + $0x20] sm:$0xf]  ;;  %v666_v44 = vld [vmem:[%s760_s25 + $0x24] sm:$0xf0] }
  0x18   : > { %v581_v42 = vor.u32 %v667_v40, %v578_v41  ;;  %v600_v45 = vld [vmem:[%s760_s25 + $0x60] sm:$0xf]  ;;  %v674_v46 = vld [vmem:[%s760_s25 + $0x64] sm:$0xf0]  ;;  %v569_v47 = vor.u32 %v666_v44, %v568_v43  ;;  %v669_v49 = vld [vmem:[%s760_s25 + $0x44] sm:$0xf] }
  0x19   : > { %v601_v48 = vor.u32 %v674_v46, %v600_v45  ;;  %v586_v50 = vld [vmem:[%s760_s25 + $0x48] sm:$0xf0]  ;;  %v576_v52 = vld [vmem:[%s760_s25 + $0x30] sm:$0xf]  ;;  %v668_v53 = vld [vmem:[%s760_s25 + $0x34] sm:$0xf0] }
  0x1a   : > { %372 = vmatpush.bf16.msra.mxu0 %v681_v8  ;;  %689 = vmatpush.bf16.msra.mxu2 %v681_v8  ;;  %v589_v51 = vor.u32 %v669_v49, %v586_v50  ;;  %v608_v54 = vld [vmem:[%s760_s25 + $0x70] sm:$0xf]  ;;  %v676_v55 = vld [vmem:[%s760_s25 + $0x74] sm:$0xf0]  ;;  %v577_v56 = vor.u32 %v668_v53, %v576_v52  ;;  %v820_v61 = vld [vmem:[#allocation2] ss:$0 sm:$0xff] }
  0x1b   : > { %v609_v57 = vor.u32 %v676_v55, %v608_v54 }
  0x1e   : > { %373 = vmatpush.bf16.msra.mxu0 %v680_v12  ;;  %690 = vmatpush.bf16.msra.mxu2 %v680_v12 }
  0x22   : > { %374 = vmatpush.bf16.msra.mxu0 %v679_v13  ;;  %691 = vmatpush.bf16.msra.mxu2 %v679_v13 }
  0x23   : > { %651 = vmatmul.msk.bf16.gmra.mxu1 %vm344_vm0, %v565_v16 }
  0x24   : > { %656 = vmatmul.msk.bf16.gmra.mxu3 %vm344_vm0, %v605_v23 }
  0x26   : > { %375 = vmatpush.bf16.msra.mxu0 %v678_v17  ;;  %692 = vmatpush.bf16.msra.mxu2 %v678_v17 }
  0x2a   : > { %376 = vmatpush.bf16.msra.mxu0 %v677_v20  ;;  %693 = vmatpush.bf16.msra.mxu2 %v677_v20 }
  0x2d   : > { %377 = vmatmul.bf16.vlgmr.msra.gmra.mxu0 %v553_v26  ;;  %397 = vmatmul.bf16.vlgmr.msra.gmra.mxu2 %v585_v27 }
  0x33   : > { %652 = vmatmul.msk.bf16.gmra.mxu1 %vm344_vm0, %v573_v30 }
  0x34   : > { %657 = vmatmul.msk.bf16.gmra.mxu3 %vm344_vm0, %v613_v35 }
  0x3d   : > { %382 = vmatmul.bf16.gmra.mxu0 %v561_v38  ;;  %402 = vmatmul.bf16.gmra.mxu2 %v593_v39 }
  0x43   : > { %653 = vmatmul.msk.bf16.gmra.mxu1 %vm344_vm0, %v581_v42 }
  0x4d   : > { %387 = vmatmul.bf16.gmra.mxu0 %v569_v47  ;;  %407 = vmatmul.bf16.gmra.mxu2 %v601_v48 }
  0x53   : > { %654 = vmatmul.msk.bf16.gmra.mxu1 %vm344_vm0, %v589_v51 }
  0x5d   : > { %392 = vmatmul.bf16.gmra.mxu0 %v577_v56  ;;  %412 = vmatmul.bf16.gmra.mxu2 %v609_v57 }
  0x90   : > { %v427_v58 = vpop.f32.mrf.mxu1 }
  0x97   : > { %v452_v8 = vpop.f32.mrf.mxu3 }
  0x98   : > { %v429_v59 = vpop.f32.mrf.mxu1 }
  0x9f   : > { %v454_v18 = vpop.f32.mrf.mxu3 }
  0xa0   : > { %v432_v60 = vpop.f32.mrf.mxu1 }
  0xa7   : > { %v457_v28 = vpop.f32.mrf.mxu3 }
  0xa8   : > { %v434_v0 = vpop.f32.mrf.mxu1 }
  0xaa   : > { %v378_v62 = vpop.f32.mrf.mxu0 }
  0xab   : > { %v379_v63 = vadd.f32 %v820_v61, %v378_v62 }
  0xad   : > { %v428_v1 = vadd.f32 %v427_v58, %v379_v63 }
  0xaf   : > { %468 = vst.msk [vmem:[%s828_s13] sm:$0xff] %vm467_vm1, %v428_v1  ;;  %v459_v38 = vpop.f32.mrf.mxu3 }
  0xb0   : > { %v398_v2 = vpop.f32.mrf.mxu2  ;;  %v437_v5 = vpop.f32.mrf.mxu1 }
  0xb1   : > { %v399_v30 = vadd.f32 %v820_v61, %v398_v2 }
  0xb2   : > { %v380_v3 = vpop.f32.mrf.mxu0 }
  0xb3   : > { %v381_v4 = vadd.f32 %v820_v61, %v380_v3 }
  0xb5   : > { %v430_v6 = vadd.f32 %v429_v59, %v381_v4 }
  0xb7   : > { %469 = vst.msk [vmem:[%s828_s13 + $0x8] sm:$0xff] %vm467_vm1, %v430_v6  ;;  %v462_v48 = vpop.f32.mrf.mxu3 }
  0xb8   : > { %v400_v7 = vpop.f32.mrf.mxu2  ;;  %v439_v11 = vpop.f32.mrf.mxu1 }
  0xb9   : > { %v401_v40 = vadd.f32 %v820_v61, %v400_v7 }
  0xba   : > { %v383_v9 = vpop.f32.mrf.mxu0 }
  0xbb   : > { %v384_v10 = vadd.f32 %v820_v61, %v383_v9 }
  0xbd   : > { %v433_v12 = vadd.f32 %v432_v60, %v384_v10 }
  0xbf   : > { %470 = vst.msk [vmem:[%s828_s13 + $0x10] sm:$0xff] %vm467_vm1, %v433_v12  ;;  %v464_v57 = vpop.f32.mrf.mxu3 }
  0xc0   : > { %v403_v13 = vpop.f32.mrf.mxu2  ;;  %v442_v17 = vpop.f32.mrf.mxu1 }
  0xc1   : > { %v404_v14 = vadd.f32 %v820_v61, %v403_v13 }
  0xc2   : > { %v385_v15 = vpop.f32.mrf.mxu0 }
  0xc3   : > { %v386_v16 = vadd.f32 %v820_v61, %v385_v15  ;;  %v453_v19 = vadd.f32 %v452_v8, %v404_v14 }
  0xc5   : > { %v435_v20 = vadd.f32 %v434_v0, %v386_v16  ;;  %478 = vst.msk [vmem:[%s828_s13 + $0x50] sm:$0xff] %vm467_vm1, %v453_v19 }
  0xc7   : > { %471 = vst.msk [vmem:[%s828_s13 + $0x18] sm:$0xff] %vm467_vm1, %v435_v20 }
  0xc8   : > { %v405_v21 = vpop.f32.mrf.mxu2  ;;  %v444_v25 = vpop.f32.mrf.mxu1 }
  0xc9   : > { %v406_v22 = vadd.f32 %v820_v61, %v405_v21 }
  0xca   : > { %v388_v23 = vpop.f32.mrf.mxu0 }
  0xcb   : > { %v389_v24 = vadd.f32 %v820_v61, %v388_v23  ;;  %v455_v26 = vadd.f32 %v454_v18, %v406_v22 }
  0xcd   : > { %v438_v27 = vadd.f32 %v437_v5, %v389_v24  ;;  %479 = vst.msk [vmem:[%s828_s13 + $0x58] sm:$0xff] %vm467_vm1, %v455_v26 }
  0xcf   : > { %472 = vst.msk [vmem:[%s828_s13 + $0x20] sm:$0xff] %vm467_vm1, %v438_v27 }
  0xd0   : > { %v408_v29 = vpop.f32.mrf.mxu2  ;;  %v447_v34 = vpop.f32.mrf.mxu1 }
  0xd1   : > { %v409_v31 = vadd.f32 %v820_v61, %v408_v29  ;;  %v448_v36 = vadd.f32 %v447_v34, %v399_v30 }
  0xd2   : > { %v390_v32 = vpop.f32.mrf.mxu0 }
  0xd3   : > { %v391_v33 = vadd.f32 %v820_v61, %v390_v32  ;;  %v458_v35 = vadd.f32 %v457_v28, %v409_v31  ;;  %476 = vst.msk [vmem:[%s828_s13 + $0x40] sm:$0xff] %vm467_vm1, %v448_v36 }
  0xd5   : > { %v440_v37 = vadd.f32 %v439_v11, %v391_v33  ;;  %480 = vst.msk [vmem:[%s828_s13 + $0x60] sm:$0xff] %vm467_vm1, %v458_v35 }
  0xd7   : > { %473 = vst.msk [vmem:[%s828_s13 + $0x28] sm:$0xff] %vm467_vm1, %v440_v37 }
  0xd8   : > { %v410_v39 = vpop.f32.mrf.mxu2  ;;  %v449_v44 = vpop.f32.mrf.mxu1 }
  0xd9   : > { %v411_v41 = vadd.f32 %v820_v61, %v410_v39  ;;  %v450_v46 = vadd.f32 %v449_v44, %v401_v40 }
  0xda   : > { %v393_v42 = vpop.f32.mrf.mxu0 }
  0xdb   : > { %v394_v43 = vadd.f32 %v820_v61, %v393_v42  ;;  %v460_v45 = vadd.f32 %v459_v38, %v411_v41  ;;  %477 = vst.msk [vmem:[%s828_s13 + $0x48] sm:$0xff] %vm467_vm1, %v450_v46 }
  0xdd   : > { %v443_v47 = vadd.f32 %v442_v17, %v394_v43  ;;  %481 = vst.msk [vmem:[%s828_s13 + $0x68] sm:$0xff] %vm467_vm1, %v460_v45 }
  0xdf   : > { %474 = vst.msk [vmem:[%s828_s13 + $0x30] sm:$0xff] %vm467_vm1, %v443_v47 }
  0xe0   : > { %v413_v49 = vpop.f32.mrf.mxu2 }
  0xe1   : > { %v414_v50 = vadd.f32 %v820_v61, %v413_v49 }
  0xe2   : > { %v395_v51 = vpop.f32.mrf.mxu0 }
  0xe3   : > { %v396_v52 = vadd.f32 %v820_v61, %v395_v51  ;;  %v463_v53 = vadd.f32 %v462_v48, %v414_v50 }
  0xe5   : > { %v445_v54 = vadd.f32 %v444_v25, %v396_v52  ;;  %482 = vst.msk [vmem:[%s828_s13 + $0x70] sm:$0xff] %vm467_vm1, %v463_v53 }
  0xe7   : > { %475 = vst.msk [vmem:[%s828_s13 + $0x38] sm:$0xff] %vm467_vm1, %v445_v54 }
  0xe8   : > { %v415_v55 = vpop.f32.mrf.mxu2 }
  0xe9   : > { %v416_v56 = vadd.f32 %v820_v61, %v415_v55 }
  0xeb   : > { %v465_v58 = vadd.f32 %v464_v57, %v416_v56 }
  0xed   : > { %483 = vst.msk [vmem:[%s828_s13 + $0x78] sm:$0xff] %vm467_vm1, %v465_v58 }
  0xee PF: > { %s15_s14 = sadd.s32 1, %s710_s14  }
  0xef   : > { %p12_p4 = scmp.ge.s32.totalorder %s15_s14, 6  }
  0xf1   :  { %14 = sbr.rel (!%p12_p4) target bundleno = 3 (0x3), region = 62 }

</bundles_post_ra>
